<compile_context>
chip_gen: v7x
topology: tpu7x:2x2x1
jax: 0.10.0
libtpu: 0.0.40
codegen_flags: <defaults>
</compile_context>

<pallas_src>
import functools
import math

import jax
import jax.numpy as jnp
from jax.experimental import pallas as pl
from jax.experimental.pallas import tpu as pltpu

# Matmul input dtype.  f32 keeps parity with the f32 reference; on v6e/v7x set
# to jnp.bfloat16 (accumulation stays f32 via preferred_element_type) for ~2x
# MXU throughput once d_model is large enough to matter.  Elementwise /
# softmax / LayerNorm math stays f32 (required for v5e's VPU/EUP anyway).
MATMUL_INPUT_DTYPE = jnp.float32


def _round_up(x, m):
    return ((x + m - 1) // m) * m


# ----------------------------------------------------------------------------
# Fused forward kernel: embed -> num_layers x encoder layer -> output linear
# ----------------------------------------------------------------------------
def _fused_forward_kernel(
        x_ref, emb_w_ref, emb_b_ref,
        wq_ref, bq_ref, wk_ref, bk_ref, wv_ref, bv_ref,
        wo_ref, bo_ref, ln1w_ref, ln1b_ref,
        w1_ref, b1_ref, w2_ref, b2_ref, ln2w_ref, ln2b_ref,
        outw_ref, outb_ref, o_ref,
        *, num_layers, nhead, eps):
    batch, seq, _ = x_ref.shape
    n_rows = batch * seq
    d_model = emb_w_ref.shape[1]
    hd = d_model // nhead
    scale = 1.0 / math.sqrt(hd)

    def mm(a, b):
        return jnp.dot(a.astype(MATMUL_INPUT_DTYPE),
                       b.astype(MATMUL_INPUT_DTYPE),
                       preferred_element_type=jnp.float32)

    def layer_norm(v, w, b):
        mu = jnp.mean(v, axis=-1, keepdims=True)
        c = v - mu
        var = jnp.mean(c * c, axis=-1, keepdims=True)   # biased, like PyTorch
        return c * jax.lax.rsqrt(var + eps) * w + b

    # --- embedder: Linear + dropout (identity, eval mode) ---
    x = x_ref[...].astype(jnp.float32).reshape(n_rows, -1)      # (N, Din)
    h = mm(x, emb_w_ref[...]) + emb_b_ref[...]                  # (N, D)

    for li in range(num_layers):
        # --- multi-head self-attention with pre-split per-head weights ---
        attn = jnp.zeros((n_rows, d_model), jnp.float32)
        for hh in range(nhead):
            qh = (mm(h, wq_ref[li, hh]) + bq_ref[li, hh]).reshape(batch, seq, hd)
            kh = (mm(h, wk_ref[li, hh]) + bk_ref[li, hh]).reshape(batch, seq, hd)
            vh = (mm(h, wv_ref[li, hh]) + bv_ref[li, hh]).reshape(batch, seq, hd)
            # batched over B, contract head_dim (no explicit k.T)
            sc = jnp.einsum('bqd,bkd->bqk', qh, kh,
                            preferred_element_type=jnp.float32) * scale
            sc = sc - jnp.max(sc, axis=-1, keepdims=True)
            p = jnp.exp(sc)
            p = p * pl.reciprocal(jnp.sum(p, axis=-1, keepdims=True), approx=True)
            oh = jnp.einsum('bqk,bkd->bqd', p, vh,
                            preferred_element_type=jnp.float32)
            # accumulate through the per-head slice of the output projection
            attn = attn + mm(oh.reshape(n_rows, hd), wo_ref[li, hh])
        attn = attn + bo_ref[li]

        # --- residual + LayerNorm 1 (post-norm, PyTorch norm_first=False) ---
        h = layer_norm(h + attn, ln1w_ref[li], ln1b_ref[li])

        # --- feed-forward (relu), dropout identity ---
        ff = jnp.maximum(mm(h, w1_ref[li]) + b1_ref[li], 0.0)
        ff = mm(ff, w2_ref[li]) + b2_ref[li]

        # --- residual + LayerNorm 2 ---
        h = layer_norm(h + ff, ln2w_ref[li], ln2b_ref[li])

    # --- output layer, padded to 128 lanes -> lane-dense store ---
    q_out = mm(h, outw_ref[...]) + outb_ref[...]                # (N, OUT_PAD)
    o_ref[...] = q_out.reshape(batch, seq, -1).astype(o_ref.dtype)


# ----------------------------------------------------------------------------
# Wrapper
# ----------------------------------------------------------------------------
def _estimate_flops(batch, seq, in_dim, d_model, dim_ff, out_pad, nhead,
                    num_layers):
    n = batch * seq
    hd = d_model // nhead
    per_head = (3 * 2 * n * d_model * hd            # q/k/v projections
                + 2 * 2 * batch * seq * seq * hd    # scores + PV
                + 2 * n * hd * d_model)             # per-head output proj
    flops = (2 * n * in_dim * d_model
             + num_layers * (nhead * per_head + 2 * 2 * n * d_model * dim_ff)
             + 2 * n * d_model * out_pad)
    transc = num_layers * (nhead * (batch * seq * seq + batch * seq) + 2 * n)
    return int(flops), int(transc)


def transformer_dqn_forward(x, kparams):
    """x: (S, B, input_size) -> (S, B, output_size)  (batch_first=False)."""
    seq, batch, in_dim = x.shape
    arrays = kparams["arrays"]
    out_pad = kparams["out_padded"]
    out_size = kparams["output_size"]

    # One transpose each way at the model boundary (attention batches over B
    # inside the kernel); no per-layer transposes anymore.
    xb = jnp.transpose(x, (1, 0, 2))                    # (B, S, Din)

    kernel = functools.partial(
        _fused_forward_kernel,
        num_layers=kparams["num_layers"], nhead=kparams["nhead"], eps=1e-5)

    vmem_spec = pl.BlockSpec(memory_space=pltpu.MemorySpace.VMEM)
    flops, transc = _estimate_flops(
        batch, seq, in_dim, kparams["d_model"], kparams["dim_ff"],
        out_pad, kparams["nhead"], kparams["num_layers"])
    bytes_accessed = int(sum(int(a.size) * a.dtype.itemsize
                             for a in (xb,) + arrays)
                         + batch * seq * out_pad * 4)

    out = pl.pallas_call(
        kernel,
        out_shape=jax.ShapeDtypeStruct((batch, seq, out_pad), jnp.float32),
        in_specs=[vmem_spec] * (1 + len(arrays)),
        out_specs=vmem_spec,
        compiler_params=pltpu.CompilerParams(
            vmem_limit_bytes=16 * 1024 * 1024),
        cost_estimate=pl.CostEstimate(flops=flops, transcendentals=transc,
                                      bytes_accessed=bytes_accessed),
    )(xb, *arrays)

    return jnp.transpose(out[..., :out_size], (1, 0, 2))


# ----------------------------------------------------------------------------
# Parameter construction / kernel-ready packing
# ----------------------------------------------------------------------------
def init_params(key, *, input_size, d_model, nhead, dim_ff, num_layers,
                output_size):
    assert d_model % nhead == 0

    def nrm(k, shape, scale=0.05):
        return (scale * jax.random.normal(k, shape)).astype(jnp.float32)

    keys = jax.random.split(key, 2 + num_layers)
    params = {
        "nhead": nhead,
        "embed_w": nrm(keys[0], (input_size, d_model)),
        "embed_b": nrm(keys[0], (d_model,), 0.02),
        "out_w": nrm(keys[1], (d_model, output_size)),
        "out_b": nrm(keys[1], (output_size,), 0.02),
        "layers": [],
    }
    for li in range(num_layers):
        ks = jax.random.split(keys[2 + li], 12)
        params["layers"].append({
            "wq": nrm(ks[0], (d_model, d_model)),
            "bq": nrm(ks[1], (d_model,), 0.02),
            "wk": nrm(ks[2], (d_model, d_model)),
            "bk": nrm(ks[3], (d_model,), 0.02),
            "wv": nrm(ks[4], (d_model, d_model)),
            "bv": nrm(ks[5], (d_model,), 0.02),
            "wo": nrm(ks[6], (d_model, d_model)),
            "bo": nrm(ks[7], (d_model,), 0.02),
            "ln1_w": jnp.ones((d_model,), jnp.float32),
            "ln1_b": jnp.zeros((d_model,), jnp.float32),
            "w1": nrm(ks[8], (d_model, dim_ff)),
            "b1": nrm(ks[9], (dim_ff,), 0.02),
            "w2": nrm(ks[10], (dim_ff, d_model)),
            "b2": nrm(ks[11], (d_model,), 0.02),
            "ln2_w": jnp.ones((d_model,), jnp.float32),
            "ln2_b": jnp.zeros((d_model,), jnp.float32),
        })
    return params


def prepare_kernel_params(params):
    """Pack weights into the fused kernel's layout:
       per-head split Q/K/V/O stacked over layers, 128-lane-padded output."""
    d_model = params["embed_w"].shape[1]
    nhead = params["nhead"]
    hd = d_model // nhead
    num_layers = len(params["layers"])
    dim_ff = params["layers"][0]["w1"].shape[1]
    out_size = params["out_w"].shape[1]
    out_pad = _round_up(out_size, 128)

    def heads_in(w):      # (D, D) -> (H, D, hd)   (head-contiguous columns)
        return jnp.transpose(w.reshape(d_model, nhead, hd), (1, 0, 2))

    def heads_bias(b):    # (D,)   -> (H, 1, hd)
        return b.reshape(nhead, 1, hd)

    def heads_out(w):     # (D, D) -> (H, hd, D)   (head-contiguous rows)
        return w.reshape(nhead, hd, d_model)

    def row(b):
        return b.reshape(1, -1)

    def stack(fn, name):
        return jnp.stack([fn(lp[name]) for lp in params["layers"]])

    out_w = jnp.pad(params["out_w"], ((0, 0), (0, out_pad - out_size)))
    out_b = jnp.pad(params["out_b"], (0, out_pad - out_size)).reshape(1, out_pad)

    arrays = (
        params["embed_w"], row(params["embed_b"]),
        stack(heads_in, "wq"), stack(heads_bias, "bq"),
        stack(heads_in, "wk"), stack(heads_bias, "bk"),
        stack(heads_in, "wv"), stack(heads_bias, "bv"),
        stack(heads_out, "wo"), stack(row, "bo"),
        stack(row, "ln1_w"), stack(row, "ln1_b"),
        stack(lambda w: w, "w1"), stack(row, "b1"),
        stack(lambda w: w, "w2"), stack(row, "b2"),
        stack(row, "ln2_w"), stack(row, "ln2_b"),
        out_w, out_b,
    )
    return {
        "arrays": arrays,
        "nhead": nhead,
        "num_layers": num_layers,
        "d_model": d_model,
        "dim_ff": dim_ff,
        "output_size": out_size,
        "out_padded": out_pad,
    }


# ----------------------------------------------------------------------------
# Pure-JAX reference (same math, no Pallas) for a sanity check
# ----------------------------------------------------------------------------
def _reference_forward(x, params):
    seq, batch, _ = x.shape
    d_model = params["embed_w"].shape[1]
    nhead = params["nhead"]
    hd = d_model // nhead
    eps = 1e-5

    def ln(v, w, b):
        mu = v.mean(-1, keepdims=True)
        var = ((v - mu) ** 2).mean(-1, keepdims=True)
        return (v - mu) / jnp.sqrt(var + eps) * w + b

    h = jnp.einsum('sbi,ij->sbj', x, params["embed_w"]) + params["embed_b"]
    h = jnp.transpose(h, (1, 0, 2))                              # (B, S, D)
    for lp in params["layers"]:
        q = (h @ lp["wq"] + lp["bq"]).reshape(batch, seq, nhead, hd)
        k = (h @ lp["wk"] + lp["bk"]).reshape(batch, seq, nhead, hd)
        v = (h @ lp["wv"] + lp["bv"]).reshape(batch, seq, nhead, hd)
        sc = jnp.einsum('bqhd,bkhd->bhqk', q, k) / math.sqrt(hd)
        p = jax.nn.softmax(sc, axis=-1)
        o = jnp.einsum('bhqk,bkhd->bqhd', p, v).reshape(batch, seq, d_model)
        h = ln(h + o @ lp["wo"] + lp["bo"], lp["ln1_w"], lp["ln1_b"])
        ff = jax.nn.relu(h @ lp["w1"] + lp["b1"]) @ lp["w2"] + lp["b2"]
        h = ln(h + ff, lp["ln2_w"], lp["ln2_b"])
    out = h @ params["out_w"] + params["out_b"]
    return jnp.transpose(out, (1, 0, 2))                         # (S, B, OUT)


if __name__ == "__main__":
    SEQ, BATCH, IN_DIM = 8, 2, 16
    D_MODEL, NHEAD, DIM_FF = 32, 4, 64
    NUM_LAYERS, OUT_SIZE = 2, 4

    key = jax.random.PRNGKey(0)
    k_x, k_p = jax.random.split(key)
    x = jax.random.normal(k_x, (SEQ, BATCH, IN_DIM), dtype=jnp.float32)
    params = init_params(k_p, input_size=IN_DIM, d_model=D_MODEL, nhead=NHEAD,
                         dim_ff=DIM_FF, num_layers=NUM_LAYERS,
                         output_size=OUT_SIZE)
    kparams = prepare_kernel_params(params)

    q_values = transformer_dqn_forward(x, kparams)
    jax.block_until_ready(q_values)
    assert q_values.shape == (SEQ, BATCH, OUT_SIZE)

    # sanity check against a pure-JAX reference (approx reciprocal in softmax
    # and matmul ordering differences are well inside this tolerance)
    ref = _reference_forward(x, params)
    err = float(jnp.max(jnp.abs(q_values - ref)))
    assert err < 2e-2, f"kernel/reference mismatch: max abs err {err}"

    # TODO(synk): the original `embedder` is an injected module; a
    # Linear+dropout embedder is used here and dropout is identity (eval mode).
    print("KERNEL_OK")
</pallas_src>

<mosaic_0001>
module attributes {stable_mosaic.version = 11 : i64} {
  func.func @_fused_forward_kernel(%arg0: memref<2x8x16xf32, #tpu.memory_space<vmem>>, %arg1: memref<16x32xf32, #tpu.memory_space<vmem>>, %arg2: memref<1x32xf32, #tpu.memory_space<vmem>>, %arg3: memref<2x4x32x8xf32, #tpu.memory_space<vmem>>, %arg4: memref<2x4x1x8xf32, #tpu.memory_space<vmem>>, %arg5: memref<2x4x32x8xf32, #tpu.memory_space<vmem>>, %arg6: memref<2x4x1x8xf32, #tpu.memory_space<vmem>>, %arg7: memref<2x4x32x8xf32, #tpu.memory_space<vmem>>, %arg8: memref<2x4x1x8xf32, #tpu.memory_space<vmem>>, %arg9: memref<2x4x8x32xf32, #tpu.memory_space<vmem>>, %arg10: memref<2x1x32xf32, #tpu.memory_space<vmem>>, %arg11: memref<2x1x32xf32, #tpu.memory_space<vmem>>, %arg12: memref<2x1x32xf32, #tpu.memory_space<vmem>>, %arg13: memref<2x32x64xf32, #tpu.memory_space<vmem>>, %arg14: memref<2x1x64xf32, #tpu.memory_space<vmem>>, %arg15: memref<2x64x32xf32, #tpu.memory_space<vmem>>, %arg16: memref<2x1x32xf32, #tpu.memory_space<vmem>>, %arg17: memref<2x1x32xf32, #tpu.memory_space<vmem>>, %arg18: memref<2x1x32xf32, #tpu.memory_space<vmem>>, %arg19: memref<32x128xf32, #tpu.memory_space<vmem>>, %arg20: memref<1x128xf32, #tpu.memory_space<vmem>>, %arg21: memref<2x8x128xf32, #tpu.memory_space<vmem>>) attributes {dimension_semantics = [], scalar_prefetch = 0 : i64, scratch_operands = 0 : i64, tpu.core_type = #tpu.core_type<tc>} {
    %c0 = arith.constant 0 : index
    %c0_0 = arith.constant 0 : index
    %c0_1 = arith.constant 0 : index
    %0 = vector.load %arg0[%c0, %c0_0, %c0_1] : memref<2x8x16xf32, #tpu.memory_space<vmem>>, vector<2x8x16xf32>
    %1 = vector.shape_cast %0 : vector<2x8x16xf32> to vector<16x16xf32>
    %c0_2 = arith.constant 0 : index
    %c0_3 = arith.constant 0 : index
    %2 = vector.load %arg1[%c0_2, %c0_3] : memref<16x32xf32, #tpu.memory_space<vmem>>, vector<16x32xf32>
    %cst = arith.constant dense<0.000000e+00> : vector<16x32xf32>
    %3 = tpu.matmul %1, %2, %cst {dimension_numbers = #tpu.dot_dimension_numbers<[1], [0], [0], [1], [0, 0, 1, 1], [], []>} : vector<16x16xf32>, vector<16x32xf32>, vector<16x32xf32> -> vector<16x32xf32>
    %c0_4 = arith.constant 0 : index
    %c0_5 = arith.constant 0 : index
    %4 = vector.load %arg2[%c0_4, %c0_5] : memref<1x32xf32, #tpu.memory_space<vmem>>, vector<1x32xf32>
    %5 = vector.broadcast %4 : vector<1x32xf32> to vector<16x32xf32>
    %6 = arith.addf %3, %5 : vector<16x32xf32>
    %cst_6 = arith.constant 0.000000e+00 : f32
    %7 = vector.broadcast %cst_6 : f32 to vector<16x32xf32>
    %c0_7 = arith.constant 0 : index
    %c0_8 = arith.constant 0 : index
    %c0_9 = arith.constant 0 : index
    %c0_10 = arith.constant 0 : index
    %8 = vector.load %arg3[%c0_7, %c0_8, %c0_9, %c0_10] : memref<2x4x32x8xf32, #tpu.memory_space<vmem>>, vector<1x1x32x8xf32>
    %9 = vector.shape_cast %8 : vector<1x1x32x8xf32> to vector<32x8xf32>
    %cst_11 = arith.constant dense<0.000000e+00> : vector<16x8xf32>
    %10 = tpu.matmul %6, %9, %cst_11 {dimension_numbers = #tpu.dot_dimension_numbers<[1], [0], [0], [1], [0, 0, 1, 1], [], []>} : vector<16x32xf32>, vector<32x8xf32>, vector<16x8xf32> -> vector<16x8xf32>
    %c0_12 = arith.constant 0 : index
    %c0_13 = arith.constant 0 : index
    %c0_14 = arith.constant 0 : index
    %c0_15 = arith.constant 0 : index
    %11 = vector.load %arg4[%c0_12, %c0_13, %c0_14, %c0_15] : memref<2x4x1x8xf32, #tpu.memory_space<vmem>>, vector<1x1x1x8xf32>
    %12 = vector.shape_cast %11 : vector<1x1x1x8xf32> to vector<1x8xf32>
    %13 = vector.broadcast %12 : vector<1x8xf32> to vector<16x8xf32>
    %14 = arith.addf %10, %13 : vector<16x8xf32>
    %15 = vector.shape_cast %14 : vector<16x8xf32> to vector<2x8x8xf32>
    %c0_16 = arith.constant 0 : index
    %c0_17 = arith.constant 0 : index
    %c0_18 = arith.constant 0 : index
    %c0_19 = arith.constant 0 : index
    %16 = vector.load %arg5[%c0_16, %c0_17, %c0_18, %c0_19] : memref<2x4x32x8xf32, #tpu.memory_space<vmem>>, vector<1x1x32x8xf32>
    %17 = vector.shape_cast %16 : vector<1x1x32x8xf32> to vector<32x8xf32>
    %cst_20 = arith.constant dense<0.000000e+00> : vector<16x8xf32>
    %18 = tpu.matmul %6, %17, %cst_20 {dimension_numbers = #tpu.dot_dimension_numbers<[1], [0], [0], [1], [0, 0, 1, 1], [], []>} : vector<16x32xf32>, vector<32x8xf32>, vector<16x8xf32> -> vector<16x8xf32>
    %c0_21 = arith.constant 0 : index
    %c0_22 = arith.constant 0 : index
    %c0_23 = arith.constant 0 : index
    %c0_24 = arith.constant 0 : index
    %19 = vector.load %arg6[%c0_21, %c0_22, %c0_23, %c0_24] : memref<2x4x1x8xf32, #tpu.memory_space<vmem>>, vector<1x1x1x8xf32>
    %20 = vector.shape_cast %19 : vector<1x1x1x8xf32> to vector<1x8xf32>
    %21 = vector.broadcast %20 : vector<1x8xf32> to vector<16x8xf32>
    %22 = arith.addf %18, %21 : vector<16x8xf32>
    %23 = vector.shape_cast %22 : vector<16x8xf32> to vector<2x8x8xf32>
    %c0_25 = arith.constant 0 : index
    %c0_26 = arith.constant 0 : index
    %c0_27 = arith.constant 0 : index
    %c0_28 = arith.constant 0 : index
    %24 = vector.load %arg7[%c0_25, %c0_26, %c0_27, %c0_28] : memref<2x4x32x8xf32, #tpu.memory_space<vmem>>, vector<1x1x32x8xf32>
    %25 = vector.shape_cast %24 : vector<1x1x32x8xf32> to vector<32x8xf32>
    %cst_29 = arith.constant dense<0.000000e+00> : vector<16x8xf32>
    %26 = tpu.matmul %6, %25, %cst_29 {dimension_numbers = #tpu.dot_dimension_numbers<[1], [0], [0], [1], [0, 0, 1, 1], [], []>} : vector<16x32xf32>, vector<32x8xf32>, vector<16x8xf32> -> vector<16x8xf32>
    %c0_30 = arith.constant 0 : index
    %c0_31 = arith.constant 0 : index
    %c0_32 = arith.constant 0 : index
    %c0_33 = arith.constant 0 : index
    %27 = vector.load %arg8[%c0_30, %c0_31, %c0_32, %c0_33] : memref<2x4x1x8xf32, #tpu.memory_space<vmem>>, vector<1x1x1x8xf32>
    %28 = vector.shape_cast %27 : vector<1x1x1x8xf32> to vector<1x8xf32>
    %29 = vector.broadcast %28 : vector<1x8xf32> to vector<16x8xf32>
    %30 = arith.addf %26, %29 : vector<16x8xf32>
    %31 = vector.shape_cast %30 : vector<16x8xf32> to vector<2x8x8xf32>
    "tpu.trace_start"() <{level = 10 : i32, message = "bqd,bkd->bqk"}> : () -> ()
    %cst_34 = arith.constant dense<0.000000e+00> : vector<2x8x8xf32>
    %32 = tpu.matmul %15, %23, %cst_34 {dimension_numbers = #tpu.dot_dimension_numbers<[2], [2], [1], [1], [0, 0, 0, 1, 1, 1], [0], [0]>} : vector<2x8x8xf32>, vector<2x8x8xf32>, vector<2x8x8xf32> -> vector<2x8x8xf32>
    "tpu.trace_stop"() : () -> ()
    %cst_35 = arith.constant 0.353553385 : f32
    %33 = vector.broadcast %cst_35 : f32 to vector<2x8x8xf32>
    %34 = arith.mulf %32, %33 : vector<2x8x8xf32>
    %cst_36 = arith.constant dense<0xFF800000> : vector<2x8xf32>
    %35 = vector.multi_reduction <maximumf>, %34, %cst_36 [2] : vector<2x8x8xf32> to vector<2x8xf32>
    %36 = vector.shape_cast %35 : vector<2x8xf32> to vector<2x8x1xf32>
    %37 = vector.broadcast %36 : vector<2x8x1xf32> to vector<2x8x8xf32>
    %38 = arith.subf %34, %37 : vector<2x8x8xf32>
    %39 = math.exp %38 : vector<2x8x8xf32>
    %cst_37 = arith.constant dense<0.000000e+00> : vector<2x8xf32>
    %40 = vector.multi_reduction <add>, %39, %cst_37 [2] : vector<2x8x8xf32> to vector<2x8xf32>
    %41 = vector.shape_cast %40 : vector<2x8xf32> to vector<2x8x1xf32>
    %42 = tpu.reciprocal %41 {approx = true} : vector<2x8x1xf32> -> vector<2x8x1xf32>
    %43 = vector.broadcast %42 : vector<2x8x1xf32> to vector<2x8x8xf32>
    %44 = arith.mulf %39, %43 : vector<2x8x8xf32>
    "tpu.trace_start"() <{level = 10 : i32, message = "bqk,bkd->bqd"}> : () -> ()
    %cst_38 = arith.constant dense<0.000000e+00> : vector<2x8x8xf32>
    %45 = tpu.matmul %44, %31, %cst_38 {dimension_numbers = #tpu.dot_dimension_numbers<[2], [1], [1], [2], [0, 0, 0, 1, 1, 2], [0], [0]>} : vector<2x8x8xf32>, vector<2x8x8xf32>, vector<2x8x8xf32> -> vector<2x8x8xf32>
    "tpu.trace_stop"() : () -> ()
    %46 = vector.shape_cast %45 : vector<2x8x8xf32> to vector<16x8xf32>
    %c0_39 = arith.constant 0 : index
    %c0_40 = arith.constant 0 : index
    %c0_41 = arith.constant 0 : index
    %c0_42 = arith.constant 0 : index
    %47 = vector.load %arg9[%c0_39, %c0_40, %c0_41, %c0_42] : memref<2x4x8x32xf32, #tpu.memory_space<vmem>>, vector<1x1x8x32xf32>
    %48 = vector.shape_cast %47 : vector<1x1x8x32xf32> to vector<8x32xf32>
    %cst_43 = arith.constant dense<0.000000e+00> : vector<16x32xf32>
    %49 = tpu.matmul %46, %48, %cst_43 {dimension_numbers = #tpu.dot_dimension_numbers<[1], [0], [0], [1], [0, 0, 1, 1], [], []>} : vector<16x8xf32>, vector<8x32xf32>, vector<16x32xf32> -> vector<16x32xf32>
    %50 = arith.addf %7, %49 : vector<16x32xf32>
    %c0_44 = arith.constant 0 : index
    %c1 = arith.constant 1 : index
    %c0_45 = arith.constant 0 : index
    %c0_46 = arith.constant 0 : index
    %51 = vector.load %arg3[%c0_44, %c1, %c0_45, %c0_46] : memref<2x4x32x8xf32, #tpu.memory_space<vmem>>, vector<1x1x32x8xf32>
    %52 = vector.shape_cast %51 : vector<1x1x32x8xf32> to vector<32x8xf32>
    %cst_47 = arith.constant dense<0.000000e+00> : vector<16x8xf32>
    %53 = tpu.matmul %6, %52, %cst_47 {dimension_numbers = #tpu.dot_dimension_numbers<[1], [0], [0], [1], [0, 0, 1, 1], [], []>} : vector<16x32xf32>, vector<32x8xf32>, vector<16x8xf32> -> vector<16x8xf32>
    %c0_48 = arith.constant 0 : index
    %c1_49 = arith.constant 1 : index
    %c0_50 = arith.constant 0 : index
    %c0_51 = arith.constant 0 : index
    %54 = vector.load %arg4[%c0_48, %c1_49, %c0_50, %c0_51] : memref<2x4x1x8xf32, #tpu.memory_space<vmem>>, vector<1x1x1x8xf32>
    %55 = vector.shape_cast %54 : vector<1x1x1x8xf32> to vector<1x8xf32>
    %56 = vector.broadcast %55 : vector<1x8xf32> to vector<16x8xf32>
    %57 = arith.addf %53, %56 : vector<16x8xf32>
    %58 = vector.shape_cast %57 : vector<16x8xf32> to vector<2x8x8xf32>
    %c0_52 = arith.constant 0 : index
    %c1_53 = arith.constant 1 : index
    %c0_54 = arith.constant 0 : index
    %c0_55 = arith.constant 0 : index
    %59 = vector.load %arg5[%c0_52, %c1_53, %c0_54, %c0_55] : memref<2x4x32x8xf32, #tpu.memory_space<vmem>>, vector<1x1x32x8xf32>
    %60 = vector.shape_cast %59 : vector<1x1x32x8xf32> to vector<32x8xf32>
    %cst_56 = arith.constant dense<0.000000e+00> : vector<16x8xf32>
    %61 = tpu.matmul %6, %60, %cst_56 {dimension_numbers = #tpu.dot_dimension_numbers<[1], [0], [0], [1], [0, 0, 1, 1], [], []>} : vector<16x32xf32>, vector<32x8xf32>, vector<16x8xf32> -> vector<16x8xf32>
    %c0_57 = arith.constant 0 : index
    %c1_58 = arith.constant 1 : index
    %c0_59 = arith.constant 0 : index
    %c0_60 = arith.constant 0 : index
    %62 = vector.load %arg6[%c0_57, %c1_58, %c0_59, %c0_60] : memref<2x4x1x8xf32, #tpu.memory_space<vmem>>, vector<1x1x1x8xf32>
    %63 = vector.shape_cast %62 : vector<1x1x1x8xf32> to vector<1x8xf32>
    %64 = vector.broadcast %63 : vector<1x8xf32> to vector<16x8xf32>
    %65 = arith.addf %61, %64 : vector<16x8xf32>
    %66 = vector.shape_cast %65 : vector<16x8xf32> to vector<2x8x8xf32>
    %c0_61 = arith.constant 0 : index
    %c1_62 = arith.constant 1 : index
    %c0_63 = arith.constant 0 : index
    %c0_64 = arith.constant 0 : index
    %67 = vector.load %arg7[%c0_61, %c1_62, %c0_63, %c0_64] : memref<2x4x32x8xf32, #tpu.memory_space<vmem>>, vector<1x1x32x8xf32>
    %68 = vector.shape_cast %67 : vector<1x1x32x8xf32> to vector<32x8xf32>
    %cst_65 = arith.constant dense<0.000000e+00> : vector<16x8xf32>
    %69 = tpu.matmul %6, %68, %cst_65 {dimension_numbers = #tpu.dot_dimension_numbers<[1], [0], [0], [1], [0, 0, 1, 1], [], []>} : vector<16x32xf32>, vector<32x8xf32>, vector<16x8xf32> -> vector<16x8xf32>
    %c0_66 = arith.constant 0 : index
    %c1_67 = arith.constant 1 : index
    %c0_68 = arith.constant 0 : index
    %c0_69 = arith.constant 0 : index
    %70 = vector.load %arg8[%c0_66, %c1_67, %c0_68, %c0_69] : memref<2x4x1x8xf32, #tpu.memory_space<vmem>>, vector<1x1x1x8xf32>
    %71 = vector.shape_cast %70 : vector<1x1x1x8xf32> to vector<1x8xf32>
    %72 = vector.broadcast %71 : vector<1x8xf32> to vector<16x8xf32>
    %73 = arith.addf %69, %72 : vector<16x8xf32>
    %74 = vector.shape_cast %73 : vector<16x8xf32> to vector<2x8x8xf32>
    "tpu.trace_start"() <{level = 10 : i32, message = "bqd,bkd->bqk"}> : () -> ()
    %cst_70 = arith.constant dense<0.000000e+00> : vector<2x8x8xf32>
    %75 = tpu.matmul %58, %66, %cst_70 {dimension_numbers = #tpu.dot_dimension_numbers<[2], [2], [1], [1], [0, 0, 0, 1, 1, 1], [0], [0]>} : vector<2x8x8xf32>, vector<2x8x8xf32>, vector<2x8x8xf32> -> vector<2x8x8xf32>
    "tpu.trace_stop"() : () -> ()
    %cst_71 = arith.constant 0.353553385 : f32
    %76 = vector.broadcast %cst_71 : f32 to vector<2x8x8xf32>
    %77 = arith.mulf %75, %76 : vector<2x8x8xf32>
    %cst_72 = arith.constant dense<0xFF800000> : vector<2x8xf32>
    %78 = vector.multi_reduction <maximumf>, %77, %cst_72 [2] : vector<2x8x8xf32> to vector<2x8xf32>
    %79 = vector.shape_cast %78 : vector<2x8xf32> to vector<2x8x1xf32>
    %80 = vector.broadcast %79 : vector<2x8x1xf32> to vector<2x8x8xf32>
    %81 = arith.subf %77, %80 : vector<2x8x8xf32>
    %82 = math.exp %81 : vector<2x8x8xf32>
    %cst_73 = arith.constant dense<0.000000e+00> : vector<2x8xf32>
    %83 = vector.multi_reduction <add>, %82, %cst_73 [2] : vector<2x8x8xf32> to vector<2x8xf32>
    %84 = vector.shape_cast %83 : vector<2x8xf32> to vector<2x8x1xf32>
    %85 = tpu.reciprocal %84 {approx = true} : vector<2x8x1xf32> -> vector<2x8x1xf32>
    %86 = vector.broadcast %85 : vector<2x8x1xf32> to vector<2x8x8xf32>
    %87 = arith.mulf %82, %86 : vector<2x8x8xf32>
    "tpu.trace_start"() <{level = 10 : i32, message = "bqk,bkd->bqd"}> : () -> ()
    %cst_74 = arith.constant dense<0.000000e+00> : vector<2x8x8xf32>
    %88 = tpu.matmul %87, %74, %cst_74 {dimension_numbers = #tpu.dot_dimension_numbers<[2], [1], [1], [2], [0, 0, 0, 1, 1, 2], [0], [0]>} : vector<2x8x8xf32>, vector<2x8x8xf32>, vector<2x8x8xf32> -> vector<2x8x8xf32>
    "tpu.trace_stop"() : () -> ()
    %89 = vector.shape_cast %88 : vector<2x8x8xf32> to vector<16x8xf32>
    %c0_75 = arith.constant 0 : index
    %c1_76 = arith.constant 1 : index
    %c0_77 = arith.constant 0 : index
    %c0_78 = arith.constant 0 : index
    %90 = vector.load %arg9[%c0_75, %c1_76, %c0_77, %c0_78] : memref<2x4x8x32xf32, #tpu.memory_space<vmem>>, vector<1x1x8x32xf32>
    %91 = vector.shape_cast %90 : vector<1x1x8x32xf32> to vector<8x32xf32>
    %cst_79 = arith.constant dense<0.000000e+00> : vector<16x32xf32>
    %92 = tpu.matmul %89, %91, %cst_79 {dimension_numbers = #tpu.dot_dimension_numbers<[1], [0], [0], [1], [0, 0, 1, 1], [], []>} : vector<16x8xf32>, vector<8x32xf32>, vector<16x32xf32> -> vector<16x32xf32>
    %93 = arith.addf %50, %92 : vector<16x32xf32>
    %c0_80 = arith.constant 0 : index
    %c2 = arith.constant 2 : index
    %c0_81 = arith.constant 0 : index
    %c0_82 = arith.constant 0 : index
    %94 = vector.load %arg3[%c0_80, %c2, %c0_81, %c0_82] : memref<2x4x32x8xf32, #tpu.memory_space<vmem>>, vector<1x1x32x8xf32>
    %95 = vector.shape_cast %94 : vector<1x1x32x8xf32> to vector<32x8xf32>
    %cst_83 = arith.constant dense<0.000000e+00> : vector<16x8xf32>
    %96 = tpu.matmul %6, %95, %cst_83 {dimension_numbers = #tpu.dot_dimension_numbers<[1], [0], [0], [1], [0, 0, 1, 1], [], []>} : vector<16x32xf32>, vector<32x8xf32>, vector<16x8xf32> -> vector<16x8xf32>
    %c0_84 = arith.constant 0 : index
    %c2_85 = arith.constant 2 : index
    %c0_86 = arith.constant 0 : index
    %c0_87 = arith.constant 0 : index
    %97 = vector.load %arg4[%c0_84, %c2_85, %c0_86, %c0_87] : memref<2x4x1x8xf32, #tpu.memory_space<vmem>>, vector<1x1x1x8xf32>
    %98 = vector.shape_cast %97 : vector<1x1x1x8xf32> to vector<1x8xf32>
    %99 = vector.broadcast %98 : vector<1x8xf32> to vector<16x8xf32>
    %100 = arith.addf %96, %99 : vector<16x8xf32>
    %101 = vector.shape_cast %100 : vector<16x8xf32> to vector<2x8x8xf32>
    %c0_88 = arith.constant 0 : index
    %c2_89 = arith.constant 2 : index
    %c0_90 = arith.constant 0 : index
    %c0_91 = arith.constant 0 : index
    %102 = vector.load %arg5[%c0_88, %c2_89, %c0_90, %c0_91] : memref<2x4x32x8xf32, #tpu.memory_space<vmem>>, vector<1x1x32x8xf32>
    %103 = vector.shape_cast %102 : vector<1x1x32x8xf32> to vector<32x8xf32>
    %cst_92 = arith.constant dense<0.000000e+00> : vector<16x8xf32>
    %104 = tpu.matmul %6, %103, %cst_92 {dimension_numbers = #tpu.dot_dimension_numbers<[1], [0], [0], [1], [0, 0, 1, 1], [], []>} : vector<16x32xf32>, vector<32x8xf32>, vector<16x8xf32> -> vector<16x8xf32>
    %c0_93 = arith.constant 0 : index
    %c2_94 = arith.constant 2 : index
    %c0_95 = arith.constant 0 : index
    %c0_96 = arith.constant 0 : index
    %105 = vector.load %arg6[%c0_93, %c2_94, %c0_95, %c0_96] : memref<2x4x1x8xf32, #tpu.memory_space<vmem>>, vector<1x1x1x8xf32>
    %106 = vector.shape_cast %105 : vector<1x1x1x8xf32> to vector<1x8xf32>
    %107 = vector.broadcast %106 : vector<1x8xf32> to vector<16x8xf32>
    %108 = arith.addf %104, %107 : vector<16x8xf32>
    %109 = vector.shape_cast %108 : vector<16x8xf32> to vector<2x8x8xf32>
    %c0_97 = arith.constant 0 : index
    %c2_98 = arith.constant 2 : index
    %c0_99 = arith.constant 0 : index
    %c0_100 = arith.constant 0 : index
    %110 = vector.load %arg7[%c0_97, %c2_98, %c0_99, %c0_100] : memref<2x4x32x8xf32, #tpu.memory_space<vmem>>, vector<1x1x32x8xf32>
    %111 = vector.shape_cast %110 : vector<1x1x32x8xf32> to vector<32x8xf32>
    %cst_101 = arith.constant dense<0.000000e+00> : vector<16x8xf32>
    %112 = tpu.matmul %6, %111, %cst_101 {dimension_numbers = #tpu.dot_dimension_numbers<[1], [0], [0], [1], [0, 0, 1, 1], [], []>} : vector<16x32xf32>, vector<32x8xf32>, vector<16x8xf32> -> vector<16x8xf32>
    %c0_102 = arith.constant 0 : index
    %c2_103 = arith.constant 2 : index
    %c0_104 = arith.constant 0 : index
    %c0_105 = arith.constant 0 : index
    %113 = vector.load %arg8[%c0_102, %c2_103, %c0_104, %c0_105] : memref<2x4x1x8xf32, #tpu.memory_space<vmem>>, vector<1x1x1x8xf32>
    %114 = vector.shape_cast %113 : vector<1x1x1x8xf32> to vector<1x8xf32>
    %115 = vector.broadcast %114 : vector<1x8xf32> to vector<16x8xf32>
    %116 = arith.addf %112, %115 : vector<16x8xf32>
    %117 = vector.shape_cast %116 : vector<16x8xf32> to vector<2x8x8xf32>
    "tpu.trace_start"() <{level = 10 : i32, message = "bqd,bkd->bqk"}> : () -> ()
    %cst_106 = arith.constant dense<0.000000e+00> : vector<2x8x8xf32>
    %118 = tpu.matmul %101, %109, %cst_106 {dimension_numbers = #tpu.dot_dimension_numbers<[2], [2], [1], [1], [0, 0, 0, 1, 1, 1], [0], [0]>} : vector<2x8x8xf32>, vector<2x8x8xf32>, vector<2x8x8xf32> -> vector<2x8x8xf32>
    "tpu.trace_stop"() : () -> ()
    %cst_107 = arith.constant 0.353553385 : f32
    %119 = vector.broadcast %cst_107 : f32 to vector<2x8x8xf32>
    %120 = arith.mulf %118, %119 : vector<2x8x8xf32>
    %cst_108 = arith.constant dense<0xFF800000> : vector<2x8xf32>
    %121 = vector.multi_reduction <maximumf>, %120, %cst_108 [2] : vector<2x8x8xf32> to vector<2x8xf32>
    %122 = vector.shape_cast %121 : vector<2x8xf32> to vector<2x8x1xf32>
    %123 = vector.broadcast %122 : vector<2x8x1xf32> to vector<2x8x8xf32>
    %124 = arith.subf %120, %123 : vector<2x8x8xf32>
    %125 = math.exp %124 : vector<2x8x8xf32>
    %cst_109 = arith.constant dense<0.000000e+00> : vector<2x8xf32>
    %126 = vector.multi_reduction <add>, %125, %cst_109 [2] : vector<2x8x8xf32> to vector<2x8xf32>
    %127 = vector.shape_cast %126 : vector<2x8xf32> to vector<2x8x1xf32>
    %128 = tpu.reciprocal %127 {approx = true} : vector<2x8x1xf32> -> vector<2x8x1xf32>
    %129 = vector.broadcast %128 : vector<2x8x1xf32> to vector<2x8x8xf32>
    %130 = arith.mulf %125, %129 : vector<2x8x8xf32>
    "tpu.trace_start"() <{level = 10 : i32, message = "bqk,bkd->bqd"}> : () -> ()
    %cst_110 = arith.constant dense<0.000000e+00> : vector<2x8x8xf32>
    %131 = tpu.matmul %130, %117, %cst_110 {dimension_numbers = #tpu.dot_dimension_numbers<[2], [1], [1], [2], [0, 0, 0, 1, 1, 2], [0], [0]>} : vector<2x8x8xf32>, vector<2x8x8xf32>, vector<2x8x8xf32> -> vector<2x8x8xf32>
    "tpu.trace_stop"() : () -> ()
    %132 = vector.shape_cast %131 : vector<2x8x8xf32> to vector<16x8xf32>
    %c0_111 = arith.constant 0 : index
    %c2_112 = arith.constant 2 : index
    %c0_113 = arith.constant 0 : index
    %c0_114 = arith.constant 0 : index
    %133 = vector.load %arg9[%c0_111, %c2_112, %c0_113, %c0_114] : memref<2x4x8x32xf32, #tpu.memory_space<vmem>>, vector<1x1x8x32xf32>
    %134 = vector.shape_cast %133 : vector<1x1x8x32xf32> to vector<8x32xf32>
    %cst_115 = arith.constant dense<0.000000e+00> : vector<16x32xf32>
    %135 = tpu.matmul %132, %134, %cst_115 {dimension_numbers = #tpu.dot_dimension_numbers<[1], [0], [0], [1], [0, 0, 1, 1], [], []>} : vector<16x8xf32>, vector<8x32xf32>, vector<16x32xf32> -> vector<16x32xf32>
    %136 = arith.addf %93, %135 : vector<16x32xf32>
    %c0_116 = arith.constant 0 : index
    %c3 = arith.constant 3 : index
    %c0_117 = arith.constant 0 : index
    %c0_118 = arith.constant 0 : index
    %137 = vector.load %arg3[%c0_116, %c3, %c0_117, %c0_118] : memref<2x4x32x8xf32, #tpu.memory_space<vmem>>, vector<1x1x32x8xf32>
    %138 = vector.shape_cast %137 : vector<1x1x32x8xf32> to vector<32x8xf32>
    %cst_119 = arith.constant dense<0.000000e+00> : vector<16x8xf32>
    %139 = tpu.matmul %6, %138, %cst_119 {dimension_numbers = #tpu.dot_dimension_numbers<[1], [0], [0], [1], [0, 0, 1, 1], [], []>} : vector<16x32xf32>, vector<32x8xf32>, vector<16x8xf32> -> vector<16x8xf32>
    %c0_120 = arith.constant 0 : index
    %c3_121 = arith.constant 3 : index
    %c0_122 = arith.constant 0 : index
    %c0_123 = arith.constant 0 : index
    %140 = vector.load %arg4[%c0_120, %c3_121, %c0_122, %c0_123] : memref<2x4x1x8xf32, #tpu.memory_space<vmem>>, vector<1x1x1x8xf32>
    %141 = vector.shape_cast %140 : vector<1x1x1x8xf32> to vector<1x8xf32>
    %142 = vector.broadcast %141 : vector<1x8xf32> to vector<16x8xf32>
    %143 = arith.addf %139, %142 : vector<16x8xf32>
    %144 = vector.shape_cast %143 : vector<16x8xf32> to vector<2x8x8xf32>
    %c0_124 = arith.constant 0 : index
    %c3_125 = arith.constant 3 : index
    %c0_126 = arith.constant 0 : index
    %c0_127 = arith.constant 0 : index
    %145 = vector.load %arg5[%c0_124, %c3_125, %c0_126, %c0_127] : memref<2x4x32x8xf32, #tpu.memory_space<vmem>>, vector<1x1x32x8xf32>
    %146 = vector.shape_cast %145 : vector<1x1x32x8xf32> to vector<32x8xf32>
    %cst_128 = arith.constant dense<0.000000e+00> : vector<16x8xf32>
    %147 = tpu.matmul %6, %146, %cst_128 {dimension_numbers = #tpu.dot_dimension_numbers<[1], [0], [0], [1], [0, 0, 1, 1], [], []>} : vector<16x32xf32>, vector<32x8xf32>, vector<16x8xf32> -> vector<16x8xf32>
    %c0_129 = arith.constant 0 : index
    %c3_130 = arith.constant 3 : index
    %c0_131 = arith.constant 0 : index
    %c0_132 = arith.constant 0 : index
    %148 = vector.load %arg6[%c0_129, %c3_130, %c0_131, %c0_132] : memref<2x4x1x8xf32, #tpu.memory_space<vmem>>, vector<1x1x1x8xf32>
    %149 = vector.shape_cast %148 : vector<1x1x1x8xf32> to vector<1x8xf32>
    %150 = vector.broadcast %149 : vector<1x8xf32> to vector<16x8xf32>
    %151 = arith.addf %147, %150 : vector<16x8xf32>
    %152 = vector.shape_cast %151 : vector<16x8xf32> to vector<2x8x8xf32>
    %c0_133 = arith.constant 0 : index
    %c3_134 = arith.constant 3 : index
    %c0_135 = arith.constant 0 : index
    %c0_136 = arith.constant 0 : index
    %153 = vector.load %arg7[%c0_133, %c3_134, %c0_135, %c0_136] : memref<2x4x32x8xf32, #tpu.memory_space<vmem>>, vector<1x1x32x8xf32>
    %154 = vector.shape_cast %153 : vector<1x1x32x8xf32> to vector<32x8xf32>
    %cst_137 = arith.constant dense<0.000000e+00> : vector<16x8xf32>
    %155 = tpu.matmul %6, %154, %cst_137 {dimension_numbers = #tpu.dot_dimension_numbers<[1], [0], [0], [1], [0, 0, 1, 1], [], []>} : vector<16x32xf32>, vector<32x8xf32>, vector<16x8xf32> -> vector<16x8xf32>
    %c0_138 = arith.constant 0 : index
    %c3_139 = arith.constant 3 : index
    %c0_140 = arith.constant 0 : index
    %c0_141 = arith.constant 0 : index
    %156 = vector.load %arg8[%c0_138, %c3_139, %c0_140, %c0_141] : memref<2x4x1x8xf32, #tpu.memory_space<vmem>>, vector<1x1x1x8xf32>
    %157 = vector.shape_cast %156 : vector<1x1x1x8xf32> to vector<1x8xf32>
    %158 = vector.broadcast %157 : vector<1x8xf32> to vector<16x8xf32>
    %159 = arith.addf %155, %158 : vector<16x8xf32>
    %160 = vector.shape_cast %159 : vector<16x8xf32> to vector<2x8x8xf32>
    "tpu.trace_start"() <{level = 10 : i32, message = "bqd,bkd->bqk"}> : () -> ()
    %cst_142 = arith.constant dense<0.000000e+00> : vector<2x8x8xf32>
    %161 = tpu.matmul %144, %152, %cst_142 {dimension_numbers = #tpu.dot_dimension_numbers<[2], [2], [1], [1], [0, 0, 0, 1, 1, 1], [0], [0]>} : vector<2x8x8xf32>, vector<2x8x8xf32>, vector<2x8x8xf32> -> vector<2x8x8xf32>
    "tpu.trace_stop"() : () -> ()
    %cst_143 = arith.constant 0.353553385 : f32
    %162 = vector.broadcast %cst_143 : f32 to vector<2x8x8xf32>
    %163 = arith.mulf %161, %162 : vector<2x8x8xf32>
    %cst_144 = arith.constant dense<0xFF800000> : vector<2x8xf32>
    %164 = vector.multi_reduction <maximumf>, %163, %cst_144 [2] : vector<2x8x8xf32> to vector<2x8xf32>
    %165 = vector.shape_cast %164 : vector<2x8xf32> to vector<2x8x1xf32>
    %166 = vector.broadcast %165 : vector<2x8x1xf32> to vector<2x8x8xf32>
    %167 = arith.subf %163, %166 : vector<2x8x8xf32>
    %168 = math.exp %167 : vector<2x8x8xf32>
    %cst_145 = arith.constant dense<0.000000e+00> : vector<2x8xf32>
    %169 = vector.multi_reduction <add>, %168, %cst_145 [2] : vector<2x8x8xf32> to vector<2x8xf32>
    %170 = vector.shape_cast %169 : vector<2x8xf32> to vector<2x8x1xf32>
    %171 = tpu.reciprocal %170 {approx = true} : vector<2x8x1xf32> -> vector<2x8x1xf32>
    %172 = vector.broadcast %171 : vector<2x8x1xf32> to vector<2x8x8xf32>
    %173 = arith.mulf %168, %172 : vector<2x8x8xf32>
    "tpu.trace_start"() <{level = 10 : i32, message = "bqk,bkd->bqd"}> : () -> ()
    %cst_146 = arith.constant dense<0.000000e+00> : vector<2x8x8xf32>
    %174 = tpu.matmul %173, %160, %cst_146 {dimension_numbers = #tpu.dot_dimension_numbers<[2], [1], [1], [2], [0, 0, 0, 1, 1, 2], [0], [0]>} : vector<2x8x8xf32>, vector<2x8x8xf32>, vector<2x8x8xf32> -> vector<2x8x8xf32>
    "tpu.trace_stop"() : () -> ()
    %175 = vector.shape_cast %174 : vector<2x8x8xf32> to vector<16x8xf32>
    %c0_147 = arith.constant 0 : index
    %c3_148 = arith.constant 3 : index
    %c0_149 = arith.constant 0 : index
    %c0_150 = arith.constant 0 : index
    %176 = vector.load %arg9[%c0_147, %c3_148, %c0_149, %c0_150] : memref<2x4x8x32xf32, #tpu.memory_space<vmem>>, vector<1x1x8x32xf32>
    %177 = vector.shape_cast %176 : vector<1x1x8x32xf32> to vector<8x32xf32>
    %cst_151 = arith.constant dense<0.000000e+00> : vector<16x32xf32>
    %178 = tpu.matmul %175, %177, %cst_151 {dimension_numbers = #tpu.dot_dimension_numbers<[1], [0], [0], [1], [0, 0, 1, 1], [], []>} : vector<16x8xf32>, vector<8x32xf32>, vector<16x32xf32> -> vector<16x32xf32>
    %179 = arith.addf %136, %178 : vector<16x32xf32>
    %c0_152 = arith.constant 0 : index
    %c0_153 = arith.constant 0 : index
    %c0_154 = arith.constant 0 : index
    %180 = vector.load %arg10[%c0_152, %c0_153, %c0_154] : memref<2x1x32xf32, #tpu.memory_space<vmem>>, vector<1x1x32xf32>
    %181 = vector.shape_cast %180 : vector<1x1x32xf32> to vector<1x32xf32>
    %182 = vector.broadcast %181 : vector<1x32xf32> to vector<16x32xf32>
    %183 = arith.addf %179, %182 : vector<16x32xf32>
    %184 = arith.addf %6, %183 : vector<16x32xf32>
    %c0_155 = arith.constant 0 : index
    %c0_156 = arith.constant 0 : index
    %c0_157 = arith.constant 0 : index
    %185 = vector.load %arg11[%c0_155, %c0_156, %c0_157] : memref<2x1x32xf32, #tpu.memory_space<vmem>>, vector<1x1x32xf32>
    %186 = vector.shape_cast %185 : vector<1x1x32xf32> to vector<1x32xf32>
    %c0_158 = arith.constant 0 : index
    %c0_159 = arith.constant 0 : index
    %c0_160 = arith.constant 0 : index
    %187 = vector.load %arg12[%c0_158, %c0_159, %c0_160] : memref<2x1x32xf32, #tpu.memory_space<vmem>>, vector<1x1x32xf32>
    %188 = vector.shape_cast %187 : vector<1x1x32xf32> to vector<1x32xf32>
    %cst_161 = arith.constant dense<0.000000e+00> : vector<16xf32>
    %189 = vector.multi_reduction <add>, %184, %cst_161 [1] : vector<16x32xf32> to vector<16xf32>
    %190 = vector.shape_cast %189 : vector<16xf32> to vector<16x1xf32>
    %cst_162 = arith.constant 3.200000e+01 : f32
    %191 = vector.broadcast %cst_162 : f32 to vector<16x1xf32>
    %192 = arith.divf %190, %191 : vector<16x1xf32>
    %193 = vector.broadcast %192 : vector<16x1xf32> to vector<16x32xf32>
    %194 = arith.subf %184, %193 : vector<16x32xf32>
    %195 = arith.mulf %194, %194 : vector<16x32xf32>
    %cst_163 = arith.constant dense<0.000000e+00> : vector<16xf32>
    %196 = vector.multi_reduction <add>, %195, %cst_163 [1] : vector<16x32xf32> to vector<16xf32>
    %197 = vector.shape_cast %196 : vector<16xf32> to vector<16x1xf32>
    %cst_164 = arith.constant 3.200000e+01 : f32
    %198 = vector.broadcast %cst_164 : f32 to vector<16x1xf32>
    %199 = arith.divf %197, %198 : vector<16x1xf32>
    %cst_165 = arith.constant 9.99999974E-6 : f32
    %200 = vector.broadcast %cst_165 : f32 to vector<16x1xf32>
    %201 = arith.addf %199, %200 : vector<16x1xf32>
    %202 = math.rsqrt %201 : vector<16x1xf32>
    %203 = vector.broadcast %202 : vector<16x1xf32> to vector<16x32xf32>
    %204 = arith.mulf %194, %203 : vector<16x32xf32>
    %205 = vector.broadcast %186 : vector<1x32xf32> to vector<16x32xf32>
    %206 = arith.mulf %204, %205 : vector<16x32xf32>
    %207 = vector.broadcast %188 : vector<1x32xf32> to vector<16x32xf32>
    %208 = arith.addf %206, %207 : vector<16x32xf32>
    %c0_166 = arith.constant 0 : index
    %c0_167 = arith.constant 0 : index
    %c0_168 = arith.constant 0 : index
    %209 = vector.load %arg13[%c0_166, %c0_167, %c0_168] : memref<2x32x64xf32, #tpu.memory_space<vmem>>, vector<1x32x64xf32>
    %210 = vector.shape_cast %209 : vector<1x32x64xf32> to vector<32x64xf32>
    %cst_169 = arith.constant dense<0.000000e+00> : vector<16x64xf32>
    %211 = tpu.matmul %208, %210, %cst_169 {dimension_numbers = #tpu.dot_dimension_numbers<[1], [0], [0], [1], [0, 0, 1, 1], [], []>} : vector<16x32xf32>, vector<32x64xf32>, vector<16x64xf32> -> vector<16x64xf32>
    %c0_170 = arith.constant 0 : index
    %c0_171 = arith.constant 0 : index
    %c0_172 = arith.constant 0 : index
    %212 = vector.load %arg14[%c0_170, %c0_171, %c0_172] : memref<2x1x64xf32, #tpu.memory_space<vmem>>, vector<1x1x64xf32>
    %213 = vector.shape_cast %212 : vector<1x1x64xf32> to vector<1x64xf32>
    %214 = vector.broadcast %213 : vector<1x64xf32> to vector<16x64xf32>
    %215 = arith.addf %211, %214 : vector<16x64xf32>
    %cst_173 = arith.constant 0.000000e+00 : f32
    %216 = vector.broadcast %cst_173 : f32 to vector<16x64xf32>
    %217 = arith.maximumf %215, %216 : vector<16x64xf32>
    %c0_174 = arith.constant 0 : index
    %c0_175 = arith.constant 0 : index
    %c0_176 = arith.constant 0 : index
    %218 = vector.load %arg15[%c0_174, %c0_175, %c0_176] : memref<2x64x32xf32, #tpu.memory_space<vmem>>, vector<1x64x32xf32>
    %219 = vector.shape_cast %218 : vector<1x64x32xf32> to vector<64x32xf32>
    %cst_177 = arith.constant dense<0.000000e+00> : vector<16x32xf32>
    %220 = tpu.matmul %217, %219, %cst_177 {dimension_numbers = #tpu.dot_dimension_numbers<[1], [0], [0], [1], [0, 0, 1, 1], [], []>} : vector<16x64xf32>, vector<64x32xf32>, vector<16x32xf32> -> vector<16x32xf32>
    %c0_178 = arith.constant 0 : index
    %c0_179 = arith.constant 0 : index
    %c0_180 = arith.constant 0 : index
    %221 = vector.load %arg16[%c0_178, %c0_179, %c0_180] : memref<2x1x32xf32, #tpu.memory_space<vmem>>, vector<1x1x32xf32>
    %222 = vector.shape_cast %221 : vector<1x1x32xf32> to vector<1x32xf32>
    %223 = vector.broadcast %222 : vector<1x32xf32> to vector<16x32xf32>
    %224 = arith.addf %220, %223 : vector<16x32xf32>
    %225 = arith.addf %208, %224 : vector<16x32xf32>
    %c0_181 = arith.constant 0 : index
    %c0_182 = arith.constant 0 : index
    %c0_183 = arith.constant 0 : index
    %226 = vector.load %arg17[%c0_181, %c0_182, %c0_183] : memref<2x1x32xf32, #tpu.memory_space<vmem>>, vector<1x1x32xf32>
    %227 = vector.shape_cast %226 : vector<1x1x32xf32> to vector<1x32xf32>
    %c0_184 = arith.constant 0 : index
    %c0_185 = arith.constant 0 : index
    %c0_186 = arith.constant 0 : index
    %228 = vector.load %arg18[%c0_184, %c0_185, %c0_186] : memref<2x1x32xf32, #tpu.memory_space<vmem>>, vector<1x1x32xf32>
    %229 = vector.shape_cast %228 : vector<1x1x32xf32> to vector<1x32xf32>
    %cst_187 = arith.constant dense<0.000000e+00> : vector<16xf32>
    %230 = vector.multi_reduction <add>, %225, %cst_187 [1] : vector<16x32xf32> to vector<16xf32>
    %231 = vector.shape_cast %230 : vector<16xf32> to vector<16x1xf32>
    %cst_188 = arith.constant 3.200000e+01 : f32
    %232 = vector.broadcast %cst_188 : f32 to vector<16x1xf32>
    %233 = arith.divf %231, %232 : vector<16x1xf32>
    %234 = vector.broadcast %233 : vector<16x1xf32> to vector<16x32xf32>
    %235 = arith.subf %225, %234 : vector<16x32xf32>
    %236 = arith.mulf %235, %235 : vector<16x32xf32>
    %cst_189 = arith.constant dense<0.000000e+00> : vector<16xf32>
    %237 = vector.multi_reduction <add>, %236, %cst_189 [1] : vector<16x32xf32> to vector<16xf32>
    %238 = vector.shape_cast %237 : vector<16xf32> to vector<16x1xf32>
    %cst_190 = arith.constant 3.200000e+01 : f32
    %239 = vector.broadcast %cst_190 : f32 to vector<16x1xf32>
    %240 = arith.divf %238, %239 : vector<16x1xf32>
    %cst_191 = arith.constant 9.99999974E-6 : f32
    %241 = vector.broadcast %cst_191 : f32 to vector<16x1xf32>
    %242 = arith.addf %240, %241 : vector<16x1xf32>
    %243 = math.rsqrt %242 : vector<16x1xf32>
    %244 = vector.broadcast %243 : vector<16x1xf32> to vector<16x32xf32>
    %245 = arith.mulf %235, %244 : vector<16x32xf32>
    %246 = vector.broadcast %227 : vector<1x32xf32> to vector<16x32xf32>
    %247 = arith.mulf %245, %246 : vector<16x32xf32>
    %248 = vector.broadcast %229 : vector<1x32xf32> to vector<16x32xf32>
    %249 = arith.addf %247, %248 : vector<16x32xf32>
    %cst_192 = arith.constant 0.000000e+00 : f32
    %250 = vector.broadcast %cst_192 : f32 to vector<16x32xf32>
    %c1_193 = arith.constant 1 : index
    %c0_194 = arith.constant 0 : index
    %c0_195 = arith.constant 0 : index
    %c0_196 = arith.constant 0 : index
    %251 = vector.load %arg3[%c1_193, %c0_194, %c0_195, %c0_196] : memref<2x4x32x8xf32, #tpu.memory_space<vmem>>, vector<1x1x32x8xf32>
    %252 = vector.shape_cast %251 : vector<1x1x32x8xf32> to vector<32x8xf32>
    %cst_197 = arith.constant dense<0.000000e+00> : vector<16x8xf32>
    %253 = tpu.matmul %249, %252, %cst_197 {dimension_numbers = #tpu.dot_dimension_numbers<[1], [0], [0], [1], [0, 0, 1, 1], [], []>} : vector<16x32xf32>, vector<32x8xf32>, vector<16x8xf32> -> vector<16x8xf32>
    %c1_198 = arith.constant 1 : index
    %c0_199 = arith.constant 0 : index
    %c0_200 = arith.constant 0 : index
    %c0_201 = arith.constant 0 : index
    %254 = vector.load %arg4[%c1_198, %c0_199, %c0_200, %c0_201] : memref<2x4x1x8xf32, #tpu.memory_space<vmem>>, vector<1x1x1x8xf32>
    %255 = vector.shape_cast %254 : vector<1x1x1x8xf32> to vector<1x8xf32>
    %256 = vector.broadcast %255 : vector<1x8xf32> to vector<16x8xf32>
    %257 = arith.addf %253, %256 : vector<16x8xf32>
    %258 = vector.shape_cast %257 : vector<16x8xf32> to vector<2x8x8xf32>
    %c1_202 = arith.constant 1 : index
    %c0_203 = arith.constant 0 : index
    %c0_204 = arith.constant 0 : index
    %c0_205 = arith.constant 0 : index
    %259 = vector.load %arg5[%c1_202, %c0_203, %c0_204, %c0_205] : memref<2x4x32x8xf32, #tpu.memory_space<vmem>>, vector<1x1x32x8xf32>
    %260 = vector.shape_cast %259 : vector<1x1x32x8xf32> to vector<32x8xf32>
    %cst_206 = arith.constant dense<0.000000e+00> : vector<16x8xf32>
    %261 = tpu.matmul %249, %260, %cst_206 {dimension_numbers = #tpu.dot_dimension_numbers<[1], [0], [0], [1], [0, 0, 1, 1], [], []>} : vector<16x32xf32>, vector<32x8xf32>, vector<16x8xf32> -> vector<16x8xf32>
    %c1_207 = arith.constant 1 : index
    %c0_208 = arith.constant 0 : index
    %c0_209 = arith.constant 0 : index
    %c0_210 = arith.constant 0 : index
    %262 = vector.load %arg6[%c1_207, %c0_208, %c0_209, %c0_210] : memref<2x4x1x8xf32, #tpu.memory_space<vmem>>, vector<1x1x1x8xf32>
    %263 = vector.shape_cast %262 : vector<1x1x1x8xf32> to vector<1x8xf32>
    %264 = vector.broadcast %263 : vector<1x8xf32> to vector<16x8xf32>
    %265 = arith.addf %261, %264 : vector<16x8xf32>
    %266 = vector.shape_cast %265 : vector<16x8xf32> to vector<2x8x8xf32>
    %c1_211 = arith.constant 1 : index
    %c0_212 = arith.constant 0 : index
    %c0_213 = arith.constant 0 : index
    %c0_214 = arith.constant 0 : index
    %267 = vector.load %arg7[%c1_211, %c0_212, %c0_213, %c0_214] : memref<2x4x32x8xf32, #tpu.memory_space<vmem>>, vector<1x1x32x8xf32>
    %268 = vector.shape_cast %267 : vector<1x1x32x8xf32> to vector<32x8xf32>
    %cst_215 = arith.constant dense<0.000000e+00> : vector<16x8xf32>
    %269 = tpu.matmul %249, %268, %cst_215 {dimension_numbers = #tpu.dot_dimension_numbers<[1], [0], [0], [1], [0, 0, 1, 1], [], []>} : vector<16x32xf32>, vector<32x8xf32>, vector<16x8xf32> -> vector<16x8xf32>
    %c1_216 = arith.constant 1 : index
    %c0_217 = arith.constant 0 : index
    %c0_218 = arith.constant 0 : index
    %c0_219 = arith.constant 0 : index
    %270 = vector.load %arg8[%c1_216, %c0_217, %c0_218, %c0_219] : memref<2x4x1x8xf32, #tpu.memory_space<vmem>>, vector<1x1x1x8xf32>
    %271 = vector.shape_cast %270 : vector<1x1x1x8xf32> to vector<1x8xf32>
    %272 = vector.broadcast %271 : vector<1x8xf32> to vector<16x8xf32>
    %273 = arith.addf %269, %272 : vector<16x8xf32>
    %274 = vector.shape_cast %273 : vector<16x8xf32> to vector<2x8x8xf32>
    "tpu.trace_start"() <{level = 10 : i32, message = "bqd,bkd->bqk"}> : () -> ()
    %cst_220 = arith.constant dense<0.000000e+00> : vector<2x8x8xf32>
    %275 = tpu.matmul %258, %266, %cst_220 {dimension_numbers = #tpu.dot_dimension_numbers<[2], [2], [1], [1], [0, 0, 0, 1, 1, 1], [0], [0]>} : vector<2x8x8xf32>, vector<2x8x8xf32>, vector<2x8x8xf32> -> vector<2x8x8xf32>
    "tpu.trace_stop"() : () -> ()
    %cst_221 = arith.constant 0.353553385 : f32
    %276 = vector.broadcast %cst_221 : f32 to vector<2x8x8xf32>
    %277 = arith.mulf %275, %276 : vector<2x8x8xf32>
    %cst_222 = arith.constant dense<0xFF800000> : vector<2x8xf32>
    %278 = vector.multi_reduction <maximumf>, %277, %cst_222 [2] : vector<2x8x8xf32> to vector<2x8xf32>
    %279 = vector.shape_cast %278 : vector<2x8xf32> to vector<2x8x1xf32>
    %280 = vector.broadcast %279 : vector<2x8x1xf32> to vector<2x8x8xf32>
    %281 = arith.subf %277, %280 : vector<2x8x8xf32>
    %282 = math.exp %281 : vector<2x8x8xf32>
    %cst_223 = arith.constant dense<0.000000e+00> : vector<2x8xf32>
    %283 = vector.multi_reduction <add>, %282, %cst_223 [2] : vector<2x8x8xf32> to vector<2x8xf32>
    %284 = vector.shape_cast %283 : vector<2x8xf32> to vector<2x8x1xf32>
    %285 = tpu.reciprocal %284 {approx = true} : vector<2x8x1xf32> -> vector<2x8x1xf32>
    %286 = vector.broadcast %285 : vector<2x8x1xf32> to vector<2x8x8xf32>
    %287 = arith.mulf %282, %286 : vector<2x8x8xf32>
    "tpu.trace_start"() <{level = 10 : i32, message = "bqk,bkd->bqd"}> : () -> ()
    %cst_224 = arith.constant dense<0.000000e+00> : vector<2x8x8xf32>
    %288 = tpu.matmul %287, %274, %cst_224 {dimension_numbers = #tpu.dot_dimension_numbers<[2], [1], [1], [2], [0, 0, 0, 1, 1, 2], [0], [0]>} : vector<2x8x8xf32>, vector<2x8x8xf32>, vector<2x8x8xf32> -> vector<2x8x8xf32>
    "tpu.trace_stop"() : () -> ()
    %289 = vector.shape_cast %288 : vector<2x8x8xf32> to vector<16x8xf32>
    %c1_225 = arith.constant 1 : index
    %c0_226 = arith.constant 0 : index
    %c0_227 = arith.constant 0 : index
    %c0_228 = arith.constant 0 : index
    %290 = vector.load %arg9[%c1_225, %c0_226, %c0_227, %c0_228] : memref<2x4x8x32xf32, #tpu.memory_space<vmem>>, vector<1x1x8x32xf32>
    %291 = vector.shape_cast %290 : vector<1x1x8x32xf32> to vector<8x32xf32>
    %cst_229 = arith.constant dense<0.000000e+00> : vector<16x32xf32>
    %292 = tpu.matmul %289, %291, %cst_229 {dimension_numbers = #tpu.dot_dimension_numbers<[1], [0], [0], [1], [0, 0, 1, 1], [], []>} : vector<16x8xf32>, vector<8x32xf32>, vector<16x32xf32> -> vector<16x32xf32>
    %293 = arith.addf %250, %292 : vector<16x32xf32>
    %c1_230 = arith.constant 1 : index
    %c1_231 = arith.constant 1 : index
    %c0_232 = arith.constant 0 : index
    %c0_233 = arith.constant 0 : index
    %294 = vector.load %arg3[%c1_230, %c1_231, %c0_232, %c0_233] : memref<2x4x32x8xf32, #tpu.memory_space<vmem>>, vector<1x1x32x8xf32>
    %295 = vector.shape_cast %294 : vector<1x1x32x8xf32> to vector<32x8xf32>
    %cst_234 = arith.constant dense<0.000000e+00> : vector<16x8xf32>
    %296 = tpu.matmul %249, %295, %cst_234 {dimension_numbers = #tpu.dot_dimension_numbers<[1], [0], [0], [1], [0, 0, 1, 1], [], []>} : vector<16x32xf32>, vector<32x8xf32>, vector<16x8xf32> -> vector<16x8xf32>
    %c1_235 = arith.constant 1 : index
    %c1_236 = arith.constant 1 : index
    %c0_237 = arith.constant 0 : index
    %c0_238 = arith.constant 0 : index
    %297 = vector.load %arg4[%c1_235, %c1_236, %c0_237, %c0_238] : memref<2x4x1x8xf32, #tpu.memory_space<vmem>>, vector<1x1x1x8xf32>
    %298 = vector.shape_cast %297 : vector<1x1x1x8xf32> to vector<1x8xf32>
    %299 = vector.broadcast %298 : vector<1x8xf32> to vector<16x8xf32>
    %300 = arith.addf %296, %299 : vector<16x8xf32>
    %301 = vector.shape_cast %300 : vector<16x8xf32> to vector<2x8x8xf32>
    %c1_239 = arith.constant 1 : index
    %c1_240 = arith.constant 1 : index
    %c0_241 = arith.constant 0 : index
    %c0_242 = arith.constant 0 : index
    %302 = vector.load %arg5[%c1_239, %c1_240, %c0_241, %c0_242] : memref<2x4x32x8xf32, #tpu.memory_space<vmem>>, vector<1x1x32x8xf32>
    %303 = vector.shape_cast %302 : vector<1x1x32x8xf32> to vector<32x8xf32>
    %cst_243 = arith.constant dense<0.000000e+00> : vector<16x8xf32>
    %304 = tpu.matmul %249, %303, %cst_243 {dimension_numbers = #tpu.dot_dimension_numbers<[1], [0], [0], [1], [0, 0, 1, 1], [], []>} : vector<16x32xf32>, vector<32x8xf32>, vector<16x8xf32> -> vector<16x8xf32>
    %c1_244 = arith.constant 1 : index
    %c1_245 = arith.constant 1 : index
    %c0_246 = arith.constant 0 : index
    %c0_247 = arith.constant 0 : index
    %305 = vector.load %arg6[%c1_244, %c1_245, %c0_246, %c0_247] : memref<2x4x1x8xf32, #tpu.memory_space<vmem>>, vector<1x1x1x8xf32>
    %306 = vector.shape_cast %305 : vector<1x1x1x8xf32> to vector<1x8xf32>
    %307 = vector.broadcast %306 : vector<1x8xf32> to vector<16x8xf32>
    %308 = arith.addf %304, %307 : vector<16x8xf32>
    %309 = vector.shape_cast %308 : vector<16x8xf32> to vector<2x8x8xf32>
    %c1_248 = arith.constant 1 : index
    %c1_249 = arith.constant 1 : index
    %c0_250 = arith.constant 0 : index
    %c0_251 = arith.constant 0 : index
    %310 = vector.load %arg7[%c1_248, %c1_249, %c0_250, %c0_251] : memref<2x4x32x8xf32, #tpu.memory_space<vmem>>, vector<1x1x32x8xf32>
    %311 = vector.shape_cast %310 : vector<1x1x32x8xf32> to vector<32x8xf32>
    %cst_252 = arith.constant dense<0.000000e+00> : vector<16x8xf32>
    %312 = tpu.matmul %249, %311, %cst_252 {dimension_numbers = #tpu.dot_dimension_numbers<[1], [0], [0], [1], [0, 0, 1, 1], [], []>} : vector<16x32xf32>, vector<32x8xf32>, vector<16x8xf32> -> vector<16x8xf32>
    %c1_253 = arith.constant 1 : index
    %c1_254 = arith.constant 1 : index
    %c0_255 = arith.constant 0 : index
    %c0_256 = arith.constant 0 : index
    %313 = vector.load %arg8[%c1_253, %c1_254, %c0_255, %c0_256] : memref<2x4x1x8xf32, #tpu.memory_space<vmem>>, vector<1x1x1x8xf32>
    %314 = vector.shape_cast %313 : vector<1x1x1x8xf32> to vector<1x8xf32>
    %315 = vector.broadcast %314 : vector<1x8xf32> to vector<16x8xf32>
    %316 = arith.addf %312, %315 : vector<16x8xf32>
    %317 = vector.shape_cast %316 : vector<16x8xf32> to vector<2x8x8xf32>
    "tpu.trace_start"() <{level = 10 : i32, message = "bqd,bkd->bqk"}> : () -> ()
    %cst_257 = arith.constant dense<0.000000e+00> : vector<2x8x8xf32>
    %318 = tpu.matmul %301, %309, %cst_257 {dimension_numbers = #tpu.dot_dimension_numbers<[2], [2], [1], [1], [0, 0, 0, 1, 1, 1], [0], [0]>} : vector<2x8x8xf32>, vector<2x8x8xf32>, vector<2x8x8xf32> -> vector<2x8x8xf32>
    "tpu.trace_stop"() : () -> ()
    %cst_258 = arith.constant 0.353553385 : f32
    %319 = vector.broadcast %cst_258 : f32 to vector<2x8x8xf32>
    %320 = arith.mulf %318, %319 : vector<2x8x8xf32>
    %cst_259 = arith.constant dense<0xFF800000> : vector<2x8xf32>
    %321 = vector.multi_reduction <maximumf>, %320, %cst_259 [2] : vector<2x8x8xf32> to vector<2x8xf32>
    %322 = vector.shape_cast %321 : vector<2x8xf32> to vector<2x8x1xf32>
    %323 = vector.broadcast %322 : vector<2x8x1xf32> to vector<2x8x8xf32>
    %324 = arith.subf %320, %323 : vector<2x8x8xf32>
    %325 = math.exp %324 : vector<2x8x8xf32>
    %cst_260 = arith.constant dense<0.000000e+00> : vector<2x8xf32>
    %326 = vector.multi_reduction <add>, %325, %cst_260 [2] : vector<2x8x8xf32> to vector<2x8xf32>
    %327 = vector.shape_cast %326 : vector<2x8xf32> to vector<2x8x1xf32>
    %328 = tpu.reciprocal %327 {approx = true} : vector<2x8x1xf32> -> vector<2x8x1xf32>
    %329 = vector.broadcast %328 : vector<2x8x1xf32> to vector<2x8x8xf32>
    %330 = arith.mulf %325, %329 : vector<2x8x8xf32>
    "tpu.trace_start"() <{level = 10 : i32, message = "bqk,bkd->bqd"}> : () -> ()
    %cst_261 = arith.constant dense<0.000000e+00> : vector<2x8x8xf32>
    %331 = tpu.matmul %330, %317, %cst_261 {dimension_numbers = #tpu.dot_dimension_numbers<[2], [1], [1], [2], [0, 0, 0, 1, 1, 2], [0], [0]>} : vector<2x8x8xf32>, vector<2x8x8xf32>, vector<2x8x8xf32> -> vector<2x8x8xf32>
    "tpu.trace_stop"() : () -> ()
    %332 = vector.shape_cast %331 : vector<2x8x8xf32> to vector<16x8xf32>
    %c1_262 = arith.constant 1 : index
    %c1_263 = arith.constant 1 : index
    %c0_264 = arith.constant 0 : index
    %c0_265 = arith.constant 0 : index
    %333 = vector.load %arg9[%c1_262, %c1_263, %c0_264, %c0_265] : memref<2x4x8x32xf32, #tpu.memory_space<vmem>>, vector<1x1x8x32xf32>
    %334 = vector.shape_cast %333 : vector<1x1x8x32xf32> to vector<8x32xf32>
    %cst_266 = arith.constant dense<0.000000e+00> : vector<16x32xf32>
    %335 = tpu.matmul %332, %334, %cst_266 {dimension_numbers = #tpu.dot_dimension_numbers<[1], [0], [0], [1], [0, 0, 1, 1], [], []>} : vector<16x8xf32>, vector<8x32xf32>, vector<16x32xf32> -> vector<16x32xf32>
    %336 = arith.addf %293, %335 : vector<16x32xf32>
    %c1_267 = arith.constant 1 : index
    %c2_268 = arith.constant 2 : index
    %c0_269 = arith.constant 0 : index
    %c0_270 = arith.constant 0 : index
    %337 = vector.load %arg3[%c1_267, %c2_268, %c0_269, %c0_270] : memref<2x4x32x8xf32, #tpu.memory_space<vmem>>, vector<1x1x32x8xf32>
    %338 = vector.shape_cast %337 : vector<1x1x32x8xf32> to vector<32x8xf32>
    %cst_271 = arith.constant dense<0.000000e+00> : vector<16x8xf32>
    %339 = tpu.matmul %249, %338, %cst_271 {dimension_numbers = #tpu.dot_dimension_numbers<[1], [0], [0], [1], [0, 0, 1, 1], [], []>} : vector<16x32xf32>, vector<32x8xf32>, vector<16x8xf32> -> vector<16x8xf32>
    %c1_272 = arith.constant 1 : index
    %c2_273 = arith.constant 2 : index
    %c0_274 = arith.constant 0 : index
    %c0_275 = arith.constant 0 : index
    %340 = vector.load %arg4[%c1_272, %c2_273, %c0_274, %c0_275] : memref<2x4x1x8xf32, #tpu.memory_space<vmem>>, vector<1x1x1x8xf32>
    %341 = vector.shape_cast %340 : vector<1x1x1x8xf32> to vector<1x8xf32>
    %342 = vector.broadcast %341 : vector<1x8xf32> to vector<16x8xf32>
    %343 = arith.addf %339, %342 : vector<16x8xf32>
    %344 = vector.shape_cast %343 : vector<16x8xf32> to vector<2x8x8xf32>
    %c1_276 = arith.constant 1 : index
    %c2_277 = arith.constant 2 : index
    %c0_278 = arith.constant 0 : index
    %c0_279 = arith.constant 0 : index
    %345 = vector.load %arg5[%c1_276, %c2_277, %c0_278, %c0_279] : memref<2x4x32x8xf32, #tpu.memory_space<vmem>>, vector<1x1x32x8xf32>
    %346 = vector.shape_cast %345 : vector<1x1x32x8xf32> to vector<32x8xf32>
    %cst_280 = arith.constant dense<0.000000e+00> : vector<16x8xf32>
    %347 = tpu.matmul %249, %346, %cst_280 {dimension_numbers = #tpu.dot_dimension_numbers<[1], [0], [0], [1], [0, 0, 1, 1], [], []>} : vector<16x32xf32>, vector<32x8xf32>, vector<16x8xf32> -> vector<16x8xf32>
    %c1_281 = arith.constant 1 : index
    %c2_282 = arith.constant 2 : index
    %c0_283 = arith.constant 0 : index
    %c0_284 = arith.constant 0 : index
    %348 = vector.load %arg6[%c1_281, %c2_282, %c0_283, %c0_284] : memref<2x4x1x8xf32, #tpu.memory_space<vmem>>, vector<1x1x1x8xf32>
    %349 = vector.shape_cast %348 : vector<1x1x1x8xf32> to vector<1x8xf32>
    %350 = vector.broadcast %349 : vector<1x8xf32> to vector<16x8xf32>
    %351 = arith.addf %347, %350 : vector<16x8xf32>
    %352 = vector.shape_cast %351 : vector<16x8xf32> to vector<2x8x8xf32>
    %c1_285 = arith.constant 1 : index
    %c2_286 = arith.constant 2 : index
    %c0_287 = arith.constant 0 : index
    %c0_288 = arith.constant 0 : index
    %353 = vector.load %arg7[%c1_285, %c2_286, %c0_287, %c0_288] : memref<2x4x32x8xf32, #tpu.memory_space<vmem>>, vector<1x1x32x8xf32>
    %354 = vector.shape_cast %353 : vector<1x1x32x8xf32> to vector<32x8xf32>
    %cst_289 = arith.constant dense<0.000000e+00> : vector<16x8xf32>
    %355 = tpu.matmul %249, %354, %cst_289 {dimension_numbers = #tpu.dot_dimension_numbers<[1], [0], [0], [1], [0, 0, 1, 1], [], []>} : vector<16x32xf32>, vector<32x8xf32>, vector<16x8xf32> -> vector<16x8xf32>
    %c1_290 = arith.constant 1 : index
    %c2_291 = arith.constant 2 : index
    %c0_292 = arith.constant 0 : index
    %c0_293 = arith.constant 0 : index
    %356 = vector.load %arg8[%c1_290, %c2_291, %c0_292, %c0_293] : memref<2x4x1x8xf32, #tpu.memory_space<vmem>>, vector<1x1x1x8xf32>
    %357 = vector.shape_cast %356 : vector<1x1x1x8xf32> to vector<1x8xf32>
    %358 = vector.broadcast %357 : vector<1x8xf32> to vector<16x8xf32>
    %359 = arith.addf %355, %358 : vector<16x8xf32>
    %360 = vector.shape_cast %359 : vector<16x8xf32> to vector<2x8x8xf32>
    "tpu.trace_start"() <{level = 10 : i32, message = "bqd,bkd->bqk"}> : () -> ()
    %cst_294 = arith.constant dense<0.000000e+00> : vector<2x8x8xf32>
    %361 = tpu.matmul %344, %352, %cst_294 {dimension_numbers = #tpu.dot_dimension_numbers<[2], [2], [1], [1], [0, 0, 0, 1, 1, 1], [0], [0]>} : vector<2x8x8xf32>, vector<2x8x8xf32>, vector<2x8x8xf32> -> vector<2x8x8xf32>
    "tpu.trace_stop"() : () -> ()
    %cst_295 = arith.constant 0.353553385 : f32
    %362 = vector.broadcast %cst_295 : f32 to vector<2x8x8xf32>
    %363 = arith.mulf %361, %362 : vector<2x8x8xf32>
    %cst_296 = arith.constant dense<0xFF800000> : vector<2x8xf32>
    %364 = vector.multi_reduction <maximumf>, %363, %cst_296 [2] : vector<2x8x8xf32> to vector<2x8xf32>
    %365 = vector.shape_cast %364 : vector<2x8xf32> to vector<2x8x1xf32>
    %366 = vector.broadcast %365 : vector<2x8x1xf32> to vector<2x8x8xf32>
    %367 = arith.subf %363, %366 : vector<2x8x8xf32>
    %368 = math.exp %367 : vector<2x8x8xf32>
    %cst_297 = arith.constant dense<0.000000e+00> : vector<2x8xf32>
    %369 = vector.multi_reduction <add>, %368, %cst_297 [2] : vector<2x8x8xf32> to vector<2x8xf32>
    %370 = vector.shape_cast %369 : vector<2x8xf32> to vector<2x8x1xf32>
    %371 = tpu.reciprocal %370 {approx = true} : vector<2x8x1xf32> -> vector<2x8x1xf32>
    %372 = vector.broadcast %371 : vector<2x8x1xf32> to vector<2x8x8xf32>
    %373 = arith.mulf %368, %372 : vector<2x8x8xf32>
    "tpu.trace_start"() <{level = 10 : i32, message = "bqk,bkd->bqd"}> : () -> ()
    %cst_298 = arith.constant dense<0.000000e+00> : vector<2x8x8xf32>
    %374 = tpu.matmul %373, %360, %cst_298 {dimension_numbers = #tpu.dot_dimension_numbers<[2], [1], [1], [2], [0, 0, 0, 1, 1, 2], [0], [0]>} : vector<2x8x8xf32>, vector<2x8x8xf32>, vector<2x8x8xf32> -> vector<2x8x8xf32>
    "tpu.trace_stop"() : () -> ()
    %375 = vector.shape_cast %374 : vector<2x8x8xf32> to vector<16x8xf32>
    %c1_299 = arith.constant 1 : index
    %c2_300 = arith.constant 2 : index
    %c0_301 = arith.constant 0 : index
    %c0_302 = arith.constant 0 : index
    %376 = vector.load %arg9[%c1_299, %c2_300, %c0_301, %c0_302] : memref<2x4x8x32xf32, #tpu.memory_space<vmem>>, vector<1x1x8x32xf32>
    %377 = vector.shape_cast %376 : vector<1x1x8x32xf32> to vector<8x32xf32>
    %cst_303 = arith.constant dense<0.000000e+00> : vector<16x32xf32>
    %378 = tpu.matmul %375, %377, %cst_303 {dimension_numbers = #tpu.dot_dimension_numbers<[1], [0], [0], [1], [0, 0, 1, 1], [], []>} : vector<16x8xf32>, vector<8x32xf32>, vector<16x32xf32> -> vector<16x32xf32>
    %379 = arith.addf %336, %378 : vector<16x32xf32>
    %c1_304 = arith.constant 1 : index
    %c3_305 = arith.constant 3 : index
    %c0_306 = arith.constant 0 : index
    %c0_307 = arith.constant 0 : index
    %380 = vector.load %arg3[%c1_304, %c3_305, %c0_306, %c0_307] : memref<2x4x32x8xf32, #tpu.memory_space<vmem>>, vector<1x1x32x8xf32>
    %381 = vector.shape_cast %380 : vector<1x1x32x8xf32> to vector<32x8xf32>
    %cst_308 = arith.constant dense<0.000000e+00> : vector<16x8xf32>
    %382 = tpu.matmul %249, %381, %cst_308 {dimension_numbers = #tpu.dot_dimension_numbers<[1], [0], [0], [1], [0, 0, 1, 1], [], []>} : vector<16x32xf32>, vector<32x8xf32>, vector<16x8xf32> -> vector<16x8xf32>
    %c1_309 = arith.constant 1 : index
    %c3_310 = arith.constant 3 : index
    %c0_311 = arith.constant 0 : index
    %c0_312 = arith.constant 0 : index
    %383 = vector.load %arg4[%c1_309, %c3_310, %c0_311, %c0_312] : memref<2x4x1x8xf32, #tpu.memory_space<vmem>>, vector<1x1x1x8xf32>
    %384 = vector.shape_cast %383 : vector<1x1x1x8xf32> to vector<1x8xf32>
    %385 = vector.broadcast %384 : vector<1x8xf32> to vector<16x8xf32>
    %386 = arith.addf %382, %385 : vector<16x8xf32>
    %387 = vector.shape_cast %386 : vector<16x8xf32> to vector<2x8x8xf32>
    %c1_313 = arith.constant 1 : index
    %c3_314 = arith.constant 3 : index
    %c0_315 = arith.constant 0 : index
    %c0_316 = arith.constant 0 : index
    %388 = vector.load %arg5[%c1_313, %c3_314, %c0_315, %c0_316] : memref<2x4x32x8xf32, #tpu.memory_space<vmem>>, vector<1x1x32x8xf32>
    %389 = vector.shape_cast %388 : vector<1x1x32x8xf32> to vector<32x8xf32>
    %cst_317 = arith.constant dense<0.000000e+00> : vector<16x8xf32>
    %390 = tpu.matmul %249, %389, %cst_317 {dimension_numbers = #tpu.dot_dimension_numbers<[1], [0], [0], [1], [0, 0, 1, 1], [], []>} : vector<16x32xf32>, vector<32x8xf32>, vector<16x8xf32> -> vector<16x8xf32>
    %c1_318 = arith.constant 1 : index
    %c3_319 = arith.constant 3 : index
    %c0_320 = arith.constant 0 : index
    %c0_321 = arith.constant 0 : index
    %391 = vector.load %arg6[%c1_318, %c3_319, %c0_320, %c0_321] : memref<2x4x1x8xf32, #tpu.memory_space<vmem>>, vector<1x1x1x8xf32>
    %392 = vector.shape_cast %391 : vector<1x1x1x8xf32> to vector<1x8xf32>
    %393 = vector.broadcast %392 : vector<1x8xf32> to vector<16x8xf32>
    %394 = arith.addf %390, %393 : vector<16x8xf32>
    %395 = vector.shape_cast %394 : vector<16x8xf32> to vector<2x8x8xf32>
    %c1_322 = arith.constant 1 : index
    %c3_323 = arith.constant 3 : index
    %c0_324 = arith.constant 0 : index
    %c0_325 = arith.constant 0 : index
    %396 = vector.load %arg7[%c1_322, %c3_323, %c0_324, %c0_325] : memref<2x4x32x8xf32, #tpu.memory_space<vmem>>, vector<1x1x32x8xf32>
    %397 = vector.shape_cast %396 : vector<1x1x32x8xf32> to vector<32x8xf32>
    %cst_326 = arith.constant dense<0.000000e+00> : vector<16x8xf32>
    %398 = tpu.matmul %249, %397, %cst_326 {dimension_numbers = #tpu.dot_dimension_numbers<[1], [0], [0], [1], [0, 0, 1, 1], [], []>} : vector<16x32xf32>, vector<32x8xf32>, vector<16x8xf32> -> vector<16x8xf32>
    %c1_327 = arith.constant 1 : index
    %c3_328 = arith.constant 3 : index
    %c0_329 = arith.constant 0 : index
    %c0_330 = arith.constant 0 : index
    %399 = vector.load %arg8[%c1_327, %c3_328, %c0_329, %c0_330] : memref<2x4x1x8xf32, #tpu.memory_space<vmem>>, vector<1x1x1x8xf32>
    %400 = vector.shape_cast %399 : vector<1x1x1x8xf32> to vector<1x8xf32>
    %401 = vector.broadcast %400 : vector<1x8xf32> to vector<16x8xf32>
    %402 = arith.addf %398, %401 : vector<16x8xf32>
    %403 = vector.shape_cast %402 : vector<16x8xf32> to vector<2x8x8xf32>
    "tpu.trace_start"() <{level = 10 : i32, message = "bqd,bkd->bqk"}> : () -> ()
    %cst_331 = arith.constant dense<0.000000e+00> : vector<2x8x8xf32>
    %404 = tpu.matmul %387, %395, %cst_331 {dimension_numbers = #tpu.dot_dimension_numbers<[2], [2], [1], [1], [0, 0, 0, 1, 1, 1], [0], [0]>} : vector<2x8x8xf32>, vector<2x8x8xf32>, vector<2x8x8xf32> -> vector<2x8x8xf32>
    "tpu.trace_stop"() : () -> ()
    %cst_332 = arith.constant 0.353553385 : f32
    %405 = vector.broadcast %cst_332 : f32 to vector<2x8x8xf32>
    %406 = arith.mulf %404, %405 : vector<2x8x8xf32>
    %cst_333 = arith.constant dense<0xFF800000> : vector<2x8xf32>
    %407 = vector.multi_reduction <maximumf>, %406, %cst_333 [2] : vector<2x8x8xf32> to vector<2x8xf32>
    %408 = vector.shape_cast %407 : vector<2x8xf32> to vector<2x8x1xf32>
    %409 = vector.broadcast %408 : vector<2x8x1xf32> to vector<2x8x8xf32>
    %410 = arith.subf %406, %409 : vector<2x8x8xf32>
    %411 = math.exp %410 : vector<2x8x8xf32>
    %cst_334 = arith.constant dense<0.000000e+00> : vector<2x8xf32>
    %412 = vector.multi_reduction <add>, %411, %cst_334 [2] : vector<2x8x8xf32> to vector<2x8xf32>
    %413 = vector.shape_cast %412 : vector<2x8xf32> to vector<2x8x1xf32>
    %414 = tpu.reciprocal %413 {approx = true} : vector<2x8x1xf32> -> vector<2x8x1xf32>
    %415 = vector.broadcast %414 : vector<2x8x1xf32> to vector<2x8x8xf32>
    %416 = arith.mulf %411, %415 : vector<2x8x8xf32>
    "tpu.trace_start"() <{level = 10 : i32, message = "bqk,bkd->bqd"}> : () -> ()
    %cst_335 = arith.constant dense<0.000000e+00> : vector<2x8x8xf32>
    %417 = tpu.matmul %416, %403, %cst_335 {dimension_numbers = #tpu.dot_dimension_numbers<[2], [1], [1], [2], [0, 0, 0, 1, 1, 2], [0], [0]>} : vector<2x8x8xf32>, vector<2x8x8xf32>, vector<2x8x8xf32> -> vector<2x8x8xf32>
    "tpu.trace_stop"() : () -> ()
    %418 = vector.shape_cast %417 : vector<2x8x8xf32> to vector<16x8xf32>
    %c1_336 = arith.constant 1 : index
    %c3_337 = arith.constant 3 : index
    %c0_338 = arith.constant 0 : index
    %c0_339 = arith.constant 0 : index
    %419 = vector.load %arg9[%c1_336, %c3_337, %c0_338, %c0_339] : memref<2x4x8x32xf32, #tpu.memory_space<vmem>>, vector<1x1x8x32xf32>
    %420 = vector.shape_cast %419 : vector<1x1x8x32xf32> to vector<8x32xf32>
    %cst_340 = arith.constant dense<0.000000e+00> : vector<16x32xf32>
    %421 = tpu.matmul %418, %420, %cst_340 {dimension_numbers = #tpu.dot_dimension_numbers<[1], [0], [0], [1], [0, 0, 1, 1], [], []>} : vector<16x8xf32>, vector<8x32xf32>, vector<16x32xf32> -> vector<16x32xf32>
    %422 = arith.addf %379, %421 : vector<16x32xf32>
    %c1_341 = arith.constant 1 : index
    %c0_342 = arith.constant 0 : index
    %c0_343 = arith.constant 0 : index
    %423 = vector.load %arg10[%c1_341, %c0_342, %c0_343] : memref<2x1x32xf32, #tpu.memory_space<vmem>>, vector<1x1x32xf32>
    %424 = vector.shape_cast %423 : vector<1x1x32xf32> to vector<1x32xf32>
    %425 = vector.broadcast %424 : vector<1x32xf32> to vector<16x32xf32>
    %426 = arith.addf %422, %425 : vector<16x32xf32>
    %427 = arith.addf %249, %426 : vector<16x32xf32>
    %c1_344 = arith.constant 1 : index
    %c0_345 = arith.constant 0 : index
    %c0_346 = arith.constant 0 : index
    %428 = vector.load %arg11[%c1_344, %c0_345, %c0_346] : memref<2x1x32xf32, #tpu.memory_space<vmem>>, vector<1x1x32xf32>
    %429 = vector.shape_cast %428 : vector<1x1x32xf32> to vector<1x32xf32>
    %c1_347 = arith.constant 1 : index
    %c0_348 = arith.constant 0 : index
    %c0_349 = arith.constant 0 : index
    %430 = vector.load %arg12[%c1_347, %c0_348, %c0_349] : memref<2x1x32xf32, #tpu.memory_space<vmem>>, vector<1x1x32xf32>
    %431 = vector.shape_cast %430 : vector<1x1x32xf32> to vector<1x32xf32>
    %cst_350 = arith.constant dense<0.000000e+00> : vector<16xf32>
    %432 = vector.multi_reduction <add>, %427, %cst_350 [1] : vector<16x32xf32> to vector<16xf32>
    %433 = vector.shape_cast %432 : vector<16xf32> to vector<16x1xf32>
    %cst_351 = arith.constant 3.200000e+01 : f32
    %434 = vector.broadcast %cst_351 : f32 to vector<16x1xf32>
    %435 = arith.divf %433, %434 : vector<16x1xf32>
    %436 = vector.broadcast %435 : vector<16x1xf32> to vector<16x32xf32>
    %437 = arith.subf %427, %436 : vector<16x32xf32>
    %438 = arith.mulf %437, %437 : vector<16x32xf32>
    %cst_352 = arith.constant dense<0.000000e+00> : vector<16xf32>
    %439 = vector.multi_reduction <add>, %438, %cst_352 [1] : vector<16x32xf32> to vector<16xf32>
    %440 = vector.shape_cast %439 : vector<16xf32> to vector<16x1xf32>
    %cst_353 = arith.constant 3.200000e+01 : f32
    %441 = vector.broadcast %cst_353 : f32 to vector<16x1xf32>
    %442 = arith.divf %440, %441 : vector<16x1xf32>
    %cst_354 = arith.constant 9.99999974E-6 : f32
    %443 = vector.broadcast %cst_354 : f32 to vector<16x1xf32>
    %444 = arith.addf %442, %443 : vector<16x1xf32>
    %445 = math.rsqrt %444 : vector<16x1xf32>
    %446 = vector.broadcast %445 : vector<16x1xf32> to vector<16x32xf32>
    %447 = arith.mulf %437, %446 : vector<16x32xf32>
    %448 = vector.broadcast %429 : vector<1x32xf32> to vector<16x32xf32>
    %449 = arith.mulf %447, %448 : vector<16x32xf32>
    %450 = vector.broadcast %431 : vector<1x32xf32> to vector<16x32xf32>
    %451 = arith.addf %449, %450 : vector<16x32xf32>
    %c1_355 = arith.constant 1 : index
    %c0_356 = arith.constant 0 : index
    %c0_357 = arith.constant 0 : index
    %452 = vector.load %arg13[%c1_355, %c0_356, %c0_357] : memref<2x32x64xf32, #tpu.memory_space<vmem>>, vector<1x32x64xf32>
    %453 = vector.shape_cast %452 : vector<1x32x64xf32> to vector<32x64xf32>
    %cst_358 = arith.constant dense<0.000000e+00> : vector<16x64xf32>
    %454 = tpu.matmul %451, %453, %cst_358 {dimension_numbers = #tpu.dot_dimension_numbers<[1], [0], [0], [1], [0, 0, 1, 1], [], []>} : vector<16x32xf32>, vector<32x64xf32>, vector<16x64xf32> -> vector<16x64xf32>
    %c1_359 = arith.constant 1 : index
    %c0_360 = arith.constant 0 : index
    %c0_361 = arith.constant 0 : index
    %455 = vector.load %arg14[%c1_359, %c0_360, %c0_361] : memref<2x1x64xf32, #tpu.memory_space<vmem>>, vector<1x1x64xf32>
    %456 = vector.shape_cast %455 : vector<1x1x64xf32> to vector<1x64xf32>
    %457 = vector.broadcast %456 : vector<1x64xf32> to vector<16x64xf32>
    %458 = arith.addf %454, %457 : vector<16x64xf32>
    %cst_362 = arith.constant 0.000000e+00 : f32
    %459 = vector.broadcast %cst_362 : f32 to vector<16x64xf32>
    %460 = arith.maximumf %458, %459 : vector<16x64xf32>
    %c1_363 = arith.constant 1 : index
    %c0_364 = arith.constant 0 : index
    %c0_365 = arith.constant 0 : index
    %461 = vector.load %arg15[%c1_363, %c0_364, %c0_365] : memref<2x64x32xf32, #tpu.memory_space<vmem>>, vector<1x64x32xf32>
    %462 = vector.shape_cast %461 : vector<1x64x32xf32> to vector<64x32xf32>
    %cst_366 = arith.constant dense<0.000000e+00> : vector<16x32xf32>
    %463 = tpu.matmul %460, %462, %cst_366 {dimension_numbers = #tpu.dot_dimension_numbers<[1], [0], [0], [1], [0, 0, 1, 1], [], []>} : vector<16x64xf32>, vector<64x32xf32>, vector<16x32xf32> -> vector<16x32xf32>
    %c1_367 = arith.constant 1 : index
    %c0_368 = arith.constant 0 : index
    %c0_369 = arith.constant 0 : index
    %464 = vector.load %arg16[%c1_367, %c0_368, %c0_369] : memref<2x1x32xf32, #tpu.memory_space<vmem>>, vector<1x1x32xf32>
    %465 = vector.shape_cast %464 : vector<1x1x32xf32> to vector<1x32xf32>
    %466 = vector.broadcast %465 : vector<1x32xf32> to vector<16x32xf32>
    %467 = arith.addf %463, %466 : vector<16x32xf32>
    %468 = arith.addf %451, %467 : vector<16x32xf32>
    %c1_370 = arith.constant 1 : index
    %c0_371 = arith.constant 0 : index
    %c0_372 = arith.constant 0 : index
    %469 = vector.load %arg17[%c1_370, %c0_371, %c0_372] : memref<2x1x32xf32, #tpu.memory_space<vmem>>, vector<1x1x32xf32>
    %470 = vector.shape_cast %469 : vector<1x1x32xf32> to vector<1x32xf32>
    %c1_373 = arith.constant 1 : index
    %c0_374 = arith.constant 0 : index
    %c0_375 = arith.constant 0 : index
    %471 = vector.load %arg18[%c1_373, %c0_374, %c0_375] : memref<2x1x32xf32, #tpu.memory_space<vmem>>, vector<1x1x32xf32>
    %472 = vector.shape_cast %471 : vector<1x1x32xf32> to vector<1x32xf32>
    %cst_376 = arith.constant dense<0.000000e+00> : vector<16xf32>
    %473 = vector.multi_reduction <add>, %468, %cst_376 [1] : vector<16x32xf32> to vector<16xf32>
    %474 = vector.shape_cast %473 : vector<16xf32> to vector<16x1xf32>
    %cst_377 = arith.constant 3.200000e+01 : f32
    %475 = vector.broadcast %cst_377 : f32 to vector<16x1xf32>
    %476 = arith.divf %474, %475 : vector<16x1xf32>
    %477 = vector.broadcast %476 : vector<16x1xf32> to vector<16x32xf32>
    %478 = arith.subf %468, %477 : vector<16x32xf32>
    %479 = arith.mulf %478, %478 : vector<16x32xf32>
    %cst_378 = arith.constant dense<0.000000e+00> : vector<16xf32>
    %480 = vector.multi_reduction <add>, %479, %cst_378 [1] : vector<16x32xf32> to vector<16xf32>
    %481 = vector.shape_cast %480 : vector<16xf32> to vector<16x1xf32>
    %cst_379 = arith.constant 3.200000e+01 : f32
    %482 = vector.broadcast %cst_379 : f32 to vector<16x1xf32>
    %483 = arith.divf %481, %482 : vector<16x1xf32>
    %cst_380 = arith.constant 9.99999974E-6 : f32
    %484 = vector.broadcast %cst_380 : f32 to vector<16x1xf32>
    %485 = arith.addf %483, %484 : vector<16x1xf32>
    %486 = math.rsqrt %485 : vector<16x1xf32>
    %487 = vector.broadcast %486 : vector<16x1xf32> to vector<16x32xf32>
    %488 = arith.mulf %478, %487 : vector<16x32xf32>
    %489 = vector.broadcast %470 : vector<1x32xf32> to vector<16x32xf32>
    %490 = arith.mulf %488, %489 : vector<16x32xf32>
    %491 = vector.broadcast %472 : vector<1x32xf32> to vector<16x32xf32>
    %492 = arith.addf %490, %491 : vector<16x32xf32>
    %c0_381 = arith.constant 0 : index
    %c0_382 = arith.constant 0 : index
    %493 = vector.load %arg19[%c0_381, %c0_382] : memref<32x128xf32, #tpu.memory_space<vmem>>, vector<32x128xf32>
    %cst_383 = arith.constant dense<0.000000e+00> : vector<16x128xf32>
    %494 = tpu.matmul %492, %493, %cst_383 {dimension_numbers = #tpu.dot_dimension_numbers<[1], [0], [0], [1], [0, 0, 1, 1], [], []>} : vector<16x32xf32>, vector<32x128xf32>, vector<16x128xf32> -> vector<16x128xf32>
    %c0_384 = arith.constant 0 : index
    %c0_385 = arith.constant 0 : index
    %495 = vector.load %arg20[%c0_384, %c0_385] : memref<1x128xf32, #tpu.memory_space<vmem>>, vector<1x128xf32>
    %496 = vector.broadcast %495 : vector<1x128xf32> to vector<16x128xf32>
    %497 = arith.addf %494, %496 : vector<16x128xf32>
    %498 = vector.shape_cast %497 : vector<16x128xf32> to vector<2x8x128xf32>
    %c0_386 = arith.constant 0 : index
    %c0_387 = arith.constant 0 : index
    %c0_388 = arith.constant 0 : index
    %499 = vector.load %arg21[%c0_386, %c0_387, %c0_388] : memref<2x8x128xf32, #tpu.memory_space<vmem>>, vector<2x8x128xf32>
    tpu.vector_store %arg21[%c0_386, %c0_387, %c0_388], %498 {strides = array<i32>} : memref<2x8x128xf32, #tpu.memory_space<vmem>>, vector<2x8x128xf32>,
    return
  }
}

</mosaic_0001>

<bundles_post_ra>
// kernel: tpu_custom_call.1
= control target key start
LH: loop header
LB: loop body
LE: loop exit
PB: predicated region body
PF: predicated region fallthrough
CT: control target
= control target key end

     0   :  { %s8711_s0 = inlined_call_operand.vmem [shape: f32[2,8,16], index: 0, kind: input, shape index: {}]   ;;  %s8712_s1 = inlined_call_operand.vmem [shape: f32[16,32], index: 1, kind: input, shape index: {}]   ;;  %s8713_s2 = inlined_call_operand.vmem [shape: f32[1,32], index: 2, kind: input, shape index: {}]   ;;  %s8714_s3 = inlined_call_operand.vmem [shape: f32[2,4,32,8], index: 3, kind: input, shape index: {}]   ;;  %s8715_s4 = inlined_call_operand.vmem [shape: f32[2,4,1,8], index: 4, kind: input, shape index: {}]   ;;  %s8716_s5 = inlined_call_operand.vmem [shape: f32[2,4,32,8], index: 5, kind: input, shape index: {}]   ;;  %s8717_s6 = inlined_call_operand.vmem [shape: f32[2,4,1,8], index: 6, kind: input, shape index: {}]   ;;  %s8718_s7 = inlined_call_operand.vmem [shape: f32[2,4,32,8], index: 7, kind: input, shape index: {}]   ;;  %s8719_s8 = inlined_call_operand.vmem [shape: f32[2,4,1,8], index: 8, kind: input, shape index: {}]   ;;  %s8720_s9 = inlined_call_operand.vmem [shape: f32[2,4,8,32], index: 9, kind: input, shape index: {}]   ;;  %s8721_s10 = inlined_call_operand.vmem [shape: f32[2,1,32], index: 10, kind: input, shape index: {}]   ;;  %s8722_s11 = inlined_call_operand.vmem [shape: f32[2,1,32], index: 11, kind: input, shape index: {}]   ;;  %s8723_s12 = inlined_call_operand.vmem [shape: f32[2,1,32], index: 12, kind: input, shape index: {}]   ;;  %s8724_s13 = inlined_call_operand.vmem [shape: f32[2,32,64], index: 13, kind: input, shape index: {}]   ;;  %s8725_s14 = inlined_call_operand.vmem [shape: f32[2,1,64], index: 14, kind: input, shape index: {}]   ;;  %s8726_s15 = inlined_call_operand.vmem [shape: f32[2,64,32], index: 15, kind: input, shape index: {}]   ;;  %s8727_s16 = inlined_call_operand.vmem [shape: f32[2,1,32], index: 16, kind: input, shape index: {}]   ;;  %s8728_s17 = inlined_call_operand.vmem [shape: f32[2,1,32], index: 17, kind: input, shape index: {}]   ;;  %s8729_s18 = inlined_call_operand.vmem [shape: f32[2,1,32], index: 18, kind: input, shape index: {}]   ;;  %s8730_s19 = inlined_call_operand.vmem [shape: f32[32,128], index: 19, kind: input, shape index: {}]   ;;  %s8731_s20 = inlined_call_operand.vmem [shape: f32[1,128], index: 20, kind: input, shape index: {}]   ;;  %s8732_s21 = inlined_call_operand.hbm [shape: f32[2,8,128], index: 21, kind: output, shape index: {}]  }
   0x1   :  { %8738 = sst [smem:[#allocation5_spill]] %s8711_s0 }
   0x2   :  { %8739 = sst [smem:[#allocation6_spill]] %s8712_s1 }
   0x3   :  { %8740 = sst [smem:[#allocation7_spill]] %s8713_s2 }
   0x4   :  { %8741 = sst [smem:[#allocation8_spill]] %s8714_s3 }
   0x5   :  { %8742 = sst [smem:[#allocation9_spill]] %s8715_s4 }
   0x6   :  { %8743 = sst [smem:[#allocation10_spill]] %s8716_s5 }
   0x7   :  { %s8744_s26 = sld [smem:[#allocation6_spill]]  ;;  %s8745_s0 = sld [smem:[#allocation5_spill]]  ;;  %vm80_vm0 = vcmask 130048  }
   0x8   :  { %s8746_s5 = sld [smem:[#allocation8_spill]]  ;;  %s8747_s2 = sld [smem:[#allocation10_spill]] }
   0xd   :  { %v71_v0 = vld [vmem:[%s8744_s26] sm:$0xff]  ;;  %v72_v1 = vld [vmem:[%s8744_s26 + $0x8] sm:$0xff] }
   0xe   :  { %v69_v2 = vld [vmem:[%s8745_s0] sm:$0xff]  ;;  %v7343_v3 = vpack.c.bf16 %v72_v1, %v71_v0  ;;  %v163_v5 = vld [vmem:[%s8746_s5 + $0x8] sm:$0xff] }
   0xf   :  { %6805 = vmatprep.mubr.msk.f32.mxu0 %vm80_vm0, %v69_v2  ;;  %v162_v4 = vld [vmem:[%s8746_s5] sm:$0xff]  ;;  %v256_v8 = vld [vmem:[%s8747_s2 + $0x8] sm:$0xff] }
  0x10   :  { %v7347_v6 = vpack.c.bf16 %v163_v5, %v162_v4  ;;  %v255_v7 = vld [vmem:[%s8747_s2] sm:$0xff] }
  0x11   :  { %26 = vsyncpa [#allocation3], 0  ;;  %7344 = vmatprep.subr.bf16.mxu0 %v7343_v3  ;;  %v7355_v9 = vpack.c.bf16 %v256_v8, %v255_v7  ;;  %v70_v10 = vld [vmem:[%s8745_s0 + $0x8] sm:$0xff]  ;;  %v164_v11 = vld [vmem:[%s8746_s5 + $0x10] sm:$0xff]  ;;  %s8748_s29 = sld [smem:[#allocation7_spill]]  ;;  %vm173_vm1 = vcmask 261120  }
  0x12   :  { %7346 = vmatpush3.bf16.msra.mxu0 %v7343_v3  ;;  %7348 = vmatprep.subr.bf16.mxu1 %v7347_v6  ;;  %v165_v12 = vld [vmem:[%s8746_s5 + $0x18] sm:$0xff]  ;;  %v257_v14 = vld [vmem:[%s8747_s2 + $0x10] sm:$0xff]  ;;  %v341_v17 = vld [vmem:[%s8718_s7] sm:$0xff]  ;;  %v7716_v28 = vmov 0.0   ;;  %vm7717_vm2 = vmmov 0   ;;  %vm427_vm3 = vcmask 64512  }
  0x13   :  { %7350 = vmatpush3.bf16.msra.mxu1 %v7347_v6  ;;  %7356 = vmatprep.subr.bf16.mxu0 %v7355_v9  ;;  %v7351_v13 = vpack.c.bf16 %v165_v12, %v164_v11  ;;  %v258_v15 = vld [vmem:[%s8747_s2 + $0x18] sm:$0xff]  ;;  %v342_v18 = vld [vmem:[%s8718_s7 + $0x8] sm:$0xff]  ;;  %v343_v22 = vld [vmem:[%s8718_s7 + $0x10] sm:$0xff]  ;;  %s8749_s26 = sld [smem:[#allocation9_spill]]  ;;  %vm3008_vm4 = vcmask 523264  }
  0x14   :  { %v7359_v16 = vpack.c.bf16 %v258_v15, %v257_v14  ;;  %v7363_v19 = vpack.c.bf16 %v342_v18, %v341_v17  ;;  %v344_v23 = vld [vmem:[%s8718_s7 + $0x18] sm:$0xff]  ;;  %v6238_v29 = vld [vmem:[%s8717_s6] ss:$0 sm:$0xff]  ;;  %v6259_v63 = vld [vmem:[%s8747_s2 + $0x28] sm:$0xff] }
  0x15   :  { %6806 = vmatmul.mubr.msk.f32.vlgmr.msra.gmra.mrb[0].mxu0 %vm80_vm0, %v70_v10  ;;  %7352 = vmatprep.subr.bf16.mxu1 %v7351_v13  ;;  %v7367_v27 = vpack.c.bf16 %v344_v23, %v343_v22  ;;  %v6241_v38 = vld [vmem:[%s8719_s8] ss:$0 sm:$0xff]  ;;  %v6251_v2 = vld [vmem:[%s8746_s5 + $0x28] sm:$0xff]  ;;  %v6260_v6 = vld [vmem:[%s8747_s2 + $0x30] sm:$0xff] }
  0x16   :  { %7358 = vmatpush3.bf16.msra.mxu0 %v7355_v9  ;;  %v6258_v62 = vld [vmem:[%s8747_s2 + $0x20] sm:$0xff]  ;;  %v6261_v7 = vld [vmem:[%s8747_s2 + $0x38] sm:$0xff]  ;;  %v6252_v11 = vld [vmem:[%s8746_s5 + $0x30] sm:$0xff] }
  0x17   :  { %7354 = vmatpush3.bf16.msra.mxu1 %v7351_v13  ;;  %7360 = vmatprep.subr.bf16.mxu0 %v7359_v16  ;;  %v6232_v20 = vld [vmem:[%s8748_s29] ss:$0 sm:$0xff]  ;;  %v7379_v0 = vpack.c.bf16 %v6259_v63, %v6258_v62  ;;  %v7383_v10 = vpack.c.bf16 %v6261_v7, %v6260_v6  ;;  %v6253_v12 = vld [vmem:[%s8746_s5 + $0x38] sm:$0xff]  ;;  %v6267_v17 = vld [vmem:[%s8718_s7 + $0x28] sm:$0xff] }
  0x18   :  { %7364 = vmatprep.subr.bf16.mxu1 %v7363_v19  ;;  %v6250_v1 = vld [vmem:[%s8746_s5 + $0x20] sm:$0xff]  ;;  %v7375_v15 = vpack.c.bf16 %v6253_v12, %v6252_v11  ;;  %v6286_v63 = vld [vmem:[%s8746_s5 + $0x48] sm:$0xff]  ;;  %v6288_v6 = vld [vmem:[%s8746_s5 + $0x58] sm:$0xff] }
  0x19   :  { %v6235_v34 = vld [vmem:[%s8749_s26] ss:$0 sm:$0xff]  ;;  %v7371_v3 = vpack.c.bf16 %v6251_v2, %v6250_v1  ;;  %v6302_v11 = vld [vmem:[%s8718_s7 + $0x48] sm:$0xff] }
  0x1a   :  { %7362 = vmatpush3.bf16.msra.mxu0 %v7359_v16  ;;  %v6266_v16 = vld [vmem:[%s8718_s7 + $0x20] sm:$0xff] }
  0x1b   :  { %6841 = vmatprep.subr.mxu0 %v7716_v28  ;;  %v7387_v18 = vpack.c.bf16 %v6267_v17, %v6266_v16  ;;  %v6285_v62 = vld [vmem:[%s8746_s5 + $0x40] sm:$0xff]  ;;  %v6280_v16 = vld [vmem:[%s8720_s9 + $0x8] sm:$0xff] }
  0x1c   :  { %v750_v17 = vld [vmem:[%s8720_s9] sm:$0xff] }
  0xe8   :  { %v6807_v21 = vpop.f32.mrb[0].mxu0 }
  0xe9   :  { %v153_v24 = vpop.f32.mrb[1].mxu0  ;;  %v7886_v26 = vadd.f32 %v6807_v21, %v6232_v20 }
  0xea   :  { %v7884_v25 = vadd.f32 %v6232_v20, %v153_v24  ;;  %v6269_v20 = vld [vmem:[%s8718_s7 + $0x38] sm:$0xff] }
  0xec   :  { %6816 = vmatprep.mubr.msk.f32.mxu1 %vm173_vm1, %v7884_v25  ;;  %6827 = vmatprep.mubr.msk.f32.mxu0 %vm173_vm1, %v7884_v25 }
  0xed   :  { %6817 = vmatmul.mubr.msk.f32.vlgmr.msra.gmra.mrb[0].mxu1 %vm173_vm1, %v7886_v26  ;;  %6828 = vmatmul.mubr.msk.f32.vlgmr.msra.gmra.mrb[2].mxu0 %vm173_vm1, %v7886_v26 }
  0xee   :  { %7366 = vmatpush3.bf16.msra.mxu1 %v7363_v19  ;;  %6838 = vmatprep.mubr.msk.f32.mxu1 %vm173_vm1, %v7884_v25  ;;  %v6268_v19 = vld [vmem:[%s8718_s7 + $0x30] sm:$0xff] }
  0xef   :  { %7368 = vmatprep.subr.bf16.mxu1 %v7367_v27  ;;  %6843 = vmatprep.mubr.msk.f32.mxu0 %vm7717_vm2, %v7716_v28  ;;  %v7391_v21 = vpack.c.bf16 %v6269_v20, %v6268_v19  ;;  %v6293_v19 = vld [vmem:[%s8747_s2 + $0x40] sm:$0xff]  ;;  %v6294_v20 = vld [vmem:[%s8747_s2 + $0x48] sm:$0xff] }
  0xf2   :  { %7370 = vmatpush3.bf16.msra.mxu1 %v7367_v27 }
  0xf3   :  { %6851 = vmatprep.subr.mxu1 %v7716_v28 }
  0xf5   :  { %6839 = vmatmul.mubr.msk.f32.vlgmr.msra.gmra.mrb[2].mxu1 %vm173_vm1, %v7886_v26 }
  0xf6   :  { %6853 = vmatprep.mubr.msk.f32.mxu1 %vm7717_vm2, %v7716_v28 }
 0x1c0   :  { %v6818_v30 = vpop.f32.mrb[0].mxu1  ;;  %v6829_v31 = vpop.f32.mrb[2].mxu0 }
 0x1c1   :  { %v246_v32 = vpop.f32.mrb[1].mxu1  ;;  %v332_v33 = vpop.f32.mrb[3].mxu0  ;;  %v338_v37 = vadd.f32 %v6829_v31, %v6238_v29  ;;  %v252_v40 = vadd.f32 %v6818_v30, %v6235_v34 }
 0x1c2   :  { %v333_v35 = vadd.f32 %v6238_v29, %v332_v33  ;;  %v247_v36 = vadd.f32 %v6235_v34, %v246_v32  ;;  %v6263_v29 = vld [vmem:[%s8717_s6 + $0x1] ss:$0 sm:$0xff] }
 0x1c3   :  { %v6255_v33 = vld [vmem:[%s8749_s26 + $0x1] ss:$0 sm:$0xff] }
 0x1c4   :  { %6842 = vmatpush3.xpose.msk.msra.mxu0 %vm427_vm3, %v333_v35 }
 0x1c5   :  { %6846 = vmatprep.subr.mxu0 %v7716_v28 }
 0x1c7   :  { %6844 = vmatmul.mubr.msk.f32.vlgmr.msra.gmra.mrb[4].mxu0 %vm427_vm3, %v247_v36 }
 0x1c8   :  { %v6840_v39 = vpop.f32.mrb[2].mxu1  ;;  %6847 = vmatpush3.xpose.msk.msra.mxu0 %vm427_vm3, %v338_v37  ;;  %6848 = vmatprep.mubr.msk.f32.mxu0 %vm7717_vm2, %v7716_v28 }
 0x1c9   :  { %v418_v41 = vpop.f32.mrb[3].mxu1  ;;  %6856 = vmatprep.subr.mxu0 %v7716_v28  ;;  %v424_v42 = vadd.f32 %v6840_v39, %v6241_v38  ;;  %v6271_v39 = vld [vmem:[%s8719_s8 + $0x1] ss:$0 sm:$0xff] }
 0x1ca   :  { %v419_v43 = vadd.f32 %v6241_v38, %v418_v41 }
 0x1cb   :  { %6849 = vmatmul.mubr.msk.f32.vlgmr.msra.gmra.mrb[6].mxu0 %vm427_vm3, %v252_v40 }
 0x1cc   :  { %6852 = vmatpush3.msra.mxu1 %v419_v43  ;;  %6857 = vmatpush3.msra.mxu0 %v424_v42 }
 0x1cd   :  { %6858 = vmatprep.mubr.msk.f32.mxu0 %vm7717_vm2, %v7716_v28  ;;  %7380 = vmatprep.subr.bf16.mxu0 %v7379_v0 }
 0x1ce   :  { %7372 = vmatprep.subr.bf16.mxu1 %v7371_v3 }
 0x29a   :  { %v500_v44 = vpop.f32.mrb[4].mxu0 }
 0x29b   :  { %v6845_v45 = vpop.f32.mrb[5].mxu0  ;;  %v580_v49 = vmul.f32 0.35355338, %v500_v44 }
 0x29d   :  { %v582_v51 = vsel %vm427_vm3, %v580_v49, -inf }
 0x29e   :  { %v576_v46 = vpop.f32.mrb[6].mxu0 }
 0x29f   :  { %v581_v47 = vmul.f32 0.35355338, %v576_v46  ;;  %v6850_v48 = vpop.f32.mrb[7].mxu0 }
 0x2a1   :  { %v585_v50 = vsel %vm427_vm3, %v581_v47, -inf }
 0x2a2   :  { %586 = vmax.xlane.f32.xlu0 %v585_v50 }
 0x2a6   :  { %583 = vmax.xlane.f32.xlu0 %v582_v51 }
 0x32f   :  { %v587_v52 = vpop.xlane.xlu0 %586 }
 0x330   :  { %v589_v53 = vsub.f32 %v581_v47, %v587_v52 }
 0x332   :  { %v592_v54 = vmul.f32 1.442695, %v589_v53 }
 0x333   :  { %v584_v55 = vpop.xlane.xlu0 %583 }
 0x334   :  { %7612 = vpow2.f32 %v592_v54  ;;  %v588_v56 = vsub.f32 %v580_v49, %v584_v55 }
 0x336   :  { %v590_v57 = vmul.f32 1.442695, %v588_v56 }
 0x338   :  { %7614 = vpow2.f32 %v590_v57 }
 0x33e   :  { %v7613_v58 = vpop.eup %7612 }
 0x33f   :  { %v597_v59 = vsel %vm427_vm3, %v7613_v58, 0.0 }
 0x340   :  { %598 = vadd.xlane.f32.xlu1 %v597_v59 }
 0x342   :  { %v7615_v60 = vpop.eup %7614 }
 0x343   :  { %v594_v61 = vsel %vm427_vm3, %v7615_v60, 0.0 }
 0x344   :  { %595 = vadd.xlane.f32.xlu1 %v594_v61 }
 0x3cd   :  { %v599_v4 = vpop.xlane.xlu1 %598 }
 0x3ce   :  { %7616 = vrcp.f32 %v599_v4 }
 0x3d1   :  { %v596_v5 = vpop.xlane.xlu1 %595 }
 0x3d2   :  { %7618 = vrcp.f32 %v596_v5  ;;  %v6287_v5 = vld [vmem:[%s8746_s5 + $0x50] sm:$0xff] }
 0x3d8   :  { %v7617_v8 = vpop.eup %7616 }
 0x3d9   :  { %v603_v9 = vmul.f32 %v7617_v8, %v7613_v58 }
 0x3db   :  { %6859 = vmatmul.mubr.msk.f32.vlgmr.msra.gmra.mrb[8].mxu0 %vm427_vm3, %v603_v9  ;;  %v7399_v9 = vpack.c.bf16 %v6288_v6, %v6287_v5  ;;  %v6320_v6 = vld [vmem:[%s8746_s5 + $0x70] sm:$0xff] }
 0x3dc   :  { %v7619_v13 = vpop.eup %7618  ;;  %7382 = vmatpush3.bf16.msra.mxu0 %v7379_v0  ;;  %6880 = vmatprep.mubr.msk.f32.mxu0 %vm173_vm1, %v7884_v25  ;;  %v7395_v0 = vpack.c.bf16 %v6286_v63, %v6285_v62 }
 0x3dd   :  { %v602_v14 = vmul.f32 %v7619_v13, %v7615_v60  ;;  %7384 = vmatprep.subr.bf16.mxu0 %v7383_v10  ;;  %v6303_v13 = vld [vmem:[%s8718_s7 + $0x50] sm:$0xff] }
 0x3df   :  { %6854 = vmatmul.mubr.msk.f32.vlgmr.msra.gmra.mrb[4].mxu1 %vm427_vm3, %v602_v14  ;;  %v6304_v14 = vld [vmem:[%s8718_s7 + $0x58] sm:$0xff] }
 0x3e0   :  { %7374 = vmatpush3.bf16.msra.mxu1 %v7371_v3  ;;  %7386 = vmatpush3.bf16.msra.mxu0 %v7383_v10  ;;  %v6301_v10 = vld [vmem:[%s8718_s7 + $0x40] sm:$0xff] }
 0x3e1   :  { %6869 = vmatprep.mubr.msk.f32.mxu1 %vm173_vm1, %v7884_v25  ;;  %7376 = vmatprep.subr.bf16.mxu1 %v7375_v15  ;;  %v7411_v12 = vpack.c.bf16 %v6302_v11, %v6301_v10 }
 0x3e2   :  { %6894 = vmatprep.subr.mxu0 %v7716_v28 }
 0x3e3   :  { %6881 = vmatmul.mubr.msk.f32.vlgmr.msra.gmra.mrb[10].mxu0 %vm173_vm1, %v7886_v26 }
 0x3e4   :  { %7378 = vmatpush3.bf16.msra.mxu1 %v7375_v15  ;;  %6896 = vmatprep.mubr.msk.f32.mxu0 %vm7717_vm2, %v7716_v28  ;;  %v7415_v15 = vpack.c.bf16 %v6304_v14, %v6303_v13  ;;  %v6334_v13 = vld [vmem:[%s8718_s7 + $0x60] sm:$0xff]  ;;  %v6335_v14 = vld [vmem:[%s8718_s7 + $0x68] sm:$0xff] }
 0x3e5   :  { %7388 = vmatprep.subr.bf16.mxu1 %v7387_v18 }
 0x3e7   :  { %6870 = vmatmul.mubr.msk.f32.vlgmr.msra.gmra.mrb[6].mxu1 %vm173_vm1, %v7886_v26 }
 0x3e8   :  { %7390 = vmatpush3.bf16.msra.mxu1 %v7387_v18  ;;  %6891 = vmatprep.mubr.msk.f32.mxu1 %vm173_vm1, %v7884_v25 }
 0x3e9   :  { %7392 = vmatprep.subr.bf16.mxu1 %v7391_v21 }
 0x3ec   :  { %7394 = vmatpush3.bf16.msra.mxu1 %v7391_v21 }
 0x3ed   :  { %6904 = vmatprep.subr.mxu1 %v7716_v28 }
 0x3ef   :  { %6892 = vmatmul.mubr.msk.f32.vlgmr.msra.gmra.mrb[8].mxu1 %vm173_vm1, %v7886_v26 }
 0x3f0   :  { %6906 = vmatprep.mubr.msk.f32.mxu1 %vm7717_vm2, %v7716_v28 }
 0x4ae   :  { %v7985_v22 = vpop.f32.mrb[8].mxu0 }
 0x4af   :  { %v6860_v23 = vpop.f32.mrb[9].mxu0 }
 0x4b0   :  { %v7403_v23 = vpack.c.bf16 %v6294_v20, %v6293_v19  ;;  %v6326_v19 = vld [vmem:[%s8747_s2 + $0x60] sm:$0xff]  ;;  %v6327_v20 = vld [vmem:[%s8747_s2 + $0x68] sm:$0xff] }
 0x4b2   :  { %v7987_v24 = vpop.f32.mrb[4].mxu1 }
 0x4b3   :  { %v6855_v27 = vpop.f32.mrb[5].mxu1 }
 0x4b6   :  { %v6882_v30 = vpop.f32.mrb[10].mxu0 }
 0x4b7   :  { %v918_v31 = vpop.f32.mrb[11].mxu0  ;;  %v924_v37 = vadd.f32 %v6882_v30, %v6263_v29  ;;  %v6295_v30 = vld [vmem:[%s8747_s2 + $0x50] sm:$0xff] }
 0x4b8   :  { %v919_v32 = vadd.f32 %v6263_v29, %v918_v31  ;;  %v6296_v31 = vld [vmem:[%s8747_s2 + $0x58] sm:$0xff] }
 0x4ba   :  { %v6871_v34 = vpop.f32.mrb[6].mxu1  ;;  %6895 = vmatpush3.xpose.msk.msra.mxu0 %vm427_vm3, %v919_v32  ;;  %v7407_v32 = vpack.c.bf16 %v6296_v31, %v6295_v30 }
 0x4bb   :  { %v830_v35 = vpop.f32.mrb[7].mxu1  ;;  %6899 = vmatprep.subr.mxu0 %v7716_v28  ;;  %v836_v38 = vadd.f32 %v6871_v34, %v6255_v33 }
 0x4bc   :  { %v831_v36 = vadd.f32 %v6255_v33, %v830_v35 }
 0x4be   :  { %6897 = vmatmul.mubr.msk.f32.vlgmr.msra.gmra.mrb[12].mxu0 %vm427_vm3, %v831_v36 }
 0x4bf   :  { %6900 = vmatpush3.xpose.msk.msra.mxu0 %vm427_vm3, %v924_v37  ;;  %6901 = vmatprep.mubr.msk.f32.mxu0 %vm7717_vm2, %v7716_v28  ;;  %v6290_v37 = vld [vmem:[%s8749_s26 + $0x2] ss:$0 sm:$0xff] }
 0x4c0   :  { %6909 = vmatprep.subr.mxu0 %v7716_v28 }
 0x4c2   :  { %v6893_v40 = vpop.f32.mrb[8].mxu1  ;;  %6902 = vmatmul.mubr.msk.f32.vlgmr.msra.gmra.mrb[14].mxu0 %vm427_vm3, %v836_v38 }
 0x4c3   :  { %v1012_v41 = vadd.f32 %v6893_v40, %v6271_v39  ;;  %v1006_v42 = vpop.f32.mrb[9].mxu1  ;;  %6911 = vmatprep.mubr.msk.f32.mxu0 %vm7717_vm2, %v7716_v28  ;;  %v6306_v40 = vld [vmem:[%s8719_s8 + $0x2] ss:$0 sm:$0xff] }
 0x4c4   :  { %v1007_v43 = vadd.f32 %v6271_v39, %v1006_v42 }
 0x4c5   :  { %6910 = vmatpush3.msra.mxu0 %v1012_v41 }
 0x4c6   :  { %6905 = vmatpush3.msra.mxu1 %v1007_v43  ;;  %7396 = vmatprep.subr.bf16.mxu0 %v7395_v0 }
 0x4c7   :  { %6914 = vmatprep.subr.mxu1 %v6280_v16 }
 0x591   :  { %v1087_v44 = vpop.f32.mrb[12].mxu0 }
 0x592   :  { %v1167_v45 = vmul.f32 0.35355338, %v1087_v44  ;;  %v6898_v46 = vpop.f32.mrb[13].mxu0 }
 0x594   :  { %v1169_v47 = vsel %vm427_vm3, %v1167_v45, -inf }
 0x595   :  { %1170 = vmax.xlane.f32.xlu0 %v1169_v47  ;;  %v1163_v48 = vpop.f32.mrb[14].mxu0 }
 0x596   :  { %v1168_v49 = vmul.f32 0.35355338, %v1163_v48  ;;  %v6903_v50 = vpop.f32.mrb[15].mxu0 }
 0x598   :  { %v1172_v51 = vsel %vm427_vm3, %v1168_v49, -inf }
 0x599   :  { %1173 = vmax.xlane.f32.xlu1 %v1172_v51 }
 0x622   :  { %v1171_v52 = vpop.xlane.xlu0 %1170 }
 0x623   :  { %v1175_v53 = vsub.f32 %v1167_v45, %v1171_v52 }
 0x625   :  { %v1177_v54 = vmul.f32 1.442695, %v1175_v53 }
 0x626   :  { %v1174_v55 = vpop.xlane.xlu1 %1173 }
 0x627   :  { %7620 = vpow2.f32 %v1177_v54  ;;  %v1176_v56 = vsub.f32 %v1168_v49, %v1174_v55 }
 0x629   :  { %v1179_v57 = vmul.f32 1.442695, %v1176_v56 }
 0x62b   :  { %7622 = vpow2.f32 %v1179_v57 }
 0x631   :  { %v7621_v58 = vpop.eup %7620 }
 0x632   :  { %v1181_v59 = vsel %vm427_vm3, %v7621_v58, 0.0 }
 0x633   :  { %1182 = vadd.xlane.f32.xlu0 %v1181_v59 }
 0x635   :  { %v7623_v60 = vpop.eup %7622 }
 0x636   :  { %v1184_v61 = vsel %vm427_vm3, %v7623_v60, 0.0 }
 0x637   :  { %1185 = vadd.xlane.f32.xlu1 %v1184_v61 }
 0x6c0   :  { %v1183_v1 = vpop.xlane.xlu0 %1182 }
 0x6c1   :  { %7624 = vrcp.f32 %v1183_v1  ;;  %v6319_v1 = vld [vmem:[%s8746_s5 + $0x68] sm:$0xff] }
 0x6c4   :  { %v1186_v2 = vpop.xlane.xlu1 %1185 }
 0x6c5   :  { %7626 = vrcp.f32 %v1186_v2 }
 0x6cb   :  { %v7625_v3 = vpop.eup %7624 }
 0x6cc   :  { %v1189_v4 = vmul.f32 %v7625_v3, %v7621_v58  ;;  %v6315_v3 = vld [vmem:[%s8720_s9 + $0x10] sm:$0xff] }
 0x6ce   :  { %6907 = vmatmul.mubr.msk.f32.vlgmr.msra.gmra.mrb[10].mxu1 %vm427_vm3, %v1189_v4 }
 0x6cf   :  { %v7627_v7 = vpop.eup %7626  ;;  %6915 = vmatpush3.msra.mxu1 %v6280_v16  ;;  %v6336_v16 = vld [vmem:[%s8718_s7 + $0x70] sm:$0xff] }
 0x6d0   :  { %v1190_v8 = vmul.f32 %v7627_v7, %v7623_v60  ;;  %6919 = vmatprep.subr.mxu1 %v750_v17  ;;  %v6321_v7 = vld [vmem:[%s8746_s5 + $0x78] sm:$0xff] }
 0x6d1   :  { %v7423_v11 = vpack.c.bf16 %v6321_v7, %v6320_v6  ;;  %v6348_v7 = vld [vmem:[%s8720_s9 + $0x18] sm:$0xff] }
 0x6d2   :  { %6912 = vmatmul.mubr.msk.f32.vlgmr.msra.gmra.mrb[16].mxu0 %vm427_vm3, %v1190_v8 }
 0x6d3   :  { %7398 = vmatpush3.bf16.msra.mxu0 %v7395_v0  ;;  %6932 = vmatprep.mubr.msk.f32.mxu0 %vm173_vm1, %v7884_v25  ;;  %v6318_v0 = vld [vmem:[%s8746_s5 + $0x60] sm:$0xff] }
 0x6d4   :  { %7400 = vmatprep.subr.bf16.mxu0 %v7399_v9  ;;  %v7419_v2 = vpack.c.bf16 %v6319_v1, %v6318_v0 }
 0x6d7   :  { %7402 = vmatpush3.bf16.msra.mxu0 %v7399_v9 }
 0x6d8   :  { %7412 = vmatprep.subr.bf16.mxu0 %v7411_v12 }
 0x6da   :  { %6933 = vmatmul.mubr.msk.f32.vlgmr.msra.gmra.mrb[18].mxu0 %vm173_vm1, %v7886_v26 }
 0x6db   :  { %7414 = vmatpush3.bf16.msra.mxu0 %v7411_v12  ;;  %6954 = vmatprep.mubr.msk.f32.mxu0 %vm173_vm1, %v7884_v25 }
 0x6dc   :  { %7416 = vmatprep.subr.bf16.mxu0 %v7415_v15 }
 0x6df   :  { %7418 = vmatpush3.bf16.msra.mxu0 %v7415_v15  ;;  %v7435_v15 = vpack.c.bf16 %v6335_v14, %v6334_v13 }
 0x6e0   :  { %6962 = vmatprep.subr.mxu0 %v7716_v28 }
 0x6e2   :  { %6955 = vmatmul.mubr.msk.f32.vlgmr.msra.gmra.mrb[20].mxu0 %vm173_vm1, %v7886_v26 }
 0x6e3   :  { %6964 = vmatprep.mubr.msk.f32.mxu0 %vm7717_vm2, %v7716_v28 }
 0x7a1   :  { %v1260_v18 = vpop.f32.mrb[10].mxu1 }
 0x7a2   :  { %v6908_v21 = vpop.f32.mrb[11].mxu1  ;;  %6916 = vmatprep.mubr.msk.f32.mxu1 %vm427_vm3, %v1260_v18 }
 0x7a3   :  { %v7427_v21 = vpack.c.bf16 %v6327_v20, %v6326_v19 }
 0x7a5   :  { %v1333_v27 = vpop.f32.mrb[16].mxu0 }
 0x7a6   :  { %v6913_v29 = vpop.f32.mrb[17].mxu0  ;;  %6917 = vmatmul.mubr.msk.f32.vlgmr.msra.gmra.mrb[12].mxu1 %vm427_vm3, %v1333_v27  ;;  %v6329_v27 = vld [vmem:[%s8747_s2 + $0x78] sm:$0xff] }
 0x7a7   :  { %6920 = vmatpush3.msra.mxu1 %v750_v17  ;;  %6921 = vmatprep.mubr.msk.f32.mxu1 %vm427_vm3, %v7987_v24  ;;  %v6337_v17 = vld [vmem:[%s8718_s7 + $0x78] sm:$0xff] }
 0x7a8   :  { %7404 = vmatprep.subr.bf16.mxu1 %v7403_v23  ;;  %v7439_v18 = vpack.c.bf16 %v6337_v17, %v6336_v16 }
 0x7ad   :  { %v6934_v33 = vpop.f32.mrb[18].mxu0 }
 0x7ae   :  { %v1580_v34 = vpop.f32.mrb[19].mxu0  ;;  %6922 = vmatmul.mubr.msk.f32.vlgmr.msra.gmra.mrb[12].mxu1 %vm427_vm3, %v7985_v22  ;;  %v6298_v22 = vld [vmem:[%s8717_s6 + $0x2] ss:$0 sm:$0xff]  ;;  %v1586_v42 = vadd.f32 %v6934_v33, %v6290_v37 }
 0x7af   :  { %7406 = vmatpush3.bf16.msra.mxu1 %v7403_v23  ;;  %6943 = vmatprep.mubr.msk.f32.mxu1 %vm173_vm1, %v7884_v25  ;;  %v1581_v43 = vadd.f32 %v6290_v37, %v1580_v34  ;;  %v6328_v23 = vld [vmem:[%s8747_s2 + $0x70] sm:$0xff] }
 0x7b0   :  { %7408 = vmatprep.subr.bf16.mxu1 %v7407_v32 }
 0x7b3   :  { %7410 = vmatpush3.bf16.msra.mxu1 %v7407_v32  ;;  %v7431_v32 = vpack.c.bf16 %v6329_v27, %v6328_v23 }
 0x7b4   :  { %6957 = vmatprep.subr.mxu1 %v7716_v28 }
 0x7b5   :  { %v6956_v24 = vpop.f32.mrb[20].mxu0 }
 0x7b6   :  { %6944 = vmatmul.mubr.msk.f32.vlgmr.msra.gmra.mrb[14].mxu1 %vm173_vm1, %v7886_v26  ;;  %v1756_v35 = vpop.f32.mrb[21].mxu0  ;;  %v1762_v44 = vadd.f32 %v6956_v24, %v6306_v40 }
 0x7b7   :  { %6959 = vmatprep.mubr.msk.f32.mxu1 %vm7717_vm2, %v7716_v28  ;;  %v1757_v45 = vadd.f32 %v6306_v40, %v1756_v35  ;;  %v6339_v35 = vld [vmem:[%s8719_s8 + $0x3] ss:$0 sm:$0xff] }
 0x889   :  { %v6945_v36 = vpop.f32.mrb[14].mxu1 }
 0x88a   :  { %v1674_v38 = vadd.f32 %v6945_v36, %v6298_v22  ;;  %v1668_v39 = vpop.f32.mrb[15].mxu1 }
 0x88b   :  { %v1669_v41 = vadd.f32 %v6298_v22, %v1668_v39  ;;  %v6331_v39 = vld [vmem:[%s8717_s6 + $0x3] ss:$0 sm:$0xff] }
 0x88c   :  { %6963 = vmatpush3.xpose.msk.msra.mxu0 %vm427_vm3, %v1674_v38 }
 0x88d   :  { %6958 = vmatpush3.xpose.msk.msra.mxu1 %vm427_vm3, %v1669_v41  ;;  %6972 = vmatprep.subr.mxu0 %v7716_v28 }
 0x88e   :  { %6967 = vmatprep.subr.mxu1 %v7716_v28 }
 0x88f   :  { %6965 = vmatmul.mubr.msk.f32.vlgmr.msra.gmra.mrb[22].mxu0 %vm427_vm3, %v1586_v42  ;;  %v6323_v42 = vld [vmem:[%s8749_s26 + $0x3] ss:$0 sm:$0xff] }
 0x890   :  { %6960 = vmatmul.mubr.msk.f32.vlgmr.msra.gmra.mrb[16].mxu1 %vm427_vm3, %v1581_v43  ;;  %6973 = vmatpush3.msra.mxu0 %v1762_v44 }
 0x891   :  { %6968 = vmatpush3.msra.mxu1 %v1757_v45  ;;  %6974 = vmatprep.mubr.msk.f32.mxu0 %vm7717_vm2, %v7716_v28 }
 0x892   :  { %6969 = vmatprep.mubr.msk.f32.mxu1 %vm7717_vm2, %v7716_v28  ;;  %7420 = vmatprep.subr.bf16.mxu0 %v7419_v2 }
 0x893   :  { %6977 = vmatprep.subr.mxu1 %v6315_v3 }
 0x962   :  { %v1913_v46 = vpop.f32.mrb[22].mxu0 }
 0x963   :  { %v1918_v47 = vmul.f32 0.35355338, %v1913_v46  ;;  %v1837_v48 = vpop.f32.mrb[16].mxu1  ;;  %v6966_v49 = vpop.f32.mrb[23].mxu0 }
 0x964   :  { %v1917_v50 = vmul.f32 0.35355338, %v1837_v48  ;;  %v6961_v51 = vpop.f32.mrb[17].mxu1 }
 0x965   :  { %v1922_v52 = vsel %vm427_vm3, %v1918_v47, -inf }
 0x966   :  { %1923 = vmax.xlane.f32.xlu1 %v1922_v52  ;;  %v1919_v53 = vsel %vm427_vm3, %v1917_v50, -inf }
 0x967   :  { %1920 = vmax.xlane.f32.xlu0 %v1919_v53 }
 0x9f3   :  { %v1924_v54 = vpop.xlane.xlu1 %1923 }
 0x9f4   :  { %v1926_v55 = vsub.f32 %v1918_v47, %v1924_v54  ;;  %v1921_v56 = vpop.xlane.xlu0 %1920 }
 0x9f5   :  { %v1925_v57 = vsub.f32 %v1917_v50, %v1921_v56 }
 0x9f6   :  { %v1929_v58 = vmul.f32 1.442695, %v1926_v55 }
 0x9f7   :  { %v1927_v59 = vmul.f32 1.442695, %v1925_v57 }
 0x9f8   :  { %7628 = vpow2.f32 %v1929_v58 }
 0x9f9   :  { %7630 = vpow2.f32 %v1927_v59 }
 0xa02   :  { %v7629_v60 = vpop.eup %7628 }
 0xa03   :  { %v7631_v61 = vpop.eup %7630  ;;  %v1934_v62 = vsel %vm427_vm3, %v7629_v60, 0.0 }
 0xa04   :  { %1935 = vadd.xlane.f32.xlu1 %v1934_v62  ;;  %v1931_v63 = vsel %vm427_vm3, %v7631_v61, 0.0 }
 0xa05   :  { %1932 = vadd.xlane.f32.xlu0 %v1931_v63 }
 0xa91   :  { %v1936_v4 = vpop.xlane.xlu1 %1935 }
 0xa92   :  { %7632 = vrcp.f32 %v1936_v4  ;;  %v1933_v5 = vpop.xlane.xlu0 %1932 }
 0xa93   :  { %7634 = vrcp.f32 %v1933_v5 }
 0xa9c   :  { %v7633_v8 = vpop.eup %7632 }
 0xa9d   :  { %v7635_v9 = vpop.eup %7634  ;;  %v1940_v10 = vmul.f32 %v7633_v8, %v7629_v60 }
 0xa9e   :  { %v1939_v12 = vmul.f32 %v7635_v9, %v7631_v61 }
 0xa9f   :  { %6975 = vmatmul.mubr.msk.f32.vlgmr.msra.gmra.mrb[24].mxu0 %vm427_vm3, %v1940_v10 }
 0xaa0   :  { %7422 = vmatpush3.bf16.msra.mxu0 %v7419_v2  ;;  %6970 = vmatmul.mubr.msk.f32.vlgmr.msra.gmra.mrb[18].mxu1 %vm427_vm3, %v1939_v12  ;;  %v6351_v12 = vld [vmem:[%s8721_s10] ss:$0 sm:$0xff] }
 0xaa1   :  { %6990 = vmatprep.mubr.msk.f32.mxu0 %vm173_vm1, %v7884_v25  ;;  %7424 = vmatprep.subr.bf16.mxu0 %v7423_v11 }
 0xaa2   :  { %6978 = vmatpush3.msra.mxu1 %v6315_v3 }
 0xaa3   :  { %7428 = vmatprep.subr.bf16.mxu1 %v7427_v21 }
 0xaa4   :  { %7426 = vmatpush3.bf16.msra.mxu0 %v7423_v11 }
 0xaa5   :  { %7436 = vmatprep.subr.bf16.mxu0 %v7435_v15 }
 0xaa7   :  { %6991 = vmatmul.mubr.msk.f32.vlgmr.msra.gmra.mrb[26].mxu0 %vm173_vm1, %v7886_v26 }
 0xaa8   :  { %7438 = vmatpush3.bf16.msra.mxu0 %v7435_v15  ;;  %7012 = vmatprep.mubr.msk.f32.mxu0 %vm173_vm1, %v7884_v25 }
 0xaa9   :  { %7440 = vmatprep.subr.bf16.mxu0 %v7439_v18 }
 0xaac   :  { %7442 = vmatpush3.bf16.msra.mxu0 %v7439_v18 }
 0xaad   :  { %7025 = vmatprep.subr.mxu0 %v7716_v28 }
 0xaaf   :  { %7013 = vmatmul.mubr.msk.f32.vlgmr.msra.gmra.mrb[28].mxu0 %vm173_vm1, %v7886_v26 }
 0xab0   :  { %7027 = vmatprep.mubr.msk.f32.mxu0 %vm7717_vm2, %v7716_v28 }
 0xb72   :  { %v2083_v29 = vpop.f32.mrb[24].mxu0 }
 0xb73   :  { %v2010_v30 = vpop.f32.mrb[18].mxu1  ;;  %v6976_v31 = vpop.f32.mrb[25].mxu0 }
 0xb74   :  { %v6971_v33 = vpop.f32.mrb[19].mxu1  ;;  %6979 = vmatprep.mubr.msk.f32.mxu1 %vm427_vm3, %v2010_v30 }
 0xb75   :  { %6980 = vmatmul.mubr.msk.f32.vlgmr.msra.gmra.mrb[12].mxu1 %vm427_vm3, %v2083_v29 }
 0xb76   :  { %7430 = vmatpush3.bf16.msra.mxu1 %v7427_v21  ;;  %7001 = vmatprep.mubr.msk.f32.mxu1 %vm173_vm1, %v7884_v25 }
 0xb77   :  { %7432 = vmatprep.subr.bf16.mxu1 %v7431_v32 }
 0xb7a   :  { %v6992_v34 = vpop.f32.mrb[26].mxu0  ;;  %7434 = vmatpush3.bf16.msra.mxu1 %v7431_v32 }
 0xb7b   :  { %v2251_v24 = vpop.f32.mrb[27].mxu0  ;;  %7015 = vmatprep.subr.mxu1 %v7716_v28  ;;  %v2257_v46 = vadd.f32 %v6992_v34, %v6323_v42 }
 0xb7c   :  { %v2252_v44 = vadd.f32 %v6323_v42, %v2251_v24  ;;  %v2900_v24 = vld [vmem:[%s8724_s13 + $0x8] sm:$0xff]  ;;  %v2996_v42 = vld [vmem:[%s8726_s15 + $0x18] sm:$0xff] }
 0xb7d   :  { %7002 = vmatmul.mubr.msk.f32.vlgmr.msra.gmra.mrb[20].mxu1 %vm173_vm1, %v7886_v26 }
 0xb7e   :  { %7017 = vmatprep.mubr.msk.f32.mxu1 %vm7717_vm2, %v7716_v28 }
 0xb82   :  { %v7014_v22 = vpop.f32.mrb[28].mxu0 }
 0xb83   :  { %v2433_v36 = vadd.f32 %v7014_v22, %v6339_v35  ;;  %v2427_v37 = vpop.f32.mrb[29].mxu0  ;;  %v2901_v22 = vld [vmem:[%s8724_s13 + $0x10] sm:$0xff] }
 0xb84   :  { %v2428_v38 = vadd.f32 %v6339_v35, %v2427_v37 }
 0xb86   :  { %7026 = vmatpush3.msra.mxu0 %v2428_v38  ;;  %v2993_v38 = vld [vmem:[%s8726_s15] sm:$0xff] }
 0xc50   :  { %v7003_v40 = vpop.f32.mrb[20].mxu1 }
 0xc51   :  { %v2339_v41 = vpop.f32.mrb[21].mxu1  ;;  %v2345_v45 = vadd.f32 %v7003_v40, %v6331_v39  ;;  %v2995_v40 = vld [vmem:[%s8726_s15 + $0x10] sm:$0xff] }
 0xc52   :  { %v2340_v43 = vadd.f32 %v6331_v39, %v2339_v41  ;;  %v2994_v39 = vld [vmem:[%s8726_s15 + $0x8] sm:$0xff] }
 0xc53   :  { %v7451_v41 = vpack.c.bf16 %v2994_v39, %v2993_v38  ;;  %v6380_v38 = vld [vmem:[%s8718_s7 + $0x90] sm:$0xff]  ;;  %v6381_v39 = vld [vmem:[%s8718_s7 + $0x98] sm:$0xff] }
 0xc54   :  { %7016 = vmatpush3.xpose.msk.msra.mxu1 %vm427_vm3, %v2340_v43  ;;  %v7455_v43 = vpack.c.bf16 %v2996_v42, %v2995_v40  ;;  %v7487_v40 = vpack.c.bf16 %v6381_v39, %v6380_v38  ;;  %v6371_v42 = vld [vmem:[%s8747_s2 + $0x88] sm:$0xff] }
 0xc55   :  { %7020 = vmatprep.subr.mxu1 %v7716_v28 }
 0xc57   :  { %7018 = vmatmul.mubr.msk.f32.vlgmr.msra.gmra.mrb[22].mxu1 %vm427_vm3, %v2252_v44  ;;  %v2997_v44 = vld [vmem:[%s8726_s15 + $0x20] sm:$0xff] }
 0xc58   :  { %7021 = vmatpush3.xpose.msk.msra.mxu1 %vm427_vm3, %v2345_v45  ;;  %7022 = vmatprep.mubr.msk.f32.mxu1 %vm7717_vm2, %v7716_v28  ;;  %v2998_v45 = vld [vmem:[%s8726_s15 + $0x28] sm:$0xff] }
 0xc59   :  { %7030 = vmatprep.subr.mxu1 %v7716_v28 }
 0xc5b   :  { %7023 = vmatmul.mubr.msk.f32.vlgmr.msra.gmra.mrb[24].mxu1 %vm427_vm3, %v2257_v46  ;;  %v7459_v46 = vpack.c.bf16 %v2998_v45, %v2997_v44 }
 0xc5c   :  { %7031 = vmatpush3.msra.mxu1 %v2433_v36  ;;  %7032 = vmatprep.mubr.msk.f32.mxu1 %vm7717_vm2, %v7716_v28  ;;  %v2902_v36 = vld [vmem:[%s8724_s13 + $0x18] sm:$0xff] }
 0xc5d   :  { %7035 = vmatprep.subr.mxu1 %v6348_v7  ;;  %v7447_v37 = vpack.c.bf16 %v2902_v36, %v2901_v22  ;;  %v6364_v22 = vld [vmem:[%s8746_s5 + $0x90] sm:$0xff]  ;;  %v6365_v36 = vld [vmem:[%s8746_s5 + $0x98] sm:$0xff] }
 0xd2a   :  { %v2508_v47 = vpop.f32.mrb[22].mxu1 }
 0xd2b   :  { %v2588_v48 = vmul.f32 0.35355338, %v2508_v47  ;;  %v7019_v49 = vpop.f32.mrb[23].mxu1 }
 0xd2d   :  { %v2590_v50 = vsel %vm427_vm3, %v2588_v48, -inf }
 0xd2e   :  { %2591 = vmax.xlane.f32.xlu0 %v2590_v50  ;;  %v2584_v51 = vpop.f32.mrb[24].mxu1 }
 0xd2f   :  { %v2589_v52 = vmul.f32 0.35355338, %v2584_v51  ;;  %v7024_v53 = vpop.f32.mrb[25].mxu1 }
 0xd31   :  { %v2593_v54 = vsel %vm427_vm3, %v2589_v52, -inf }
 0xd32   :  { %2594 = vmax.xlane.f32.xlu1 %v2593_v54  ;;  %v6352_v54 = vld [vmem:[%s8722_s11] ss:$0 sm:$0xff] }
 0xdbb   :  { %v2592_v55 = vpop.xlane.xlu0 %2591 }
 0xdbc   :  { %v2596_v56 = vsub.f32 %v2588_v48, %v2592_v55 }
 0xdbe   :  { %v2598_v57 = vmul.f32 1.442695, %v2596_v56 }
 0xdbf   :  { %v2595_v58 = vpop.xlane.xlu1 %2594 }
 0xdc0   :  { %7636 = vpow2.f32 %v2598_v57  ;;  %v2597_v59 = vsub.f32 %v2589_v52, %v2595_v58  ;;  %v6353_v58 = vld [vmem:[%s8723_s12] ss:$0 sm:$0xff] }
 0xdc2   :  { %v2600_v60 = vmul.f32 1.442695, %v2597_v59 }
 0xdc4   :  { %7638 = vpow2.f32 %v2600_v60 }
 0xdca   :  { %v7637_v61 = vpop.eup %7636 }
 0xdcb   :  { %v2602_v62 = vsel %vm427_vm3, %v7637_v61, 0.0 }
 0xdcc   :  { %2603 = vadd.xlane.f32.xlu0 %v2602_v62 }
 0xdce   :  { %v7639_v63 = vpop.eup %7638 }
 0xdcf   :  { %v2605_v0 = vsel %vm427_vm3, %v7639_v63, 0.0 }
 0xdd0   :  { %2606 = vadd.xlane.f32.xlu1 %v2605_v0  ;;  %v3000_v0 = vld [vmem:[%s8726_s15 + $0x38] sm:$0xff] }
 0xe59   :  { %v2604_v1 = vpop.xlane.xlu0 %2603 }
 0xe5a   :  { %7640 = vrcp.f32 %v2604_v1 }
 0xe5d   :  { %v2607_v2 = vpop.xlane.xlu1 %2606 }
 0xe5e   :  { %7642 = vrcp.f32 %v2607_v2  ;;  %v6354_v2 = vld [vmem:[%s8725_s14] ss:$0 sm:$0xff] }
 0xe64   :  { %v7641_v3 = vpop.eup %7640 }
 0xe65   :  { %v2610_v4 = vmul.f32 %v7641_v3, %v7637_v61 }
 0xe67   :  { %7028 = vmatmul.mubr.msk.f32.vlgmr.msra.gmra.mrb[30].mxu0 %vm427_vm3, %v2610_v4 }
 0xe68   :  { %v7643_v5 = vpop.eup %7642 }
 0xe69   :  { %v2611_v6 = vmul.f32 %v7643_v5, %v7639_v63  ;;  %v2999_v63 = vld [vmem:[%s8726_s15 + $0x30] sm:$0xff] }
 0xe6a   :  { %v7463_v1 = vpack.c.bf16 %v3000_v0, %v2999_v63  ;;  %v6383_v63 = vld [vmem:[%s8719_s8 + $0x4] ss:$0 sm:$0xff] }
 0xe6b   :  { %7033 = vmatmul.mubr.msk.f32.vlgmr.msra.gmra.mrb[26].mxu1 %vm427_vm3, %v2611_v6 }
 0xe6c   :  { %7036 = vmatpush3.msra.mxu1 %v6348_v7 }
 0xe6d   :  { %7452 = vmatprep.subr.bf16.mxu1 %v7451_v41 }
 0xf3a   :  { %v2681_v8 = vpop.f32.mrb[30].mxu0 }
 0xf3b   :  { %v7029_v9 = vpop.f32.mrb[31].mxu0  ;;  %7037 = vmatprep.mubr.msk.f32.mxu1 %vm427_vm3, %v2681_v8 }
 0xf3c   :  { %v6357_v9 = vld [vmem:[%s8727_s16] ss:$0 sm:$0xff] }
 0xf3e   :  { %v2754_v10 = vpop.f32.mrb[26].mxu1 }
 0xf3f   :  { %v7034_v11 = vpop.f32.mrb[27].mxu1  ;;  %7038 = vmatmul.mubr.msk.f32.vlgmr.msra.gmra.mrb[12].mxu1 %vm427_vm3, %v2754_v10 }
 0xf40   :  { %7454 = vmatpush3.bf16.msra.mxu1 %v7451_v41  ;;  %v6370_v41 = vld [vmem:[%s8747_s2 + $0x80] sm:$0xff] }
 0xf41   :  { %7456 = vmatprep.subr.bf16.mxu1 %v7455_v43 }
 0xf44   :  { %7458 = vmatpush3.bf16.msra.mxu1 %v7455_v43  ;;  %v7475_v43 = vpack.c.bf16 %v6371_v42, %v6370_v41  ;;  %v6395_v41 = vld [vmem:[%s8746_s5 + $0xb0] sm:$0xff]  ;;  %v6396_v42 = vld [vmem:[%s8746_s5 + $0xb8] sm:$0xff] }
 0xf45   :  { %7460 = vmatprep.subr.bf16.mxu1 %v7459_v46 }
 0xf48   :  { %7462 = vmatpush3.bf16.msra.mxu1 %v7459_v46 }
 0xf49   :  { %7464 = vmatprep.subr.bf16.mxu1 %v7463_v1 }
 0xf4c   :  { %7466 = vmatpush3.bf16.msra.mxu1 %v7463_v1 }
0x1012   :  { %v7039_v13 = vpop.f32.mrb[12].mxu1 }
0x1013   :  { %v2851_v14 = vadd.f32 %v7039_v13, %v6351_v12  ;;  %v2832_v15 = vpop.f32.mrb[13].mxu1 }
0x1014   :  { %v2850_v16 = vadd.f32 %v6351_v12, %v2832_v15 }
0x1015   :  { %v2853_v17 = vadd.f32 %v2851_v14, %v7886_v26 }
0x1016   :  { %v2852_v18 = vadd.f32 %v2850_v16, %v7884_v25  ;;  %v2899_v25 = vld [vmem:[%s8724_s13] sm:$0xff] }
0x1017   :  { %v2859_v19 = vsel %vm173_vm1, %v2853_v17, 0.0  ;;  %v7443_v35 = vpack.c.bf16 %v2900_v24, %v2899_v25  ;;  %v6378_v25 = vld [vmem:[%s8718_s7 + $0x80] sm:$0xff]  ;;  %v6379_v24 = vld [vmem:[%s8718_s7 + $0x88] sm:$0xff] }
0x1018   :  { %2860 = vadd.xlane.f32.xlu1 %v2859_v19  ;;  %v2856_v20 = vsel %vm173_vm1, %v2852_v18, 0.0 }
0x1019   :  { %2857 = vadd.xlane.f32.xlu0 %v2856_v20  ;;  %7444 = vmatprep.subr.bf16.mxu0 %v7443_v35 }
0x101a   :  { %7446 = vmatpush3.bf16.msra.mxu0 %v7443_v35  ;;  %v7483_v35 = vpack.c.bf16 %v6379_v24, %v6378_v25  ;;  %v6393_v24 = vld [vmem:[%s8746_s5 + $0xa0] sm:$0xff] }
0x101b   :  { %7448 = vmatprep.subr.bf16.mxu0 %v7447_v37 }
0x101c   :  { %7484 = vmatprep.subr.bf16.mxu1 %v7483_v35 }
0x101e   :  { %7450 = vmatpush3.bf16.msra.mxu0 %v7447_v37  ;;  %v7471_v37 = vpack.c.bf16 %v6365_v36, %v6364_v22  ;;  %v6401_v36 = vld [vmem:[%s8747_s2 + $0xa0] sm:$0xff] }
0x10a5   :  { %v2861_v21 = vpop.xlane.xlu1 %2860 }
0x10a6   :  { %v2864_v23 = vmul.f32 0.03125, %v2861_v21  ;;  %v2858_v27 = vpop.xlane.xlu0 %2857 }
0x10a7   :  { %v2863_v29 = vmul.f32 0.03125, %v2858_v27 }
0x10a8   :  { %v2866_v30 = vsub.f32 %v2853_v17, %v2864_v23 }
0x10a9   :  { %v2865_v31 = vsub.f32 %v2852_v18, %v2863_v29 }
0x10aa   :  { %v2868_v32 = vmul.f32 %v2866_v30, %v2866_v30 }
0x10ab   :  { %v2867_v33 = vmul.f32 %v2865_v31, %v2865_v31 }
0x10ac   :  { %v2872_v34 = vsel %vm173_vm1, %v2868_v32, 0.0 }
0x10ad   :  { %2873 = vadd.xlane.f32.xlu1 %v2872_v34  ;;  %v2869_v26 = vsel %vm173_vm1, %v2867_v33, 0.0  ;;  %v6362_v33 = vld [vmem:[%s8746_s5 + $0x80] sm:$0xff]  ;;  %v6363_v34 = vld [vmem:[%s8746_s5 + $0x88] sm:$0xff] }
0x10ae   :  { %2870 = vadd.xlane.f32.xlu0 %v2869_v26  ;;  %v7467_v26 = vpack.c.bf16 %v6363_v34, %v6362_v33 }
0x10b0   :  { %7468 = vmatprep.subr.bf16.mxu0 %v7467_v26 }
0x113a   :  { %v2874_v47 = vpop.xlane.xlu1 %2873 }
0x113b   :  { %v2876_v48 = vmul.f32 0.03125, %v2874_v47  ;;  %v2871_v49 = vpop.xlane.xlu0 %2870 }
0x113c   :  { %v2875_v50 = vmul.f32 0.03125, %v2871_v49 }
0x113d   :  { %v2878_v51 = vadd.f32 1e-05, %v2876_v48 }
0x113e   :  { %v2877_v52 = vadd.f32 1e-05, %v2875_v50 }
0x113f   :  { %7644 = vrsqrt.f32 %v2878_v51  ;;  %v6360_v51 = vld [vmem:[%s8728_s17] ss:$0 sm:$0xff] }
0x1140   :  { %7646 = vrsqrt.f32 %v2877_v52 }
0x1149   :  { %v7645_v53 = vpop.eup %7644 }
0x114a   :  { %v7647_v55 = vpop.eup %7646  ;;  %v2882_v56 = vmul.f32 %v7645_v53, %v2866_v30 }
0x114b   :  { %v2881_v57 = vmul.f32 %v7647_v55, %v2865_v31  ;;  %v6361_v55 = vld [vmem:[%s8729_s18] ss:$0 sm:$0xff] }
0x114c   :  { %v2890_v59 = vmul.f32 %v6352_v54, %v2882_v56 }
0x114d   :  { %v2889_v60 = vmul.f32 %v6352_v54, %v2881_v57 }
0x114e   :  { %v2898_v62 = vadd.f32 %v6353_v58, %v2890_v59  ;;  %v6373_v59 = vld [vmem:[%s8747_s2 + $0x98] sm:$0xff] }
0x114f   :  { %v2897_v61 = vadd.f32 %v6353_v58, %v2889_v60  ;;  %v6372_v58 = vld [vmem:[%s8747_s2 + $0x90] sm:$0xff] }
0x1151   :  { %7048 = vmatprep.mubr.msk.f32.mxu0 %vm173_vm1, %v2897_v61 }
0x1152   :  { %7049 = vmatmul.mubr.msk.f32.vlgmr.msra.gmra.mrb[32].mxu0 %vm173_vm1, %v2898_v62 }
0x1153   :  { %7470 = vmatpush3.bf16.msra.mxu0 %v7467_v26 }
0x1154   :  { %7472 = vmatprep.subr.bf16.mxu0 %v7471_v37 }
0x1157   :  { %7474 = vmatpush3.bf16.msra.mxu0 %v7471_v37  ;;  %v6402_v37 = vld [vmem:[%s8747_s2 + $0xa8] sm:$0xff] }
0x1158   :  { %7476 = vmatprep.subr.bf16.mxu0 %v7475_v43  ;;  %v7499_v38 = vpack.c.bf16 %v6402_v37, %v6401_v36 }
0x1225   :  { %v7050_v3 = vpop.f32.mrb[32].mxu0 }
0x1226   :  { %v2988_v4 = vadd.f32 %v7050_v3, %v6354_v2  ;;  %v2982_v5 = vpop.f32.mrb[33].mxu0 }
0x1227   :  { %v2983_v6 = vadd.f32 %v6354_v2, %v2982_v5  ;;  %v6375_v5 = vld [vmem:[%s8717_s6 + $0x4] ss:$0 sm:$0xff] }
0x1228   :  { %v2992_v8 = vmax.f32 %v2988_v4, 0.0 }
0x1229   :  { %v2991_v7 = vmax.f32 %v2983_v6, 0.0 }
0x122b   :  { %7067 = vmatprep.mubr.msk.f32.mxu1 %vm3008_vm4, %v2991_v7 }
0x122c   :  { %7068 = vmatmul.mubr.msk.f32.vlgmr.msra.gmra.mrb[28].mxu1 %vm3008_vm4, %v2992_v8  ;;  %v6367_v8 = vld [vmem:[%s8749_s26 + $0x4] ss:$0 sm:$0xff] }
0x122d   :  { %7486 = vmatpush3.bf16.msra.mxu1 %v7483_v35  ;;  %v6394_v35 = vld [vmem:[%s8746_s5 + $0xa8] sm:$0xff] }
0x122e   :  { %7488 = vmatprep.subr.bf16.mxu1 %v7487_v40  ;;  %v7491_v22 = vpack.c.bf16 %v6394_v35, %v6393_v24  ;;  %v6428_v24 = vld [vmem:[%s8746_s5 + $0xc0] sm:$0xff]  ;;  %v6429_v35 = vld [vmem:[%s8746_s5 + $0xc8] sm:$0xff] }
0x1231   :  { %7490 = vmatpush3.bf16.msra.mxu1 %v7487_v40 }
0x1232   :  { %7113 = vmatprep.subr.mxu1 %v7716_v28 }
0x12ff   :  { %v7069_v10 = vpop.f32.mrb[28].mxu1 }
0x1300   :  { %v3087_v11 = vadd.f32 %v7069_v10, %v6357_v9  ;;  %v3081_v12 = vpop.f32.mrb[29].mxu1 }
0x1301   :  { %v3082_v13 = vadd.f32 %v6357_v9, %v3081_v12 }
0x1302   :  { %v3091_v14 = vadd.f32 %v3087_v11, %v2898_v62  ;;  %v7479_v62 = vpack.c.bf16 %v6373_v59, %v6372_v58 }
0x1303   :  { %v3090_v15 = vadd.f32 %v3082_v13, %v2897_v61 }
0x1304   :  { %v3097_v16 = vsel %vm173_vm1, %v3091_v14, 0.0 }
0x1305   :  { %3098 = vadd.xlane.f32.xlu1 %v3097_v16  ;;  %v3094_v17 = vsel %vm173_vm1, %v3090_v15, 0.0 }
0x1306   :  { %3095 = vadd.xlane.f32.xlu0 %v3094_v17 }
0x1392   :  { %v3099_v18 = vpop.xlane.xlu1 %3098 }
0x1393   :  { %v3101_v19 = vmul.f32 0.03125, %v3099_v18  ;;  %v3096_v20 = vpop.xlane.xlu0 %3095 }
0x1394   :  { %v3100_v21 = vmul.f32 0.03125, %v3096_v20 }
0x1395   :  { %v3103_v23 = vsub.f32 %v3091_v14, %v3101_v19 }
0x1396   :  { %v3102_v27 = vsub.f32 %v3090_v15, %v3100_v21 }
0x1397   :  { %v3105_v29 = vmul.f32 %v3103_v23, %v3103_v23 }
0x1398   :  { %v3104_v30 = vmul.f32 %v3102_v27, %v3102_v27 }
0x1399   :  { %v3109_v31 = vsel %vm173_vm1, %v3105_v29, 0.0 }
0x139a   :  { %3110 = vadd.xlane.f32.xlu1 %v3109_v31  ;;  %v3106_v32 = vsel %vm173_vm1, %v3104_v30, 0.0 }
0x139b   :  { %3107 = vadd.xlane.f32.xlu0 %v3106_v32 }
0x1427   :  { %v3111_v44 = vpop.xlane.xlu1 %3110 }
0x1428   :  { %v3113_v45 = vmul.f32 0.03125, %v3111_v44  ;;  %v3108_v46 = vpop.xlane.xlu0 %3107 }
0x1429   :  { %v3112_v47 = vmul.f32 0.03125, %v3108_v46  ;;  %v6403_v46 = vld [vmem:[%s8747_s2 + $0xb0] sm:$0xff] }
0x142a   :  { %v3115_v48 = vadd.f32 1e-05, %v3113_v45  ;;  %v7495_v45 = vpack.c.bf16 %v6396_v42, %v6395_v41  ;;  %v6431_v41 = vld [vmem:[%s8746_s5 + $0xd8] sm:$0xff] }
0x142b   :  { %v3114_v49 = vadd.f32 1e-05, %v3112_v47  ;;  %v6404_v47 = vld [vmem:[%s8747_s2 + $0xb8] sm:$0xff] }
0x142c   :  { %7648 = vrsqrt.f32 %v3115_v48  ;;  %v6409_v48 = vld [vmem:[%s8718_s7 + $0xa0] sm:$0xff] }
0x142d   :  { %7650 = vrsqrt.f32 %v3114_v49  ;;  %v6410_v49 = vld [vmem:[%s8718_s7 + $0xa8] sm:$0xff] }
0x1436   :  { %v7649_v50 = vpop.eup %7648 }
0x1437   :  { %v7651_v52 = vpop.eup %7650  ;;  %v3119_v53 = vmul.f32 %v7649_v50, %v3103_v23 }
0x1438   :  { %v3118_v54 = vmul.f32 %v7651_v52, %v3102_v27  ;;  %v7503_v52 = vpack.c.bf16 %v6404_v47, %v6403_v46  ;;  %v6445_v46 = vld [vmem:[%s8718_s7 + $0xc8] sm:$0xff] }
0x1439   :  { %v3127_v56 = vmul.f32 %v6360_v51, %v3119_v53  ;;  %v7507_v53 = vpack.c.bf16 %v6410_v49, %v6409_v48  ;;  %v6446_v48 = vld [vmem:[%s8718_s7 + $0xd0] sm:$0xff]  ;;  %v6447_v49 = vld [vmem:[%s8718_s7 + $0xd8] sm:$0xff] }
0x143a   :  { %v3126_v57 = vmul.f32 %v6360_v51, %v3118_v54  ;;  %v6411_v54 = vld [vmem:[%s8718_s7 + $0xb0] sm:$0xff] }
0x143b   :  { %v8304_v61 = vadd.f32 %v6361_v55, %v3127_v56 }
0x143c   :  { %v8302_v60 = vadd.f32 %v6361_v55, %v3126_v57  ;;  %v6412_v55 = vld [vmem:[%s8718_s7 + $0xb8] sm:$0xff] }
0x143d   :  { %v7511_v56 = vpack.c.bf16 %v6412_v55, %v6411_v54  ;;  %v6436_v54 = vld [vmem:[%s8747_s2 + $0xc0] sm:$0xff]  ;;  %v6437_v55 = vld [vmem:[%s8747_s2 + $0xc8] sm:$0xff] }
0x143e   :  { %7078 = vmatprep.mubr.msk.f32.mxu0 %vm173_vm1, %v8302_v60  ;;  %7100 = vmatprep.mubr.msk.f32.mxu1 %vm173_vm1, %v8302_v60 }
0x143f   :  { %7079 = vmatmul.mubr.msk.f32.vlgmr.msra.gmra.mrb[34].mxu0 %vm173_vm1, %v8304_v61  ;;  %7101 = vmatmul.mubr.msk.f32.vlgmr.msra.gmra.mrb[30].mxu1 %vm173_vm1, %v8304_v61 }
0x1440   :  { %7478 = vmatpush3.bf16.msra.mxu0 %v7475_v43  ;;  %7089 = vmatprep.mubr.msk.f32.mxu0 %vm173_vm1, %v8302_v60 }
0x1441   :  { %7480 = vmatprep.subr.bf16.mxu0 %v7479_v62  ;;  %7115 = vmatprep.mubr.msk.f32.mxu1 %vm7717_vm2, %v7716_v28 }
0x1444   :  { %7482 = vmatpush3.bf16.msra.mxu0 %v7479_v62 }
0x1445   :  { %7103 = vmatprep.subr.mxu0 %v7716_v28 }
0x1447   :  { %7090 = vmatmul.mubr.msk.f32.vlgmr.msra.gmra.mrb[36].mxu0 %vm173_vm1, %v8304_v61 }
0x1448   :  { %7105 = vmatprep.mubr.msk.f32.mxu0 %vm7717_vm2, %v7716_v28 }
0x1512   :  { %v7080_v0 = vpop.f32.mrb[34].mxu0  ;;  %v7102_v1 = vpop.f32.mrb[30].mxu1 }
0x1513   :  { %v3221_v2 = vpop.f32.mrb[35].mxu0  ;;  %v3397_v3 = vpop.f32.mrb[31].mxu1  ;;  %v3227_v12 = vadd.f32 %v7080_v0, %v6367_v8  ;;  %v3403_v13 = vadd.f32 %v7102_v1, %v6383_v63  ;;  %v6406_v1 = vld [vmem:[%s8717_s6 + $0x5] ss:$0 sm:$0xff] }
0x1514   :  { %v3398_v4 = vadd.f32 %v6383_v63, %v3397_v3  ;;  %v3222_v10 = vadd.f32 %v6367_v8, %v3221_v2 }
0x1516   :  { %7114 = vmatpush3.msra.mxu1 %v3398_v4  ;;  %v6398_v4 = vld [vmem:[%s8749_s26 + $0x5] ss:$0 sm:$0xff] }
0x1517   :  { %7492 = vmatprep.subr.bf16.mxu1 %v7491_v22 }
0x151a   :  { %v7091_v6 = vpop.f32.mrb[36].mxu0 }
0x151b   :  { %v3309_v7 = vpop.f32.mrb[37].mxu0  ;;  %v3315_v11 = vadd.f32 %v7091_v6, %v6375_v5  ;;  %v6414_v6 = vld [vmem:[%s8719_s8 + $0x5] ss:$0 sm:$0xff] }
0x151c   :  { %v3310_v9 = vadd.f32 %v6375_v5, %v3309_v7 }
0x151e   :  { %7104 = vmatpush3.xpose.msk.msra.mxu0 %vm427_vm3, %v3310_v9 }
0x151f   :  { %7108 = vmatprep.subr.mxu0 %v7716_v28 }
0x1521   :  { %7106 = vmatmul.mubr.msk.f32.vlgmr.msra.gmra.mrb[38].mxu0 %vm427_vm3, %v3222_v10 }
0x1522   :  { %7109 = vmatpush3.xpose.msk.msra.mxu0 %vm427_vm3, %v3315_v11  ;;  %7110 = vmatprep.mubr.msk.f32.mxu0 %vm7717_vm2, %v7716_v28 }
0x1523   :  { %7118 = vmatprep.subr.mxu0 %v7716_v28 }
0x1525   :  { %7111 = vmatmul.mubr.msk.f32.vlgmr.msra.gmra.mrb[40].mxu0 %vm427_vm3, %v3227_v12 }
0x1526   :  { %7119 = vmatpush3.msra.mxu0 %v3403_v13  ;;  %7120 = vmatprep.mubr.msk.f32.mxu0 %vm7717_vm2, %v7716_v28 }
0x1527   :  { %7500 = vmatprep.subr.bf16.mxu0 %v7499_v38 }
0x15f4   :  { %v3478_v14 = vpop.f32.mrb[38].mxu0 }
0x15f5   :  { %v3558_v15 = vmul.f32 0.35355338, %v3478_v14  ;;  %v7107_v16 = vpop.f32.mrb[39].mxu0 }
0x15f7   :  { %v3560_v17 = vsel %vm427_vm3, %v3558_v15, -inf }
0x15f8   :  { %3561 = vmax.xlane.f32.xlu1 %v3560_v17  ;;  %v3554_v18 = vpop.f32.mrb[40].mxu0 }
0x15f9   :  { %v3559_v19 = vmul.f32 0.35355338, %v3554_v18  ;;  %v7112_v20 = vpop.f32.mrb[41].mxu0 }
0x15fb   :  { %v3563_v21 = vsel %vm427_vm3, %v3559_v19, -inf }
0x15fc   :  { %3564 = vmax.xlane.f32.xlu0 %v3563_v21 }
0x1685   :  { %v3562_v23 = vpop.xlane.xlu1 %3561 }
0x1686   :  { %v3566_v27 = vsub.f32 %v3558_v15, %v3562_v23 }
0x1688   :  { %v3568_v29 = vmul.f32 1.442695, %v3566_v27 }
0x1689   :  { %v3565_v30 = vpop.xlane.xlu0 %3564 }
0x168a   :  { %7652 = vpow2.f32 %v3568_v29  ;;  %v3567_v31 = vsub.f32 %v3559_v19, %v3565_v30 }
0x168c   :  { %v3570_v32 = vmul.f32 1.442695, %v3567_v31 }
0x168e   :  { %7654 = vpow2.f32 %v3570_v32 }
0x1694   :  { %v7653_v33 = vpop.eup %7652 }
0x1695   :  { %v3572_v34 = vsel %vm427_vm3, %v7653_v33, 0.0 }
0x1696   :  { %3573 = vadd.xlane.f32.xlu1 %v3572_v34 }
0x1698   :  { %v7655_v26 = vpop.eup %7654 }
0x1699   :  { %v3575_v25 = vsel %vm427_vm3, %v7655_v26, 0.0 }
0x169a   :  { %3576 = vadd.xlane.f32.xlu0 %v3575_v25 }
0x1723   :  { %v3574_v39 = vpop.xlane.xlu1 %3573 }
0x1724   :  { %7656 = vrcp.f32 %v3574_v39 }
0x1727   :  { %v3577_v40 = vpop.xlane.xlu0 %3576 }
0x1728   :  { %7658 = vrcp.f32 %v3577_v40  ;;  %v6430_v40 = vld [vmem:[%s8746_s5 + $0xd0] sm:$0xff] }
0x172e   :  { %v7657_v43 = vpop.eup %7656 }
0x172f   :  { %v3580_v44 = vmul.f32 %v7657_v43, %v7653_v33 }
0x1731   :  { %7116 = vmatmul.mubr.msk.f32.vlgmr.msra.gmra.mrb[32].mxu1 %vm427_vm3, %v3580_v44  ;;  %v7519_v44 = vpack.c.bf16 %v6431_v41, %v6430_v40  ;;  %v6463_v41 = vld [vmem:[%s8746_s5 + $0xf0] sm:$0xff] }
0x1732   :  { %v7659_v50 = vpop.eup %7658  ;;  %7494 = vmatpush3.bf16.msra.mxu1 %v7491_v22  ;;  %7131 = vmatprep.mubr.msk.f32.mxu1 %vm173_vm1, %v8302_v60  ;;  %v7515_v22 = vpack.c.bf16 %v6429_v35, %v6428_v24 }
0x1733   :  { %v3581_v51 = vmul.f32 %v7659_v50, %v7655_v26  ;;  %7496 = vmatprep.subr.bf16.mxu1 %v7495_v45  ;;  %v7535_v50 = vpack.c.bf16 %v6447_v49, %v6446_v48  ;;  %v6477_v48 = vld [vmem:[%s8718_s7 + $0xe0] sm:$0xff]  ;;  %v6478_v49 = vld [vmem:[%s8718_s7 + $0xe8] sm:$0xff] }
0x1735   :  { %7121 = vmatmul.mubr.msk.f32.vlgmr.msra.gmra.mrb[42].mxu0 %vm427_vm3, %v3581_v51  ;;  %v6423_v51 = vld [vmem:[%s8720_s9 + $0x28] sm:$0xff] }
0x1736   :  { %7498 = vmatpush3.bf16.msra.mxu1 %v7495_v45  ;;  %7502 = vmatpush3.bf16.msra.mxu0 %v7499_v38  ;;  %v6444_v45 = vld [vmem:[%s8718_s7 + $0xc0] sm:$0xff] }
0x1737   :  { %7142 = vmatprep.mubr.msk.f32.mxu0 %vm173_vm1, %v8302_v60  ;;  %7504 = vmatprep.subr.bf16.mxu0 %v7503_v52  ;;  %v7531_v47 = vpack.c.bf16 %v6445_v46, %v6444_v45 }
0x1738   :  { %7508 = vmatprep.subr.bf16.mxu1 %v7507_v53 }
0x1739   :  { %7132 = vmatmul.mubr.msk.f32.vlgmr.msra.gmra.mrb[34].mxu1 %vm173_vm1, %v8304_v61 }
0x173a   :  { %7506 = vmatpush3.bf16.msra.mxu0 %v7503_v52  ;;  %7510 = vmatpush3.bf16.msra.mxu1 %v7507_v53  ;;  %v6392_v52 = vld [vmem:[%s8720_s9 + $0x20] sm:$0xff] }
0x173b   :  { %7153 = vmatprep.mubr.msk.f32.mxu1 %vm173_vm1, %v8302_v60  ;;  %7512 = vmatprep.subr.bf16.mxu1 %v7511_v56 }
0x173c   :  { %7156 = vmatprep.subr.mxu0 %v7716_v28 }
0x173d   :  { %7143 = vmatmul.mubr.msk.f32.vlgmr.msra.gmra.mrb[44].mxu0 %vm173_vm1, %v8304_v61 }
0x173e   :  { %7514 = vmatpush3.bf16.msra.mxu1 %v7511_v56  ;;  %7158 = vmatprep.mubr.msk.f32.mxu0 %vm7717_vm2, %v7716_v28 }
0x173f   :  { %7166 = vmatprep.subr.mxu1 %v7716_v28 }
0x1741   :  { %7154 = vmatmul.mubr.msk.f32.vlgmr.msra.gmra.mrb[36].mxu1 %vm173_vm1, %v8304_v61 }
0x1742   :  { %7168 = vmatprep.mubr.msk.f32.mxu1 %vm7717_vm2, %v7716_v28 }
0x1804   :  { %v8402_v57 = vpop.f32.mrb[32].mxu1 }
0x1805   :  { %v7117_v58 = vpop.f32.mrb[33].mxu1 }
0x1806   :  { %v7523_v58 = vpack.c.bf16 %v6437_v55, %v6436_v54  ;;  %v6469_v54 = vld [vmem:[%s8747_s2 + $0xe0] sm:$0xff]  ;;  %v6470_v55 = vld [vmem:[%s8747_s2 + $0xe8] sm:$0xff] }
0x1808   :  { %v8404_v59 = vpop.f32.mrb[42].mxu0 }
0x1809   :  { %v7122_v62 = vpop.f32.mrb[43].mxu0 }
0x180c   :  { %v7133_v63 = vpop.f32.mrb[34].mxu1 }
0x180d   :  { %v3809_v0 = vpop.f32.mrb[35].mxu1  ;;  %v3815_v12 = vadd.f32 %v7133_v63, %v6398_v4 }
0x180e   :  { %v3810_v8 = vadd.f32 %v6398_v4, %v3809_v0  ;;  %v6438_v0 = vld [vmem:[%s8747_s2 + $0xd0] sm:$0xff] }
0x1810   :  { %v7144_v2 = vpop.f32.mrb[44].mxu0 }
0x1811   :  { %v3897_v3 = vpop.f32.mrb[45].mxu0  ;;  %v3903_v10 = vadd.f32 %v7144_v2, %v6406_v1 }
0x1812   :  { %v3898_v5 = vadd.f32 %v6406_v1, %v3897_v3  ;;  %v6439_v1 = vld [vmem:[%s8747_s2 + $0xd8] sm:$0xff] }
0x1813   :  { %v7527_v2 = vpack.c.bf16 %v6439_v1, %v6438_v0 }
0x1814   :  { %v7155_v7 = vpop.f32.mrb[36].mxu1  ;;  %7157 = vmatpush3.xpose.msk.msra.mxu0 %vm427_vm3, %v3898_v5 }
0x1815   :  { %v3985_v9 = vpop.f32.mrb[37].mxu1  ;;  %7161 = vmatprep.subr.mxu0 %v7716_v28  ;;  %v3991_v13 = vadd.f32 %v7155_v7, %v6414_v6  ;;  %v6433_v7 = vld [vmem:[%s8749_s26 + $0x6] ss:$0 sm:$0xff] }
0x1816   :  { %v3986_v11 = vadd.f32 %v6414_v6, %v3985_v9 }
0x1817   :  { %7159 = vmatmul.mubr.msk.f32.vlgmr.msra.gmra.mrb[46].mxu0 %vm427_vm3, %v3810_v8 }
0x1818   :  { %7162 = vmatpush3.xpose.msk.msra.mxu0 %vm427_vm3, %v3903_v10  ;;  %7167 = vmatpush3.msra.mxu1 %v3986_v11  ;;  %v6449_v10 = vld [vmem:[%s8719_s8 + $0x6] ss:$0 sm:$0xff] }
0x1819   :  { %7163 = vmatprep.mubr.msk.f32.mxu0 %vm7717_vm2, %v7716_v28  ;;  %7171 = vmatprep.subr.mxu0 %v7716_v28 }
0x181a   :  { %7176 = vmatprep.subr.mxu1 %v6423_v51 }
0x181b   :  { %7164 = vmatmul.mubr.msk.f32.vlgmr.msra.gmra.mrb[48].mxu0 %vm427_vm3, %v3815_v12 }
0x181c   :  { %7172 = vmatpush3.msra.mxu0 %v3991_v13  ;;  %7173 = vmatprep.mubr.msk.f32.mxu0 %vm7717_vm2, %v7716_v28 }
0x181d   :  { %7516 = vmatprep.subr.bf16.mxu0 %v7515_v22 }
0x18ea   :  { %v4066_v14 = vpop.f32.mrb[46].mxu0 }
0x18eb   :  { %v4146_v15 = vmul.f32 0.35355338, %v4066_v14  ;;  %v7160_v16 = vpop.f32.mrb[47].mxu0 }
0x18ed   :  { %v4148_v17 = vsel %vm427_vm3, %v4146_v15, -inf }
0x18ee   :  { %4149 = vmax.xlane.f32.xlu0 %v4148_v17  ;;  %v4142_v18 = vpop.f32.mrb[48].mxu0 }
0x18ef   :  { %v4147_v19 = vmul.f32 0.35355338, %v4142_v18  ;;  %v7165_v20 = vpop.f32.mrb[49].mxu0 }
0x18f1   :  { %v4151_v21 = vsel %vm427_vm3, %v4147_v19, -inf }
0x18f2   :  { %4152 = vmax.xlane.f32.xlu1 %v4151_v21 }
0x197b   :  { %v4150_v23 = vpop.xlane.xlu0 %4149 }
0x197c   :  { %v4154_v27 = vsub.f32 %v4146_v15, %v4150_v23 }
0x197e   :  { %v4156_v29 = vmul.f32 1.442695, %v4154_v27 }
0x197f   :  { %v4153_v30 = vpop.xlane.xlu1 %4152 }
0x1980   :  { %7660 = vpow2.f32 %v4156_v29  ;;  %v4155_v31 = vsub.f32 %v4147_v19, %v4153_v30 }
0x1982   :  { %v4158_v32 = vmul.f32 1.442695, %v4155_v31 }
0x1984   :  { %7662 = vpow2.f32 %v4158_v32 }
0x198a   :  { %v7661_v33 = vpop.eup %7660 }
0x198b   :  { %v4160_v34 = vsel %vm427_vm3, %v7661_v33, 0.0 }
0x198c   :  { %4161 = vadd.xlane.f32.xlu0 %v4160_v34 }
0x198e   :  { %v7663_v26 = vpop.eup %7662 }
0x198f   :  { %v4163_v25 = vsel %vm427_vm3, %v7663_v26, 0.0 }
0x1990   :  { %4164 = vadd.xlane.f32.xlu1 %v4163_v25 }
0x1a19   :  { %v4162_v36 = vpop.xlane.xlu0 %4161 }
0x1a1a   :  { %7664 = vrcp.f32 %v4162_v36  ;;  %v6462_v36 = vld [vmem:[%s8746_s5 + $0xe8] sm:$0xff] }
0x1a1d   :  { %v4165_v37 = vpop.xlane.xlu1 %4164 }
0x1a1e   :  { %7666 = vrcp.f32 %v4165_v37 }
0x1a24   :  { %v7665_v38 = vpop.eup %7664 }
0x1a25   :  { %v4168_v39 = vmul.f32 %v7665_v38, %v7661_v33  ;;  %v6458_v38 = vld [vmem:[%s8720_s9 + $0x30] sm:$0xff] }
0x1a27   :  { %7169 = vmatmul.mubr.msk.f32.vlgmr.msra.gmra.mrb[38].mxu1 %vm427_vm3, %v4168_v39 }
0x1a28   :  { %v7667_v42 = vpop.eup %7666  ;;  %7177 = vmatpush3.msra.mxu1 %v6423_v51  ;;  %v6479_v51 = vld [vmem:[%s8718_s7 + $0xf0] sm:$0xff] }
0x1a29   :  { %v4169_v43 = vmul.f32 %v7667_v42, %v7663_v26  ;;  %7181 = vmatprep.subr.mxu1 %v6392_v52  ;;  %v6464_v42 = vld [vmem:[%s8746_s5 + $0xf8] sm:$0xff] }
0x1a2a   :  { %v7543_v46 = vpack.c.bf16 %v6464_v42, %v6463_v41  ;;  %v6491_v41 = vld [vmem:[%s8720_s9 + $0x38] sm:$0xff] }
0x1a2b   :  { %7174 = vmatmul.mubr.msk.f32.vlgmr.msra.gmra.mrb[50].mxu0 %vm427_vm3, %v4169_v43 }
0x1a2c   :  { %7518 = vmatpush3.bf16.msra.mxu0 %v7515_v22  ;;  %7194 = vmatprep.mubr.msk.f32.mxu0 %vm173_vm1, %v8302_v60  ;;  %v6461_v22 = vld [vmem:[%s8746_s5 + $0xe0] sm:$0xff] }
0x1a2d   :  { %7520 = vmatprep.subr.bf16.mxu0 %v7519_v44  ;;  %v7539_v37 = vpack.c.bf16 %v6462_v36, %v6461_v22 }
0x1a30   :  { %7522 = vmatpush3.bf16.msra.mxu0 %v7519_v44 }
0x1a31   :  { %7532 = vmatprep.subr.bf16.mxu0 %v7531_v47 }
0x1a33   :  { %7195 = vmatmul.mubr.msk.f32.vlgmr.msra.gmra.mrb[52].mxu0 %vm173_vm1, %v8304_v61 }
0x1a34   :  { %7534 = vmatpush3.bf16.msra.mxu0 %v7531_v47  ;;  %7216 = vmatprep.mubr.msk.f32.mxu0 %vm173_vm1, %v8302_v60 }
0x1a35   :  { %7536 = vmatprep.subr.bf16.mxu0 %v7535_v50 }
0x1a38   :  { %7538 = vmatpush3.bf16.msra.mxu0 %v7535_v50  ;;  %v7555_v50 = vpack.c.bf16 %v6478_v49, %v6477_v48 }
0x1a39   :  { %7224 = vmatprep.subr.mxu0 %v7716_v28 }
0x1a3b   :  { %7217 = vmatmul.mubr.msk.f32.vlgmr.msra.gmra.mrb[54].mxu0 %vm173_vm1, %v8304_v61 }
0x1a3c   :  { %7226 = vmatprep.mubr.msk.f32.mxu0 %vm7717_vm2, %v7716_v28 }
0x1afa   :  { %v4239_v53 = vpop.f32.mrb[38].mxu1 }
0x1afb   :  { %v7170_v56 = vpop.f32.mrb[39].mxu1  ;;  %7178 = vmatprep.mubr.msk.f32.mxu1 %vm427_vm3, %v4239_v53 }
0x1afc   :  { %v7547_v56 = vpack.c.bf16 %v6470_v55, %v6469_v54 }
0x1afe   :  { %v4312_v62 = vpop.f32.mrb[50].mxu0 }
0x1aff   :  { %v7175_v63 = vpop.f32.mrb[51].mxu0  ;;  %7179 = vmatmul.mubr.msk.f32.vlgmr.msra.gmra.mrb[40].mxu1 %vm427_vm3, %v4312_v62  ;;  %v6472_v62 = vld [vmem:[%s8747_s2 + $0xf8] sm:$0xff] }
0x1b00   :  { %7182 = vmatpush3.msra.mxu1 %v6392_v52  ;;  %7183 = vmatprep.mubr.msk.f32.mxu1 %vm427_vm3, %v8402_v57  ;;  %v6480_v52 = vld [vmem:[%s8718_s7 + $0xf8] sm:$0xff] }
0x1b01   :  { %7524 = vmatprep.subr.bf16.mxu1 %v7523_v58  ;;  %v7559_v53 = vpack.c.bf16 %v6480_v52, %v6479_v51 }
0x1b06   :  { %v7196_v3 = vpop.f32.mrb[52].mxu0 }
0x1b07   :  { %v4559_v4 = vpop.f32.mrb[53].mxu0  ;;  %7184 = vmatmul.mubr.msk.f32.vlgmr.msra.gmra.mrb[40].mxu1 %vm427_vm3, %v8404_v59  ;;  %v6441_v59 = vld [vmem:[%s8717_s6 + $0x6] ss:$0 sm:$0xff]  ;;  %v4565_v12 = vadd.f32 %v7196_v3, %v6433_v7 }
0x1b08   :  { %7526 = vmatpush3.bf16.msra.mxu1 %v7523_v58  ;;  %7205 = vmatprep.mubr.msk.f32.mxu1 %vm173_vm1, %v8302_v60  ;;  %v4560_v13 = vadd.f32 %v6433_v7, %v4559_v4  ;;  %v6471_v58 = vld [vmem:[%s8747_s2 + $0xf0] sm:$0xff] }
0x1b09   :  { %7528 = vmatprep.subr.bf16.mxu1 %v7527_v2 }
0x1b0c   :  { %7530 = vmatpush3.bf16.msra.mxu1 %v7527_v2  ;;  %v7551_v2 = vpack.c.bf16 %v6472_v62, %v6471_v58 }
0x1b0d   :  { %7219 = vmatprep.subr.mxu1 %v7716_v28 }
0x1b0e   :  { %v7218_v57 = vpop.f32.mrb[54].mxu0 }
0x1b0f   :  { %7206 = vmatmul.mubr.msk.f32.vlgmr.msra.gmra.mrb[42].mxu1 %vm173_vm1, %v8304_v61  ;;  %v4735_v5 = vpop.f32.mrb[55].mxu0  ;;  %v4741_v14 = vadd.f32 %v7218_v57, %v6449_v10 }
0x1b10   :  { %7221 = vmatprep.mubr.msk.f32.mxu1 %vm7717_vm2, %v7716_v28  ;;  %v4736_v15 = vadd.f32 %v6449_v10, %v4735_v5  ;;  %v6482_v5 = vld [vmem:[%s8719_s8 + $0x7] ss:$0 sm:$0xff] }
0x1be2   :  { %v7207_v6 = vpop.f32.mrb[42].mxu1 }
0x1be3   :  { %v4653_v8 = vadd.f32 %v7207_v6, %v6441_v59  ;;  %v4647_v9 = vpop.f32.mrb[43].mxu1 }
0x1be4   :  { %v4648_v11 = vadd.f32 %v6441_v59, %v4647_v9  ;;  %v6474_v9 = vld [vmem:[%s8717_s6 + $0x7] ss:$0 sm:$0xff] }
0x1be5   :  { %7225 = vmatpush3.xpose.msk.msra.mxu0 %vm427_vm3, %v4653_v8 }
0x1be6   :  { %7220 = vmatpush3.xpose.msk.msra.mxu1 %vm427_vm3, %v4648_v11  ;;  %7234 = vmatprep.subr.mxu0 %v7716_v28 }
0x1be7   :  { %7229 = vmatprep.subr.mxu1 %v7716_v28 }
0x1be8   :  { %7227 = vmatmul.mubr.msk.f32.vlgmr.msra.gmra.mrb[56].mxu0 %vm427_vm3, %v4565_v12  ;;  %v6466_v12 = vld [vmem:[%s8749_s26 + $0x7] ss:$0 sm:$0xff] }
0x1be9   :  { %7222 = vmatmul.mubr.msk.f32.vlgmr.msra.gmra.mrb[44].mxu1 %vm427_vm3, %v4560_v13  ;;  %7235 = vmatpush3.msra.mxu0 %v4741_v14 }
0x1bea   :  { %7230 = vmatpush3.msra.mxu1 %v4736_v15  ;;  %7236 = vmatprep.mubr.msk.f32.mxu0 %vm7717_vm2, %v7716_v28 }
0x1beb   :  { %7231 = vmatprep.mubr.msk.f32.mxu1 %vm7717_vm2, %v7716_v28  ;;  %7540 = vmatprep.subr.bf16.mxu0 %v7539_v37 }
0x1bec   :  { %7239 = vmatprep.subr.mxu1 %v6458_v38 }
0x1cbb   :  { %v4892_v16 = vpop.f32.mrb[56].mxu0 }
0x1cbc   :  { %v4897_v17 = vmul.f32 0.35355338, %v4892_v16  ;;  %v4816_v18 = vpop.f32.mrb[44].mxu1  ;;  %v7228_v19 = vpop.f32.mrb[57].mxu0 }
0x1cbd   :  { %v4896_v20 = vmul.f32 0.35355338, %v4816_v18  ;;  %v7223_v21 = vpop.f32.mrb[45].mxu1 }
0x1cbe   :  { %v4901_v23 = vsel %vm427_vm3, %v4897_v17, -inf }
0x1cbf   :  { %4902 = vmax.xlane.f32.xlu1 %v4901_v23  ;;  %v4898_v27 = vsel %vm427_vm3, %v4896_v20, -inf }
0x1cc0   :  { %4899 = vmax.xlane.f32.xlu0 %v4898_v27 }
0x1d4c   :  { %v4903_v29 = vpop.xlane.xlu1 %4902 }
0x1d4d   :  { %v4905_v30 = vsub.f32 %v4897_v17, %v4903_v29  ;;  %v4900_v31 = vpop.xlane.xlu0 %4899 }
0x1d4e   :  { %v4904_v32 = vsub.f32 %v4896_v20, %v4900_v31 }
0x1d4f   :  { %v4908_v33 = vmul.f32 1.442695, %v4905_v30 }
0x1d50   :  { %v4906_v34 = vmul.f32 1.442695, %v4904_v32 }
0x1d51   :  { %7668 = vpow2.f32 %v4908_v33 }
0x1d52   :  { %7670 = vpow2.f32 %v4906_v34 }
0x1d5b   :  { %v7669_v26 = vpop.eup %7668 }
0x1d5c   :  { %v7671_v25 = vpop.eup %7670  ;;  %v4913_v24 = vsel %vm427_vm3, %v7669_v26, 0.0 }
0x1d5d   :  { %4914 = vadd.xlane.f32.xlu1 %v4913_v24  ;;  %v4910_v35 = vsel %vm427_vm3, %v7671_v25, 0.0 }
0x1d5e   :  { %4911 = vadd.xlane.f32.xlu0 %v4910_v35 }
0x1dea   :  { %v4915_v39 = vpop.xlane.xlu1 %4914 }
0x1deb   :  { %7672 = vrcp.f32 %v4915_v39  ;;  %v4912_v40 = vpop.xlane.xlu0 %4911 }
0x1dec   :  { %7674 = vrcp.f32 %v4912_v40 }
0x1df5   :  { %v7673_v43 = vpop.eup %7672 }
0x1df6   :  { %v7675_v44 = vpop.eup %7674  ;;  %v4919_v45 = vmul.f32 %v7673_v43, %v7669_v26 }
0x1df7   :  { %v4918_v47 = vmul.f32 %v7675_v44, %v7671_v25 }
0x1df8   :  { %7237 = vmatmul.mubr.msk.f32.vlgmr.msra.gmra.mrb[58].mxu0 %vm427_vm3, %v4919_v45 }
0x1df9   :  { %7542 = vmatpush3.bf16.msra.mxu0 %v7539_v37  ;;  %7232 = vmatmul.mubr.msk.f32.vlgmr.msra.gmra.mrb[46].mxu1 %vm427_vm3, %v4918_v47 }
0x1dfa   :  { %7252 = vmatprep.mubr.msk.f32.mxu0 %vm173_vm1, %v8302_v60  ;;  %7544 = vmatprep.subr.bf16.mxu0 %v7543_v46 }
0x1dfb   :  { %7240 = vmatpush3.msra.mxu1 %v6458_v38 }
0x1dfc   :  { %7548 = vmatprep.subr.bf16.mxu1 %v7547_v56 }
0x1dfd   :  { %7546 = vmatpush3.bf16.msra.mxu0 %v7543_v46  ;;  %v6495_v46 = vld [vmem:[%s8721_s10 + $0x1] ss:$0 sm:$0xff] }
0x1dfe   :  { %7556 = vmatprep.subr.bf16.mxu0 %v7555_v50 }
0x1e00   :  { %7253 = vmatmul.mubr.msk.f32.vlgmr.msra.gmra.mrb[60].mxu0 %vm173_vm1, %v8304_v61 }
0x1e01   :  { %7558 = vmatpush3.bf16.msra.mxu0 %v7555_v50  ;;  %7274 = vmatprep.mubr.msk.f32.mxu0 %vm173_vm1, %v8302_v60 }
0x1e02   :  { %7560 = vmatprep.subr.bf16.mxu0 %v7559_v53 }
0x1e05   :  { %7562 = vmatpush3.bf16.msra.mxu0 %v7559_v53 }
0x1e06   :  { %7287 = vmatprep.subr.mxu0 %v7716_v28 }
0x1e08   :  { %7275 = vmatmul.mubr.msk.f32.vlgmr.msra.gmra.mrb[62].mxu0 %vm173_vm1, %v8304_v61 }
0x1e09   :  { %7289 = vmatprep.mubr.msk.f32.mxu0 %vm7717_vm2, %v7716_v28 }
0x1ecb   :  { %v5062_v63 = vpop.f32.mrb[58].mxu0 }
0x1ecc   :  { %v4989_v0 = vpop.f32.mrb[46].mxu1  ;;  %v7238_v1 = vpop.f32.mrb[59].mxu0 }
0x1ecd   :  { %v7233_v3 = vpop.f32.mrb[47].mxu1  ;;  %7241 = vmatprep.mubr.msk.f32.mxu1 %vm427_vm3, %v4989_v0 }
0x1ece   :  { %7242 = vmatmul.mubr.msk.f32.vlgmr.msra.gmra.mrb[40].mxu1 %vm427_vm3, %v5062_v63 }
0x1ecf   :  { %7550 = vmatpush3.bf16.msra.mxu1 %v7547_v56  ;;  %7263 = vmatprep.mubr.msk.f32.mxu1 %vm173_vm1, %v8302_v60 }
0x1ed0   :  { %7552 = vmatprep.subr.bf16.mxu1 %v7551_v2 }
0x1ed3   :  { %v7254_v4 = vpop.f32.mrb[60].mxu0  ;;  %7554 = vmatpush3.bf16.msra.mxu1 %v7551_v2 }
0x1ed4   :  { %v5230_v57 = vpop.f32.mrb[61].mxu0  ;;  %7277 = vmatprep.subr.mxu1 %v7716_v28  ;;  %v5236_v16 = vadd.f32 %v7254_v4, %v6466_v12  ;;  %v6501_v4 = vld [vmem:[%s8724_s13 + $0x28] sm:$0xff] }
0x1ed5   :  { %v5231_v14 = vadd.f32 %v6466_v12, %v5230_v57 }
0x1ed6   :  { %7264 = vmatmul.mubr.msk.f32.vlgmr.msra.gmra.mrb[48].mxu1 %vm173_vm1, %v8304_v61 }
0x1ed7   :  { %7279 = vmatprep.mubr.msk.f32.mxu1 %vm7717_vm2, %v7716_v28 }
0x1edb   :  { %v7276_v59 = vpop.f32.mrb[62].mxu0 }
0x1edc   :  { %v5412_v6 = vadd.f32 %v7276_v59, %v6482_v5  ;;  %v5406_v7 = vpop.f32.mrb[63].mxu0  ;;  %v6503_v59 = vld [vmem:[%s8724_s13 + $0x38] sm:$0xff] }
0x1edd   :  { %v5407_v8 = vadd.f32 %v6482_v5, %v5406_v7  ;;  %v6502_v5 = vld [vmem:[%s8724_s13 + $0x30] sm:$0xff]  ;;  %v6508_v7 = vld [vmem:[%s8726_s15 + $0x40] sm:$0xff] }
0x1edf   :  { %7288 = vmatpush3.msra.mxu0 %v5407_v8  ;;  %v6509_v8 = vld [vmem:[%s8726_s15 + $0x48] sm:$0xff] }
0x1fa9   :  { %v7265_v10 = vpop.f32.mrb[48].mxu1 }
0x1faa   :  { %v5318_v11 = vpop.f32.mrb[49].mxu1  ;;  %v5324_v15 = vadd.f32 %v7265_v10, %v6474_v9  ;;  %v7571_v10 = vpack.c.bf16 %v6509_v8, %v6508_v7 }
0x1fab   :  { %v5319_v13 = vadd.f32 %v6474_v9, %v5318_v11  ;;  %v6510_v9 = vld [vmem:[%s8726_s15 + $0x50] sm:$0xff]  ;;  %v6511_v11 = vld [vmem:[%s8726_s15 + $0x58] sm:$0xff] }
0x1fac   :  { %v7575_v12 = vpack.c.bf16 %v6511_v11, %v6510_v9 }
0x1fad   :  { %7278 = vmatpush3.xpose.msk.msra.mxu1 %vm427_vm3, %v5319_v13  ;;  %v6512_v13 = vld [vmem:[%s8726_s15 + $0x60] sm:$0xff] }
0x1fae   :  { %7282 = vmatprep.subr.mxu1 %v7716_v28 }
0x1fb0   :  { %7280 = vmatmul.mubr.msk.f32.vlgmr.msra.gmra.mrb[50].mxu1 %vm427_vm3, %v5231_v14  ;;  %v6513_v14 = vld [vmem:[%s8726_s15 + $0x68] sm:$0xff] }
0x1fb1   :  { %7283 = vmatpush3.xpose.msk.msra.mxu1 %vm427_vm3, %v5324_v15  ;;  %7284 = vmatprep.mubr.msk.f32.mxu1 %vm7717_vm2, %v7716_v28  ;;  %v7579_v15 = vpack.c.bf16 %v6513_v14, %v6512_v13  ;;  %v6523_v14 = vld [vmem:[%s8729_s18 + $0x1] ss:$0 sm:$0xff] }
0x1fb2   :  { %7292 = vmatprep.subr.mxu1 %v7716_v28 }
0x1fb4   :  { %7285 = vmatmul.mubr.msk.f32.vlgmr.msra.gmra.mrb[52].mxu1 %vm427_vm3, %v5236_v16 }
0x1fb5   :  { %7293 = vmatpush3.msra.mxu1 %v5412_v6  ;;  %7294 = vmatprep.mubr.msk.f32.mxu1 %vm7717_vm2, %v7716_v28  ;;  %v7567_v6 = vpack.c.bf16 %v6503_v59, %v6502_v5 }
0x1fb6   :  { %7297 = vmatprep.subr.mxu1 %v6491_v41 }
0x2083   :  { %v5487_v17 = vpop.f32.mrb[50].mxu1 }
0x2084   :  { %v5567_v18 = vmul.f32 0.35355338, %v5487_v17  ;;  %v7281_v19 = vpop.f32.mrb[51].mxu1 }
0x2086   :  { %v5569_v20 = vsel %vm427_vm3, %v5567_v18, -inf }
0x2087   :  { %5570 = vmax.xlane.f32.xlu0 %v5569_v20  ;;  %v5563_v21 = vpop.f32.mrb[52].mxu1 }
0x2088   :  { %v5568_v23 = vmul.f32 0.35355338, %v5563_v21  ;;  %v7286_v27 = vpop.f32.mrb[53].mxu1 }
0x2089   :  { %v6498_v27 = vld [vmem:[%s8722_s11 + $0x1] ss:$0 sm:$0xff] }
0x208a   :  { %v5572_v29 = vsel %vm427_vm3, %v5568_v23, -inf }
0x208b   :  { %5573 = vmax.xlane.f32.xlu1 %v5572_v29 }
0x2114   :  { %v5571_v30 = vpop.xlane.xlu0 %5570 }
0x2115   :  { %v5575_v31 = vsub.f32 %v5567_v18, %v5571_v30 }
0x2117   :  { %v5577_v32 = vmul.f32 1.442695, %v5575_v31 }
0x2118   :  { %v5574_v33 = vpop.xlane.xlu1 %5573 }
0x2119   :  { %7676 = vpow2.f32 %v5577_v32  ;;  %v5576_v34 = vsub.f32 %v5568_v23, %v5574_v33  ;;  %v6499_v32 = vld [vmem:[%s8723_s12 + $0x1] ss:$0 sm:$0xff] }
0x211b   :  { %v5579_v26 = vmul.f32 1.442695, %v5576_v34 }
0x211d   :  { %7678 = vpow2.f32 %v5579_v26 }
0x2123   :  { %v7677_v28 = vpop.eup %7676 }
0x2124   :  { %v5581_v25 = vsel %vm427_vm3, %v7677_v28, 0.0 }
0x2125   :  { %5582 = vadd.xlane.f32.xlu0 %v5581_v25  ;;  %v6514_v25 = vld [vmem:[%s8726_s15 + $0x70] sm:$0xff] }
0x2127   :  { %v7679_v24 = vpop.eup %7678 }
0x2128   :  { %v5584_v35 = vsel %vm427_vm3, %v7679_v24, 0.0 }
0x2129   :  { %5585 = vadd.xlane.f32.xlu1 %v5584_v35 }
0x21b2   :  { %v5583_v22 = vpop.xlane.xlu0 %5582 }
0x21b3   :  { %7680 = vrcp.f32 %v5583_v22  ;;  %v6505_v22 = vld [vmem:[%s8725_s14 + $0x1] ss:$0 sm:$0xff] }
0x21b6   :  { %v5586_v36 = vpop.xlane.xlu1 %5585 }
0x21b7   :  { %7682 = vrcp.f32 %v5586_v36 }
0x21bd   :  { %v7681_v37 = vpop.eup %7680 }
0x21be   :  { %v5589_v38 = vmul.f32 %v7681_v37, %v7677_v28 }
0x21c0   :  { %7290 = vmatmul.mubr.msk.f32.vlgmr.msra.gmra.mrb[64].mxu0 %vm427_vm3, %v5589_v38 }
0x21c1   :  { %v7683_v39 = vpop.eup %7682 }
0x21c2   :  { %v5590_v40 = vmul.f32 %v7683_v39, %v7679_v24  ;;  %v6515_v24 = vld [vmem:[%s8726_s15 + $0x78] sm:$0xff] }
0x21c3   :  { %v7583_v35 = vpack.c.bf16 %v6515_v24, %v6514_v25 }
0x21c4   :  { %7295 = vmatmul.mubr.msk.f32.vlgmr.msra.gmra.mrb[54].mxu1 %vm427_vm3, %v5590_v40 }
0x21c5   :  { %7298 = vmatpush3.msra.mxu1 %v6491_v41 }
0x21c6   :  { %7572 = vmatprep.subr.bf16.mxu1 %v7571_v10 }
0x2293   :  { %v5660_v42 = vpop.f32.mrb[64].mxu0 }
0x2294   :  { %v7291_v43 = vpop.f32.mrb[65].mxu0  ;;  %7299 = vmatprep.mubr.msk.f32.mxu1 %vm427_vm3, %v5660_v42  ;;  %v6517_v42 = vld [vmem:[%s8727_s16 + $0x1] ss:$0 sm:$0xff] }
0x2297   :  { %v5733_v44 = vpop.f32.mrb[54].mxu1 }
0x2298   :  { %v7296_v45 = vpop.f32.mrb[55].mxu1  ;;  %7300 = vmatmul.mubr.msk.f32.vlgmr.msra.gmra.mrb[40].mxu1 %vm427_vm3, %v5733_v44 }
0x2299   :  { %7574 = vmatpush3.bf16.msra.mxu1 %v7571_v10  ;;  %v6522_v10 = vld [vmem:[%s8728_s17 + $0x1] ss:$0 sm:$0xff]  ;;  %s7718_s17 = smov [#allocation2]  }
0x229a   :  { %7576 = vmatprep.subr.bf16.mxu1 %v7575_v12  ;;  %s6221_s26 = sshll.u32 %s7718_s17, 4  ;;  %s6222_s26 = int_to_ptr.vmem [resolvable:$true] %s6221_s26 }
0x229b   :  { %s7692_s18 = scalar_lea.vmem %s6222_s26, 256  ;;  %p7697_p1 = scmp.lt.s32.totalorder %s6222_s26, %s6222_s26 }
0x229c   :  { %p7693_p0 = scmp.ne.s32.totalorder %s6222_s26, %s7692_s18  ;;  %p7698_p2 = scmp.lt.s32.totalorder %s7692_s18, %s7692_s18 }
0x229d   :  { %7578 = vmatpush3.bf16.msra.mxu1 %v7575_v12 }
0x229e   :  { %7580 = vmatprep.subr.bf16.mxu1 %v7579_v15  ;;  %p7699_p3 = por %p7698_p2, %p7697_p1 }
0x22a0   :  { %p7700_p4 = pnand %p7699_p3, %p7693_p0 }
0x22a1   :  { %7582 = vmatpush3.bf16.msra.mxu1 %v7579_v15 }
0x22a2   :  { %7584 = vmatprep.subr.bf16.mxu1 %v7583_v35 }
0x22a5   :  { %7586 = vmatpush3.bf16.msra.mxu1 %v7583_v35 }
0x236b   :  { %v7301_v47 = vpop.f32.mrb[40].mxu1 }
0x236c   :  { %v5831_v48 = vadd.f32 %v7301_v47, %v6495_v46  ;;  %v5811_v49 = vpop.f32.mrb[41].mxu1 }
0x236d   :  { %v5830_v50 = vadd.f32 %v6495_v46, %v5811_v49 }
0x236e   :  { %v5833_v51 = vadd.f32 %v5831_v48, %v8304_v61 }
0x236f   :  { %v5832_v52 = vadd.f32 %v5830_v50, %v8302_v60  ;;  %v6500_v60 = vld [vmem:[%s8724_s13 + $0x20] sm:$0xff] }
0x2370   :  { %v5841_v53 = vsel %vm173_vm1, %v5833_v51, 0.0  ;;  %v7563_v57 = vpack.c.bf16 %v6501_v4, %v6500_v60  ;;  %v6125_v60 = vld [vmem:[%s8730_s19 + $0x18] sm:$0xff] }
0x2371   :  { %5842 = vadd.xlane.f32.xlu1 %v5841_v53  ;;  %v5838_v54 = vsel %vm173_vm1, %v5832_v52, 0.0 }
0x2372   :  { %5839 = vadd.xlane.f32.xlu0 %v5838_v54  ;;  %7564 = vmatprep.subr.bf16.mxu0 %v7563_v57 }
0x2373   :  { %7566 = vmatpush3.bf16.msra.mxu0 %v7563_v57 }
0x2374   :  { %7568 = vmatprep.subr.bf16.mxu0 %v7567_v6 }
0x2377   :  { %7570 = vmatpush3.bf16.msra.mxu0 %v7567_v6 }
0x23fe   :  { %v5843_v55 = vpop.xlane.xlu1 %5842 }
0x23ff   :  { %v5845_v56 = vmul.f32 0.03125, %v5843_v55  ;;  %v5840_v58 = vpop.xlane.xlu0 %5839 }
0x2400   :  { %v5844_v62 = vmul.f32 0.03125, %v5840_v58 }
0x2401   :  { %v5847_v63 = vsub.f32 %v5833_v51, %v5845_v56 }
0x2402   :  { %v5846_v0 = vsub.f32 %v5832_v52, %v5844_v62 }
0x2403   :  { %v5849_v1 = vmul.f32 %v5847_v63, %v5847_v63 }
0x2404   :  { %v5848_v2 = vmul.f32 %v5846_v0, %v5846_v0 }
0x2405   :  { %v5853_v3 = vsel %vm173_vm1, %v5849_v1, 0.0  ;;  %v6122_v1 = vld [vmem:[%s8730_s19] sm:$0xff] }
0x2406   :  { %5854 = vadd.xlane.f32.xlu1 %v5853_v3  ;;  %v5850_v61 = vsel %vm173_vm1, %v5848_v2, 0.0  ;;  %v6123_v2 = vld [vmem:[%s8730_s19 + $0x8] sm:$0xff] }
0x2407   :  { %5851 = vadd.xlane.f32.xlu0 %v5850_v61  ;;  %v7587_v3 = vpack.c.bf16 %v6123_v2, %v6122_v1  ;;  %v6124_v61 = vld [vmem:[%s8730_s19 + $0x10] sm:$0xff] }
0x2408   :  { %v7591_v4 = vpack.c.bf16 %v6125_v60, %v6124_v61 }
0x2409   :  { %7588 = vmatprep.subr.bf16.mxu0 %v7587_v3 }
0x2493   :  { %v5855_v16 = vpop.xlane.xlu1 %5854 }
0x2494   :  { %v5857_v17 = vmul.f32 0.03125, %v5855_v16  ;;  %v5852_v18 = vpop.xlane.xlu0 %5851 }
0x2495   :  { %v5856_v19 = vmul.f32 0.03125, %v5852_v18 }
0x2496   :  { %v5859_v20 = vadd.f32 1e-05, %v5857_v17 }
0x2497   :  { %v5858_v21 = vadd.f32 1e-05, %v5856_v19  ;;  %v6524_v19 = vld [vmem:[%s8731_s20] ss:$0 sm:$0xff] }
0x2498   :  { %7684 = vrsqrt.f32 %v5859_v20 }
0x2499   :  { %7686 = vrsqrt.f32 %v5858_v21 }
0x24a2   :  { %v7685_v23 = vpop.eup %7684 }
0x24a3   :  { %v7687_v29 = vpop.eup %7686  ;;  %v5863_v30 = vmul.f32 %v7685_v23, %v5847_v63 }
0x24a4   :  { %v5862_v31 = vmul.f32 %v7687_v29, %v5846_v0 }
0x24a5   :  { %v5871_v33 = vmul.f32 %v6498_v27, %v5863_v30 }
0x24a6   :  { %v5870_v34 = vmul.f32 %v6498_v27, %v5862_v31 }
0x24a7   :  { %v5879_v28 = vadd.f32 %v6499_v32, %v5871_v33 }
0x24a8   :  { %v5878_v26 = vadd.f32 %v6499_v32, %v5870_v34 }
0x24aa   :  { %7310 = vmatprep.mubr.msk.f32.mxu0 %vm173_vm1, %v5878_v26 }
0x24ab   :  { %7311 = vmatmul.mubr.msk.f32.vlgmr.msra.gmra.mrb[66].mxu0 %vm173_vm1, %v5879_v28 }
0x24ac   :  { %7590 = vmatpush3.bf16.msra.mxu0 %v7587_v3 }
0x24ad   :  { %7592 = vmatprep.subr.bf16.mxu0 %v7591_v4 }
0x24b0   :  { %7594 = vmatpush3.bf16.msra.mxu0 %v7591_v4 }
0x257e   :  { %v7312_v36 = vpop.f32.mrb[66].mxu0 }
0x257f   :  { %v5971_v37 = vadd.f32 %v7312_v36, %v6505_v22  ;;  %v5965_v38 = vpop.f32.mrb[67].mxu0 }
0x2580   :  { %v5966_v39 = vadd.f32 %v6505_v22, %v5965_v38 }
0x2581   :  { %v5975_v41 = vmax.f32 %v5971_v37, 0.0 }
0x2582   :  { %v5974_v40 = vmax.f32 %v5966_v39, 0.0 }
0x2584   :  { %7329 = vmatprep.mubr.msk.f32.mxu1 %vm3008_vm4, %v5974_v40 }
0x2585   :  { %7330 = vmatmul.mubr.msk.f32.vlgmr.msra.gmra.mrb[56].mxu1 %vm3008_vm4, %v5975_v41 }
0x2658   :  { %v7331_v43 = vpop.f32.mrb[56].mxu1 }
0x2659   :  { %v6071_v44 = vadd.f32 %v7331_v43, %v6517_v42  ;;  %v6065_v45 = vpop.f32.mrb[57].mxu1 }
0x265a   :  { %v6066_v46 = vadd.f32 %v6517_v42, %v6065_v45 }
0x265b   :  { %v6075_v47 = vadd.f32 %v6071_v44, %v5879_v28 }
0x265c   :  { %v6074_v48 = vadd.f32 %v6066_v46, %v5878_v26 }
0x265d   :  { %v6083_v49 = vsel %vm173_vm1, %v6075_v47, 0.0 }
0x265e   :  { %6084 = vadd.xlane.f32.xlu1 %v6083_v49  ;;  %v6080_v50 = vsel %vm173_vm1, %v6074_v48, 0.0 }
0x265f   :  { %6081 = vadd.xlane.f32.xlu0 %v6080_v50 }
0x26eb   :  { %v6085_v51 = vpop.xlane.xlu1 %6084 }
0x26ec   :  { %v6087_v52 = vmul.f32 0.03125, %v6085_v51  ;;  %v6082_v53 = vpop.xlane.xlu0 %6081 }
0x26ed   :  { %v6086_v54 = vmul.f32 0.03125, %v6082_v53 }
0x26ee   :  { %v6089_v55 = vsub.f32 %v6075_v47, %v6087_v52 }
0x26ef   :  { %v6088_v56 = vsub.f32 %v6074_v48, %v6086_v54 }
0x26f0   :  { %v6091_v58 = vmul.f32 %v6089_v55, %v6089_v55 }
0x26f1   :  { %v6090_v62 = vmul.f32 %v6088_v56, %v6088_v56 }
0x26f2   :  { %v6095_v63 = vsel %vm173_vm1, %v6091_v58, 0.0 }
0x26f3   :  { %6096 = vadd.xlane.f32.xlu1 %v6095_v63  ;;  %v6092_v0 = vsel %vm173_vm1, %v6090_v62, 0.0 }
0x26f4   :  { %6093 = vadd.xlane.f32.xlu0 %v6092_v0 }
0x2780   :  { %v6097_v57 = vpop.xlane.xlu1 %6096 }
0x2781   :  { %v6099_v5 = vmul.f32 0.03125, %v6097_v57  ;;  %v6094_v59 = vpop.xlane.xlu0 %6093 }
0x2782   :  { %v6098_v6 = vmul.f32 0.03125, %v6094_v59 }
0x2783   :  { %v6101_v7 = vadd.f32 1e-05, %v6099_v5 }
0x2784   :  { %v6100_v8 = vadd.f32 1e-05, %v6098_v6 }
0x2785   :  { %7688 = vrsqrt.f32 %v6101_v7 }
0x2786   :  { %7690 = vrsqrt.f32 %v6100_v8 }
0x278f   :  { %v7689_v9 = vpop.eup %7688 }
0x2790   :  { %v7691_v11 = vpop.eup %7690  ;;  %v6105_v12 = vmul.f32 %v7689_v9, %v6089_v55 }
0x2791   :  { %v6104_v13 = vmul.f32 %v7691_v11, %v6088_v56 }
0x2792   :  { %v6113_v15 = vmul.f32 %v6522_v10, %v6105_v12 }
0x2793   :  { %v6112_v16 = vmul.f32 %v6522_v10, %v6104_v13 }
0x2794   :  { %v6121_v18 = vadd.f32 %v6523_v14, %v6113_v15 }
0x2795   :  { %v6120_v17 = vadd.f32 %v6523_v14, %v6112_v16 }
0x2797   :  { %7340 = vmatprep.mubr.msk.f32.mxu0 %vm173_vm1, %v6120_v17 }
0x2798   :  { %7341 = vmatmul.mubr.msk.f32.vlgmr.msra.gmra.mrb[68].mxu0 %vm173_vm1, %v6121_v18 }
0x286b   :  { %v7342_v20 = vpop.f32.mrb[68].mxu0 }
0x286c   :  { %v6211_v21 = vadd.f32 %v7342_v20, %v6524_v19  ;;  %v6205_v23 = vpop.f32.mrb[69].mxu0 }
0x286d   :  { %v6206_v27 = vadd.f32 %v6524_v19, %v6205_v23 }
0x286e   :  { %6215 = vst [vmem:[#allocation2 + $0x8] sm:$0xff] %v6211_v21 }
0x286f   :  { %6214 = vst [vmem:[#allocation2] sm:$0xff] %v6206_v27 }
0x2870   :  { %7703 = shalt.err (!%p7700_p4)
}
0x2871   :  { %s7704_s20 = scalar_lea.hbm %s8732_s21, 256 }
0x2872   :  { %p7705_p5 = scmp.ne.s32.totalorder %s8732_s21, %s7704_s20  ;;  %p7708_p6 = scmp.lt.u32.totalorder %s7704_s20, %s8732_s21 }
0x2874   :  { %p7710_p7 = pnand %p7708_p6, %p7705_p5 }
0x2876   :  { %7713 = shalt.err (!%p7710_p7)
}
0x2877   :  { %s7719_s11 = smov 128   ;;  %s7720_s25 = smov 8  }
0x2878   :  { %6227 = dma.vmem_to_hbm [thread:$0]  %s6222_s26, 256, %s8732_s21, [#allocation3], %s7719_s11, %s7719_s11, %s7720_s25  }
0x2879   :  { %7714 = dma.done.wait [#allocation3], 256  }
0x287a   :  { %7715 = vsyncadd [#allocation3], 4294967040 }
0x287b   :  { %6231 = vsyncpa [#allocation3], 1 }

</bundles_post_ra>
